<compile_context>
chip_gen: v7x
topology: tpu7x:2x2x1
jax: 0.10.0
libtpu: 0.0.40
codegen_flags: <defaults>
</compile_context>

<pallas_src>
import functools

import jax
import jax.numpy as jnp
from jax.experimental import pallas as pl
from jax.experimental.pallas import tpu as pltpu


# ----------------------------- helpers (glue) -----------------------------

def im2col(x, kh, kw, stride, pad):
    """x: (N, H, W, C) -> patches (N*Ho*Wo, kh*kw*C), Ho, Wo (dtype preserved)."""
    n, h, w, c = x.shape
    if pad:
        x = jnp.pad(x, ((0, 0), (pad, pad), (pad, pad), (0, 0)))
    ho = (h + 2 * pad - kh) // stride + 1
    wo = (w + 2 * pad - kw) // stride + 1
    cols = []
    for i in range(kh):
        for j in range(kw):
            cols.append(x[:, i:i + stride * ho:stride, j:j + stride * wo:stride, :])
    patches = jnp.stack(cols, axis=3)            # (N, Ho, Wo, kh*kw, C)
    return patches.reshape(n * ho * wo, kh * kw * c), ho, wo


def _conv_weight_matrix(w):
    """(Cout, Cin, kh, kw) torch layout -> (kh*kw*Cin, Cout) bf16 for the MXU."""
    cout, cin, kh, kw = w.shape
    return jnp.transpose(w, (2, 3, 1, 0)).reshape(kh * kw * cin, cout).astype(jnp.bfloat16)


_COMPILER_PARAMS = pltpu.CompilerParams(
    dimension_semantics=("parallel",),          # per-sample grid, megacore-shardable
    vmem_limit_bytes=32 * 1024 * 1024,          # explicit headroom (v7x scoped VMEM)
)


# ----------------------------- Pallas kernels -----------------------------

def _conv_lrelu_kernel(a_ref, w_ref, o_ref):
    # one sample per grid step: a = (Ho*Wo, K) bf16, w = (K, Cout) bf16
    acc = jnp.dot(a_ref[...], w_ref[...], preferred_element_type=jnp.float32)
    acc = jnp.where(acc >= 0.0, acc, 0.2 * acc)          # LeakyReLU(0.2), f32 VPU
    o_ref[...] = acc.astype(o_ref.dtype)


def _layernorm_lrelu(acc, g, b, nfeat):
    # Per-sample LayerNorm over every element of the resident (H*W, C) block
    # (== torch LayerNorm([C, H, W])), statistics in f32.
    inv_n = 1.0 / nfeat
    mean = jnp.sum(acc, keepdims=True) * inv_n           # (1, 1)
    xc = acc - mean
    var = jnp.sum(xc * xc, keepdims=True) * inv_n        # (1, 1)
    y = xc * jax.lax.rsqrt(var + 1e-5) * g + b
    return jnp.where(y >= 0.0, y, 0.2 * y)


def _conv_ln_lrelu_kernel(a_ref, w_ref, g_ref, b_ref, o_ref, *, nfeat):
    acc = jnp.dot(a_ref[...], w_ref[...], preferred_element_type=jnp.float32)
    y = _layernorm_lrelu(acc, g_ref[...], b_ref[...], nfeat)
    o_ref[...] = y.astype(o_ref.dtype)


def _conv_ln_lrelu_head_kernel(a_ref, w_ref, g_ref, b_ref, w5_ref, o_ref, *, nfeat):
    acc = jnp.dot(a_ref[...], w_ref[...], preferred_element_type=jnp.float32)
    y = _layernorm_lrelu(acc, g_ref[...], b_ref[...], nfeat)
    # fused final 4x4 conv (cout=1): VPU multiply + full reduce, all in f32
    score = jnp.sum(y * w5_ref[...], keepdims=True)      # (1, 1)
    o_ref[...] = jnp.zeros(o_ref.shape, jnp.float32) + score


# ----------------------------- layer wrappers -----------------------------

def conv_lrelu_pallas(x, w):
    """Layer 1: x (N,H,W,Cin) bf16, w (Cout,Cin,4,4) f32 -> (N,Ho,Wo,Cout) bf16."""
    n = x.shape[0]
    cout = w.shape[0]
    patches, ho, wo = im2col(x, 4, 4, 2, 1)              # bf16 (N*Ho*Wo, K)
    k = patches.shape[1]
    rows = ho * wo                                       # 1024 rows per sample
    wmat = _conv_weight_matrix(w)

    out = pl.pallas_call(
        _conv_lrelu_kernel,
        out_shape=jax.ShapeDtypeStruct((n * rows, cout), jnp.bfloat16),
        grid_spec=pltpu.PrefetchScalarGridSpec(
            num_scalar_prefetch=0,
            grid=(n,),
            in_specs=[
                pl.BlockSpec((rows, k), lambda i: (i, 0)),     # K = full dim, no 128 pad
                pl.BlockSpec((k, cout), lambda i: (0, 0)),
            ],
            out_specs=pl.BlockSpec((rows, cout), lambda i: (i, 0)),
        ),
        compiler_params=_COMPILER_PARAMS,
    )(patches, wmat)
    return out.reshape(n, ho, wo, cout)


def conv_ln_lrelu_pallas(x, w, gamma, beta, final_w=None):
    """conv(4,2,1) + LayerNorm([C,H,W]) + LeakyReLU(0.2), one sample per grid step.
    If final_w is given (last block), also fuses the trailing 4x4 cout=1 conv and
    returns per-sample scalars (N,)."""
    n = x.shape[0]
    cout = w.shape[0]
    patches, ho, wo = im2col(x, 4, 4, 2, 1)              # bf16
    k = patches.shape[1]
    rows = ho * wo
    wmat = _conv_weight_matrix(w)
    # gamma/beta: (C, H, W) -> (H*W, C), matching the per-sample (rows, Cout) block
    g2 = jnp.transpose(gamma, (1, 2, 0)).reshape(rows, cout).astype(jnp.float32)
    b2 = jnp.transpose(beta, (1, 2, 0)).reshape(rows, cout).astype(jnp.float32)

    a_spec = pl.BlockSpec((rows, k), lambda i: (i, 0))
    w_spec = pl.BlockSpec((k, cout), lambda i: (0, 0))
    gb_spec = pl.BlockSpec((rows, cout), lambda i: (0, 0))

    if final_w is None:
        out = pl.pallas_call(
            functools.partial(_conv_ln_lrelu_kernel, nfeat=rows * cout),
            out_shape=jax.ShapeDtypeStruct((n * rows, cout), jnp.bfloat16),
            grid_spec=pltpu.PrefetchScalarGridSpec(
                num_scalar_prefetch=0,
                grid=(n,),
                in_specs=[a_spec, w_spec, gb_spec, gb_spec],
                out_specs=pl.BlockSpec((rows, cout), lambda i: (i, 0)),
            ),
            compiler_params=_COMPILER_PARAMS,
        )(patches, wmat, g2, b2)
        return out.reshape(n, ho, wo, cout)

    # Last block: the trailing conv's 4x4 receptive field is the whole feature
    # map, so it reduces to sum(LN_out * w5) per sample.  w5: (1,C,4,4) -> (rows, C).
    w5_2d = jnp.transpose(final_w[0], (1, 2, 0)).reshape(rows, cout).astype(jnp.float32)
    out = pl.pallas_call(
        functools.partial(_conv_ln_lrelu_head_kernel, nfeat=rows * cout),
        out_shape=jax.ShapeDtypeStruct((n, 8, 128), jnp.float32),   # (8,128)-aligned slab
        grid_spec=pltpu.PrefetchScalarGridSpec(
            num_scalar_prefetch=0,
            grid=(n,),
            in_specs=[a_spec, w_spec, gb_spec, gb_spec, gb_spec],
            out_specs=pl.BlockSpec((1, 8, 128), lambda i: (i, 0, 0)),
        ),
        compiler_params=_COMPILER_PARAMS,
    )(patches, wmat, g2, b2, w5_2d)
    return out[:, 0, 0]


# ----------------------------- model wrappers -----------------------------

def _spectral_sigma(mat, iters=30):
    # deterministic power iteration (mirrors nn.utils.spectral_norm's estimate)
    v = jnp.ones((mat.shape[1],), mat.dtype)
    u = mat @ v
    for _ in range(iters):
        u = mat @ v
        u = u / (jnp.linalg.norm(u) + 1e-12)
        v = mat.T @ u
        v = v / (jnp.linalg.norm(v) + 1e-12)
    return jnp.dot(u, mat @ v)


def init_params(key, in_dim=3, dim=16):
    keys = jax.random.split(key, 8)

    def conv_w(k, cout, cin):
        w = 0.02 * jax.random.normal(k, (cout, cin, 4, 4), jnp.float32)
        sigma = _spectral_sigma(w.reshape(cout, -1))
        return w / sigma  # spectral_norm applied to the stored weight

    def ln(kg, c, h, w):
        gamma = 1.0 + 0.02 * jax.random.normal(kg, (c, h, w), jnp.float32)
        beta = jnp.zeros((c, h, w), jnp.float32)
        return gamma, beta

    return {
        "w1": conv_w(keys[0], dim, in_dim),
        "w2": conv_w(keys[1], dim * 2, dim),     "ln2": ln(keys[2], dim * 2, 16, 16),
        "w3": conv_w(keys[3], dim * 4, dim * 2), "ln3": ln(keys[4], dim * 4, 8, 8),
        "w4": conv_w(keys[5], dim * 8, dim * 4), "ln4": ln(keys[6], dim * 8, 4, 4),
        "w5": conv_w(keys[7], 1, dim * 8),
    }


def discriminator_forward(x_nchw, params):
    """x_nchw: (N, in_dim, 64, 64) float32 -> (N,) float32."""
    x = jnp.transpose(x_nchw, (0, 2, 3, 1)).astype(jnp.bfloat16)   # NCHW -> NHWC bf16

    x = conv_lrelu_pallas(x, params["w1"])                          # (N,32,32,  dim)
    x = conv_ln_lrelu_pallas(x, params["w2"], *params["ln2"])       # (N,16,16,2*dim)
    x = conv_ln_lrelu_pallas(x, params["w3"], *params["ln3"])       # (N, 8, 8,4*dim)
    y = conv_ln_lrelu_pallas(x, params["w4"], *params["ln4"],
                             final_w=params["w5"])                  # (N,)  conv5 fused
    return y                                                        # y.view(-1)


# ------------------------- pure-JAX reference check ------------------------

def reference_forward(x_nchw, params):
    x = jnp.transpose(x_nchw, (0, 2, 3, 1))

    def conv(x, w, stride, pad):
        cout, cin, kh, kw = w.shape
        patches, ho, wo = im2col(x, kh, kw, stride, pad)
        wmat = jnp.transpose(w, (2, 3, 1, 0)).reshape(kh * kw * cin, cout)
        return (patches @ wmat).reshape(x.shape[0], ho, wo, cout)

    def lrelu(v):
        return jnp.where(v >= 0, v, 0.2 * v)

    x = lrelu(conv(x, params["w1"], 2, 1))
    for wk, lk in (("w2", "ln2"), ("w3", "ln3"), ("w4", "ln4")):
        x = conv(x, params[wk], 2, 1)
        n_, h, w_, c = x.shape
        gamma, beta = params[lk]
        xf = x.reshape(n_, -1)
        mean = xf.mean(-1, keepdims=True)
        var = ((xf - mean) ** 2).mean(-1, keepdims=True)
        xf = (xf - mean) / jnp.sqrt(var + 1e-5)
        x = xf.reshape(n_, h, w_, c) * jnp.transpose(gamma, (1, 2, 0)) \
            + jnp.transpose(beta, (1, 2, 0))
        x = lrelu(x)
    x = conv(x, params["w5"], 1, 0)
    return x.reshape(-1)


# ----------------------------------- main -----------------------------------

if __name__ == "__main__":
    key = jax.random.PRNGKey(0)
    kx, kp = jax.random.split(key)

    N, IN_DIM, DIM = 2, 3, 16   # spatial must be 64x64 (LayerNorm shapes are hardcoded)
    x = jax.random.normal(kx, (N, IN_DIM, 64, 64), jnp.float32)
    params = init_params(kp, in_dim=IN_DIM, dim=DIM)

    y = jax.jit(discriminator_forward)(x, params)
    y = jax.block_until_ready(y)

    assert y.shape == (N,)
    assert bool(jnp.all(jnp.isfinite(y)))

    y_ref = reference_forward(x, params)
    rel_err = float(jnp.max(jnp.abs(y - y_ref)) / (jnp.max(jnp.abs(y_ref)) + 1e-6))
    # bf16 activations/weights (MXU-native) vs the f32 reference -> wider tolerance
    assert rel_err < 1e-1, f"mismatch vs reference: rel_err={rel_err}"

    print("KERNEL_OK")
</pallas_src>

<mosaic_0001>
module attributes {stable_mosaic.version = 11 : i64} {
  func.func @_conv_lrelu_kernel(%arg0: i32, %arg1: memref<1024x48xbf16, #tpu.memory_space<vmem>>, %arg2: memref<48x16xbf16, #tpu.memory_space<vmem>>, %arg3: memref<1024x16xbf16, #tpu.memory_space<vmem>>) attributes {dimension_semantics = [#tpu.dimension_semantics<parallel>], iteration_bounds = array<i64: 2>, scalar_prefetch = 0 : i64, scratch_operands = 0 : i64, tpu.core_type = #tpu.core_type<tc>, window_params = [{transform_indices = @transform_0, window_bounds = array<i64: 1024, 48>}, {pipeline_mode = #tpu.pipeline_mode<synchronous>, transform_indices = @transform_1, window_bounds = array<i64: 48, 16>}, {transform_indices = @transform_2, window_bounds = array<i64: 1024, 16>}]} {
    %c0 = arith.constant 0 : index
    %c0_0 = arith.constant 0 : index
    %0 = vector.load %arg1[%c0, %c0_0] : memref<1024x48xbf16, #tpu.memory_space<vmem>>, vector<1024x48xbf16>
    %c0_1 = arith.constant 0 : index
    %c0_2 = arith.constant 0 : index
    %1 = vector.load %arg2[%c0_1, %c0_2] : memref<48x16xbf16, #tpu.memory_space<vmem>>, vector<48x16xbf16>
    %cst = arith.constant dense<0.000000e+00> : vector<1024x16xf32>
    %2 = tpu.matmul %0, %1, %cst {dimension_numbers = #tpu.dot_dimension_numbers<[1], [0], [0], [1], [0, 0, 1, 1], [], []>} : vector<1024x48xbf16>, vector<48x16xbf16>, vector<1024x16xf32> -> vector<1024x16xf32>
    %cst_3 = arith.constant 0.000000e+00 : f32
    %3 = vector.broadcast %cst_3 : f32 to vector<1024x16xf32>
    %4 = arith.cmpf oge, %2, %3 : vector<1024x16xf32>
    %cst_4 = arith.constant 2.000000e-01 : f32
    %5 = vector.broadcast %cst_4 : f32 to vector<1024x16xf32>
    %6 = arith.mulf %5, %2 : vector<1024x16xf32>
    %7 = arith.select %4, %2, %6 : vector<1024x16xi1>, vector<1024x16xf32>
    %8 = arith.truncf %7 : vector<1024x16xf32> to vector<1024x16xbf16>
    %c0_5 = arith.constant 0 : index
    %c0_6 = arith.constant 0 : index
    %9 = vector.load %arg3[%c0_5, %c0_6] : memref<1024x16xbf16, #tpu.memory_space<vmem>>, vector<1024x16xbf16>
    tpu.vector_store %arg3[%c0_5, %c0_6], %8 {strides = array<i32>} : memref<1024x16xbf16, #tpu.memory_space<vmem>>, vector<1024x16xbf16>,
    return
  }
  func.func @transform_0(%arg0: i32) -> (i32, i32) {
    %c0_i32 = arith.constant 0 : i32
    %c0_i32_0 = arith.constant 0 : i32
    return %arg0, %c0_i32 : i32, i32
  }
  func.func @transform_1(%arg0: i32) -> (i32, i32) {
    %c0_i32 = arith.constant 0 : i32
    %c0_i32_0 = arith.constant 0 : i32
    %c0_i32_1 = arith.constant 0 : i32
    return %c0_i32, %c0_i32_0 : i32, i32
  }
  func.func @transform_2(%arg0: i32) -> (i32, i32) {
    %c0_i32 = arith.constant 0 : i32
    %c0_i32_0 = arith.constant 0 : i32
    return %arg0, %c0_i32 : i32, i32
  }
}

module attributes {stable_mosaic.version = 11 : i64} {
  func.func @_conv_ln_lrelu_kernel(%arg0: i32, %arg1: memref<256x256xbf16, #tpu.memory_space<vmem>>, %arg2: memref<256x32xbf16, #tpu.memory_space<vmem>>, %arg3: memref<256x32xf32, #tpu.memory_space<vmem>>, %arg4: memref<256x32xf32, #tpu.memory_space<vmem>>, %arg5: memref<256x32xbf16, #tpu.memory_space<vmem>>) attributes {dimension_semantics = [#tpu.dimension_semantics<parallel>], iteration_bounds = array<i64: 2>, scalar_prefetch = 0 : i64, scratch_operands = 0 : i64, tpu.core_type = #tpu.core_type<tc>, window_params = [{transform_indices = @transform_0, window_bounds = array<i64: 256, 256>}, {pipeline_mode = #tpu.pipeline_mode<synchronous>, transform_indices = @transform_1, window_bounds = array<i64: 256, 32>}, {pipeline_mode = #tpu.pipeline_mode<synchronous>, transform_indices = @transform_2, window_bounds = array<i64: 256, 32>}, {pipeline_mode = #tpu.pipeline_mode<synchronous>, transform_indices = @transform_3, window_bounds = array<i64: 256, 32>}, {transform_indices = @transform_4, window_bounds = array<i64: 256, 32>}]} {
    %c0 = arith.constant 0 : index
    %c0_0 = arith.constant 0 : index
    %0 = vector.load %arg1[%c0, %c0_0] : memref<256x256xbf16, #tpu.memory_space<vmem>>, vector<256x256xbf16>
    %c0_1 = arith.constant 0 : index
    %c0_2 = arith.constant 0 : index
    %1 = vector.load %arg2[%c0_1, %c0_2] : memref<256x32xbf16, #tpu.memory_space<vmem>>, vector<256x32xbf16>
    %cst = arith.constant dense<0.000000e+00> : vector<256x32xf32>
    %2 = tpu.matmul %0, %1, %cst {dimension_numbers = #tpu.dot_dimension_numbers<[1], [0], [0], [1], [0, 0, 1, 1], [], []>} : vector<256x256xbf16>, vector<256x32xbf16>, vector<256x32xf32> -> vector<256x32xf32>
    %c0_3 = arith.constant 0 : index
    %c0_4 = arith.constant 0 : index
    %3 = vector.load %arg3[%c0_3, %c0_4] : memref<256x32xf32, #tpu.memory_space<vmem>>, vector<256x32xf32>
    %c0_5 = arith.constant 0 : index
    %c0_6 = arith.constant 0 : index
    %4 = vector.load %arg4[%c0_5, %c0_6] : memref<256x32xf32, #tpu.memory_space<vmem>>, vector<256x32xf32>
    %5 = vector.shape_cast %2 : vector<256x32xf32> to vector<1x256x32xf32>
    %cst_7 = arith.constant dense<0.000000e+00> : vector<1xf32>
    %6 = vector.multi_reduction <add>, %5, %cst_7 [1, 2] : vector<1x256x32xf32> to vector<1xf32>
    %7 = vector.shape_cast %6 : vector<1xf32> to vector<1x1x1xf32>
    %8 = vector.extract %7[0, 0, 0] : f32 from vector<1x1x1xf32>
    %9 = vector.broadcast %8 : f32 to vector<1x1xf32>
    %cst_8 = arith.constant 1.22070313E-4 : f32
    %10 = vector.broadcast %cst_8 : f32 to vector<1x1xf32>
    %11 = arith.mulf %9, %10 : vector<1x1xf32>
    %12 = vector.broadcast %11 : vector<1x1xf32> to vector<256x32xf32>
    %13 = arith.subf %2, %12 : vector<256x32xf32>
    %14 = arith.mulf %13, %13 : vector<256x32xf32>
    %15 = vector.shape_cast %14 : vector<256x32xf32> to vector<1x256x32xf32>
    %cst_9 = arith.constant dense<0.000000e+00> : vector<1xf32>
    %16 = vector.multi_reduction <add>, %15, %cst_9 [1, 2] : vector<1x256x32xf32> to vector<1xf32>
    %17 = vector.shape_cast %16 : vector<1xf32> to vector<1x1x1xf32>
    %18 = vector.extract %17[0, 0, 0] : f32 from vector<1x1x1xf32>
    %19 = vector.broadcast %18 : f32 to vector<1x1xf32>
    %cst_10 = arith.constant 1.22070313E-4 : f32
    %20 = vector.broadcast %cst_10 : f32 to vector<1x1xf32>
    %21 = arith.mulf %19, %20 : vector<1x1xf32>
    %cst_11 = arith.constant 9.99999974E-6 : f32
    %22 = vector.broadcast %cst_11 : f32 to vector<1x1xf32>
    %23 = arith.addf %21, %22 : vector<1x1xf32>
    %24 = math.rsqrt %23 : vector<1x1xf32>
    %25 = vector.broadcast %24 : vector<1x1xf32> to vector<256x32xf32>
    %26 = arith.mulf %13, %25 : vector<256x32xf32>
    %27 = arith.mulf %26, %3 : vector<256x32xf32>
    %28 = arith.addf %27, %4 : vector<256x32xf32>
    %cst_12 = arith.constant 0.000000e+00 : f32
    %29 = vector.broadcast %cst_12 : f32 to vector<256x32xf32>
    %30 = arith.cmpf oge, %28, %29 : vector<256x32xf32>
    %cst_13 = arith.constant 2.000000e-01 : f32
    %31 = vector.broadcast %cst_13 : f32 to vector<256x32xf32>
    %32 = arith.mulf %31, %28 : vector<256x32xf32>
    %33 = arith.select %30, %28, %32 : vector<256x32xi1>, vector<256x32xf32>
    %34 = arith.truncf %33 : vector<256x32xf32> to vector<256x32xbf16>
    %c0_14 = arith.constant 0 : index
    %c0_15 = arith.constant 0 : index
    %35 = vector.load %arg5[%c0_14, %c0_15] : memref<256x32xbf16, #tpu.memory_space<vmem>>, vector<256x32xbf16>
    tpu.vector_store %arg5[%c0_14, %c0_15], %34 {strides = array<i32>} : memref<256x32xbf16, #tpu.memory_space<vmem>>, vector<256x32xbf16>,
    return
  }
  func.func @transform_0(%arg0: i32) -> (i32, i32) {
    %c0_i32 = arith.constant 0 : i32
    %c0_i32_0 = arith.constant 0 : i32
    return %arg0, %c0_i32 : i32, i32
  }
  func.func @transform_1(%arg0: i32) -> (i32, i32) {
    %c0_i32 = arith.constant 0 : i32
    %c0_i32_0 = arith.constant 0 : i32
    %c0_i32_1 = arith.constant 0 : i32
    return %c0_i32, %c0_i32_0 : i32, i32
  }
  func.func @transform_2(%arg0: i32) -> (i32, i32) {
    %c0_i32 = arith.constant 0 : i32
    %c0_i32_0 = arith.constant 0 : i32
    %c0_i32_1 = arith.constant 0 : i32
    return %c0_i32, %c0_i32_0 : i32, i32
  }
  func.func @transform_3(%arg0: i32) -> (i32, i32) {
    %c0_i32 = arith.constant 0 : i32
    %c0_i32_0 = arith.constant 0 : i32
    %c0_i32_1 = arith.constant 0 : i32
    return %c0_i32, %c0_i32_0 : i32, i32
  }
  func.func @transform_4(%arg0: i32) -> (i32, i32) {
    %c0_i32 = arith.constant 0 : i32
    %c0_i32_0 = arith.constant 0 : i32
    return %arg0, %c0_i32 : i32, i32
  }
}

module attributes {stable_mosaic.version = 11 : i64} {
  func.func @_conv_ln_lrelu_kernel(%arg0: i32, %arg1: memref<64x512xbf16, #tpu.memory_space<vmem>>, %arg2: memref<512x64xbf16, #tpu.memory_space<vmem>>, %arg3: memref<64x64xf32, #tpu.memory_space<vmem>>, %arg4: memref<64x64xf32, #tpu.memory_space<vmem>>, %arg5: memref<64x64xbf16, #tpu.memory_space<vmem>>) attributes {dimension_semantics = [#tpu.dimension_semantics<parallel>], iteration_bounds = array<i64: 2>, scalar_prefetch = 0 : i64, scratch_operands = 0 : i64, tpu.core_type = #tpu.core_type<tc>, window_params = [{transform_indices = @transform_0, window_bounds = array<i64: 64, 512>}, {pipeline_mode = #tpu.pipeline_mode<synchronous>, transform_indices = @transform_1, window_bounds = array<i64: 512, 64>}, {pipeline_mode = #tpu.pipeline_mode<synchronous>, transform_indices = @transform_2, window_bounds = array<i64: 64, 64>}, {pipeline_mode = #tpu.pipeline_mode<synchronous>, transform_indices = @transform_3, window_bounds = array<i64: 64, 64>}, {transform_indices = @transform_4, window_bounds = array<i64: 64, 64>}]} {
    %c0 = arith.constant 0 : index
    %c0_0 = arith.constant 0 : index
    %0 = vector.load %arg1[%c0, %c0_0] : memref<64x512xbf16, #tpu.memory_space<vmem>>, vector<64x512xbf16>
    %c0_1 = arith.constant 0 : index
    %c0_2 = arith.constant 0 : index
    %1 = vector.load %arg2[%c0_1, %c0_2] : memref<512x64xbf16, #tpu.memory_space<vmem>>, vector<512x64xbf16>
    %cst = arith.constant dense<0.000000e+00> : vector<64x64xf32>
    %2 = tpu.matmul %0, %1, %cst {dimension_numbers = #tpu.dot_dimension_numbers<[1], [0], [0], [1], [0, 0, 1, 1], [], []>} : vector<64x512xbf16>, vector<512x64xbf16>, vector<64x64xf32> -> vector<64x64xf32>
    %c0_3 = arith.constant 0 : index
    %c0_4 = arith.constant 0 : index
    %3 = vector.load %arg3[%c0_3, %c0_4] : memref<64x64xf32, #tpu.memory_space<vmem>>, vector<64x64xf32>
    %c0_5 = arith.constant 0 : index
    %c0_6 = arith.constant 0 : index
    %4 = vector.load %arg4[%c0_5, %c0_6] : memref<64x64xf32, #tpu.memory_space<vmem>>, vector<64x64xf32>
    %5 = vector.shape_cast %2 : vector<64x64xf32> to vector<1x64x64xf32>
    %cst_7 = arith.constant dense<0.000000e+00> : vector<1xf32>
    %6 = vector.multi_reduction <add>, %5, %cst_7 [1, 2] : vector<1x64x64xf32> to vector<1xf32>
    %7 = vector.shape_cast %6 : vector<1xf32> to vector<1x1x1xf32>
    %8 = vector.extract %7[0, 0, 0] : f32 from vector<1x1x1xf32>
    %9 = vector.broadcast %8 : f32 to vector<1x1xf32>
    %cst_8 = arith.constant 2.44140625E-4 : f32
    %10 = vector.broadcast %cst_8 : f32 to vector<1x1xf32>
    %11 = arith.mulf %9, %10 : vector<1x1xf32>
    %12 = vector.broadcast %11 : vector<1x1xf32> to vector<64x64xf32>
    %13 = arith.subf %2, %12 : vector<64x64xf32>
    %14 = arith.mulf %13, %13 : vector<64x64xf32>
    %15 = vector.shape_cast %14 : vector<64x64xf32> to vector<1x64x64xf32>
    %cst_9 = arith.constant dense<0.000000e+00> : vector<1xf32>
    %16 = vector.multi_reduction <add>, %15, %cst_9 [1, 2] : vector<1x64x64xf32> to vector<1xf32>
    %17 = vector.shape_cast %16 : vector<1xf32> to vector<1x1x1xf32>
    %18 = vector.extract %17[0, 0, 0] : f32 from vector<1x1x1xf32>
    %19 = vector.broadcast %18 : f32 to vector<1x1xf32>
    %cst_10 = arith.constant 2.44140625E-4 : f32
    %20 = vector.broadcast %cst_10 : f32 to vector<1x1xf32>
    %21 = arith.mulf %19, %20 : vector<1x1xf32>
    %cst_11 = arith.constant 9.99999974E-6 : f32
    %22 = vector.broadcast %cst_11 : f32 to vector<1x1xf32>
    %23 = arith.addf %21, %22 : vector<1x1xf32>
    %24 = math.rsqrt %23 : vector<1x1xf32>
    %25 = vector.broadcast %24 : vector<1x1xf32> to vector<64x64xf32>
    %26 = arith.mulf %13, %25 : vector<64x64xf32>
    %27 = arith.mulf %26, %3 : vector<64x64xf32>
    %28 = arith.addf %27, %4 : vector<64x64xf32>
    %cst_12 = arith.constant 0.000000e+00 : f32
    %29 = vector.broadcast %cst_12 : f32 to vector<64x64xf32>
    %30 = arith.cmpf oge, %28, %29 : vector<64x64xf32>
    %cst_13 = arith.constant 2.000000e-01 : f32
    %31 = vector.broadcast %cst_13 : f32 to vector<64x64xf32>
    %32 = arith.mulf %31, %28 : vector<64x64xf32>
    %33 = arith.select %30, %28, %32 : vector<64x64xi1>, vector<64x64xf32>
    %34 = arith.truncf %33 : vector<64x64xf32> to vector<64x64xbf16>
    %c0_14 = arith.constant 0 : index
    %c0_15 = arith.constant 0 : index
    %35 = vector.load %arg5[%c0_14, %c0_15] : memref<64x64xbf16, #tpu.memory_space<vmem>>, vector<64x64xbf16>
    tpu.vector_store %arg5[%c0_14, %c0_15], %34 {strides = array<i32>} : memref<64x64xbf16, #tpu.memory_space<vmem>>, vector<64x64xbf16>,
    return
  }
  func.func @transform_0(%arg0: i32) -> (i32, i32) {
    %c0_i32 = arith.constant 0 : i32
    %c0_i32_0 = arith.constant 0 : i32
    return %arg0, %c0_i32 : i32, i32
  }
  func.func @transform_1(%arg0: i32) -> (i32, i32) {
    %c0_i32 = arith.constant 0 : i32
    %c0_i32_0 = arith.constant 0 : i32
    %c0_i32_1 = arith.constant 0 : i32
    return %c0_i32, %c0_i32_0 : i32, i32
  }
  func.func @transform_2(%arg0: i32) -> (i32, i32) {
    %c0_i32 = arith.constant 0 : i32
    %c0_i32_0 = arith.constant 0 : i32
    %c0_i32_1 = arith.constant 0 : i32
    return %c0_i32, %c0_i32_0 : i32, i32
  }
  func.func @transform_3(%arg0: i32) -> (i32, i32) {
    %c0_i32 = arith.constant 0 : i32
    %c0_i32_0 = arith.constant 0 : i32
    %c0_i32_1 = arith.constant 0 : i32
    return %c0_i32, %c0_i32_0 : i32, i32
  }
  func.func @transform_4(%arg0: i32) -> (i32, i32) {
    %c0_i32 = arith.constant 0 : i32
    %c0_i32_0 = arith.constant 0 : i32
    return %arg0, %c0_i32 : i32, i32
  }
}

module attributes {stable_mosaic.version = 11 : i64} {
  func.func @_conv_ln_lrelu_head_kernel(%arg0: i32, %arg1: memref<16x1024xbf16, #tpu.memory_space<vmem>>, %arg2: memref<1024x128xbf16, #tpu.memory_space<vmem>>, %arg3: memref<16x128xf32, #tpu.memory_space<vmem>>, %arg4: memref<16x128xf32, #tpu.memory_space<vmem>>, %arg5: memref<16x128xf32, #tpu.memory_space<vmem>>, %arg6: memref<1x8x128xf32, #tpu.memory_space<vmem>>) attributes {dimension_semantics = [#tpu.dimension_semantics<parallel>], iteration_bounds = array<i64: 2>, scalar_prefetch = 0 : i64, scratch_operands = 0 : i64, tpu.core_type = #tpu.core_type<tc>, window_params = [{transform_indices = @transform_0, window_bounds = array<i64: 16, 1024>}, {pipeline_mode = #tpu.pipeline_mode<synchronous>, transform_indices = @transform_1, window_bounds = array<i64: 1024, 128>}, {pipeline_mode = #tpu.pipeline_mode<synchronous>, transform_indices = @transform_2, window_bounds = array<i64: 16, 128>}, {pipeline_mode = #tpu.pipeline_mode<synchronous>, transform_indices = @transform_3, window_bounds = array<i64: 16, 128>}, {pipeline_mode = #tpu.pipeline_mode<synchronous>, transform_indices = @transform_4, window_bounds = array<i64: 16, 128>}, {transform_indices = @transform_5, window_bounds = array<i64: 1, 8, 128>}]} {
    %c0 = arith.constant 0 : index
    %c0_0 = arith.constant 0 : index
    %0 = vector.load %arg1[%c0, %c0_0] : memref<16x1024xbf16, #tpu.memory_space<vmem>>, vector<16x1024xbf16>
    %c0_1 = arith.constant 0 : index
    %c0_2 = arith.constant 0 : index
    %1 = vector.load %arg2[%c0_1, %c0_2] : memref<1024x128xbf16, #tpu.memory_space<vmem>>, vector<1024x128xbf16>
    %cst = arith.constant dense<0.000000e+00> : vector<16x128xf32>
    %2 = tpu.matmul %0, %1, %cst {dimension_numbers = #tpu.dot_dimension_numbers<[1], [0], [0], [1], [0, 0, 1, 1], [], []>} : vector<16x1024xbf16>, vector<1024x128xbf16>, vector<16x128xf32> -> vector<16x128xf32>
    %c0_3 = arith.constant 0 : index
    %c0_4 = arith.constant 0 : index
    %3 = vector.load %arg3[%c0_3, %c0_4] : memref<16x128xf32, #tpu.memory_space<vmem>>, vector<16x128xf32>
    %c0_5 = arith.constant 0 : index
    %c0_6 = arith.constant 0 : index
    %4 = vector.load %arg4[%c0_5, %c0_6] : memref<16x128xf32, #tpu.memory_space<vmem>>, vector<16x128xf32>
    %5 = vector.shape_cast %2 : vector<16x128xf32> to vector<1x16x128xf32>
    %cst_7 = arith.constant dense<0.000000e+00> : vector<1xf32>
    %6 = vector.multi_reduction <add>, %5, %cst_7 [1, 2] : vector<1x16x128xf32> to vector<1xf32>
    %7 = vector.shape_cast %6 : vector<1xf32> to vector<1x1x1xf32>
    %8 = vector.extract %7[0, 0, 0] : f32 from vector<1x1x1xf32>
    %9 = vector.broadcast %8 : f32 to vector<1x1xf32>
    %cst_8 = arith.constant 4.8828125E-4 : f32
    %10 = vector.broadcast %cst_8 : f32 to vector<1x1xf32>
    %11 = arith.mulf %9, %10 : vector<1x1xf32>
    %12 = vector.broadcast %11 : vector<1x1xf32> to vector<16x128xf32>
    %13 = arith.subf %2, %12 : vector<16x128xf32>
    %14 = arith.mulf %13, %13 : vector<16x128xf32>
    %15 = vector.shape_cast %14 : vector<16x128xf32> to vector<1x16x128xf32>
    %cst_9 = arith.constant dense<0.000000e+00> : vector<1xf32>
    %16 = vector.multi_reduction <add>, %15, %cst_9 [1, 2] : vector<1x16x128xf32> to vector<1xf32>
    %17 = vector.shape_cast %16 : vector<1xf32> to vector<1x1x1xf32>
    %18 = vector.extract %17[0, 0, 0] : f32 from vector<1x1x1xf32>
    %19 = vector.broadcast %18 : f32 to vector<1x1xf32>
    %cst_10 = arith.constant 4.8828125E-4 : f32
    %20 = vector.broadcast %cst_10 : f32 to vector<1x1xf32>
    %21 = arith.mulf %19, %20 : vector<1x1xf32>
    %cst_11 = arith.constant 9.99999974E-6 : f32
    %22 = vector.broadcast %cst_11 : f32 to vector<1x1xf32>
    %23 = arith.addf %21, %22 : vector<1x1xf32>
    %24 = math.rsqrt %23 : vector<1x1xf32>
    %25 = vector.broadcast %24 : vector<1x1xf32> to vector<16x128xf32>
    %26 = arith.mulf %13, %25 : vector<16x128xf32>
    %27 = arith.mulf %26, %3 : vector<16x128xf32>
    %28 = arith.addf %27, %4 : vector<16x128xf32>
    %cst_12 = arith.constant 0.000000e+00 : f32
    %29 = vector.broadcast %cst_12 : f32 to vector<16x128xf32>
    %30 = arith.cmpf oge, %28, %29 : vector<16x128xf32>
    %cst_13 = arith.constant 2.000000e-01 : f32
    %31 = vector.broadcast %cst_13 : f32 to vector<16x128xf32>
    %32 = arith.mulf %31, %28 : vector<16x128xf32>
    %33 = arith.select %30, %28, %32 : vector<16x128xi1>, vector<16x128xf32>
    %c0_14 = arith.constant 0 : index
    %c0_15 = arith.constant 0 : index
    %34 = vector.load %arg5[%c0_14, %c0_15] : memref<16x128xf32, #tpu.memory_space<vmem>>, vector<16x128xf32>
    %35 = arith.mulf %33, %34 : vector<16x128xf32>
    %36 = vector.shape_cast %35 : vector<16x128xf32> to vector<1x16x128xf32>
    %cst_16 = arith.constant dense<0.000000e+00> : vector<1xf32>
    %37 = vector.multi_reduction <add>, %36, %cst_16 [1, 2] : vector<1x16x128xf32> to vector<1xf32>
    %38 = vector.shape_cast %37 : vector<1xf32> to vector<1x1x1xf32>
    %39 = vector.extract %38[0, 0, 0] : f32 from vector<1x1x1xf32>
    %40 = vector.broadcast %39 : f32 to vector<1x1xf32>
    %cst_17 = arith.constant 0.000000e+00 : f32
    %41 = vector.broadcast %cst_17 : f32 to vector<1x8x128xf32>
    %42 = vector.shape_cast %40 : vector<1x1xf32> to vector<1x1x1xf32>
    %43 = vector.broadcast %42 : vector<1x1x1xf32> to vector<1x8x128xf32>
    %44 = arith.addf %41, %43 : vector<1x8x128xf32>
    %c0_18 = arith.constant 0 : index
    %c0_19 = arith.constant 0 : index
    %c0_20 = arith.constant 0 : index
    %45 = vector.load %arg6[%c0_18, %c0_19, %c0_20] : memref<1x8x128xf32, #tpu.memory_space<vmem>>, vector<1x8x128xf32>
    tpu.vector_store %arg6[%c0_18, %c0_19, %c0_20], %44 {strides = array<i32>} : memref<1x8x128xf32, #tpu.memory_space<vmem>>, vector<1x8x128xf32>,
    return
  }
  func.func @transform_0(%arg0: i32) -> (i32, i32) {
    %c0_i32 = arith.constant 0 : i32
    %c0_i32_0 = arith.constant 0 : i32
    return %arg0, %c0_i32 : i32, i32
  }
  func.func @transform_1(%arg0: i32) -> (i32, i32) {
    %c0_i32 = arith.constant 0 : i32
    %c0_i32_0 = arith.constant 0 : i32
    %c0_i32_1 = arith.constant 0 : i32
    return %c0_i32, %c0_i32_0 : i32, i32
  }
  func.func @transform_2(%arg0: i32) -> (i32, i32) {
    %c0_i32 = arith.constant 0 : i32
    %c0_i32_0 = arith.constant 0 : i32
    %c0_i32_1 = arith.constant 0 : i32
    return %c0_i32, %c0_i32_0 : i32, i32
  }
  func.func @transform_3(%arg0: i32) -> (i32, i32) {
    %c0_i32 = arith.constant 0 : i32
    %c0_i32_0 = arith.constant 0 : i32
    %c0_i32_1 = arith.constant 0 : i32
    return %c0_i32, %c0_i32_0 : i32, i32
  }
  func.func @transform_4(%arg0: i32) -> (i32, i32) {
    %c0_i32 = arith.constant 0 : i32
    %c0_i32_0 = arith.constant 0 : i32
    %c0_i32_1 = arith.constant 0 : i32
    return %c0_i32, %c0_i32_0 : i32, i32
  }
  func.func @transform_5(%arg0: i32) -> (i32, i32, i32) {
    %c0_i32 = arith.constant 0 : i32
    %c0_i32_0 = arith.constant 0 : i32
    %c0_i32_1 = arith.constant 0 : i32
    return %arg0, %c0_i32, %c0_i32_0 : i32, i32, i32
  }
}

</mosaic_0001>

<bundles_post_ra>
// kernel: discriminator_forward.4
= control target key start
LH: loop header
LB: loop body
LE: loop exit
PB: predicated region body
PF: predicated region fallthrough
CT: control target
= control target key end

     0   :  { %s3142_s9 = smov 0   ;;  %s3564_s0 = inlined_call_operand.vmem [shape: bf16[2048,48], index: 0, kind: input, shape index: {}]   ;;  %s3565_s1 = inlined_call_operand.vmem [shape: bf16[48,16], index: 1, kind: input, shape index: {}]   ;;  %s3566_s2 = inlined_call_operand.vmem [shape: bf16[2048,16], index: 2, kind: output, shape index: {}]  }
   0x1 LB: > { %s2439_s10 = sadd.s32 4294967295, %s3125_s9   ;;  %p2443_p0 = scmp.ge.s32.totalorder %s3125_s9, 1  ;;  %s3125_s9 = sphi %s3142_s9, %s12_s9  }
   0x2   : > { %p113_p1 = scmp.lt.s32.totalorder %s3125_s9, 3 }
   0x4   : > { %p114_p2 = pnand %p2443_p0, %p113_p1 }
   0x5   : > { %v3052_v0 = vld [vmem:[%s3565_s1] sm:$0xff] (!%p114_p2)   ;;  %s2444_s13 = sshll.u32 (!%p114_p2), %s2439_s10, 7  ;;  %v3053_v1 = vld [vmem:[%s3565_s1 + $0x8] sm:$0xff] (!%p114_p2)   ;;  %v3054_v2 = vld [vmem:[%s3565_s1 + $0x10] sm:$0xff] (!%p114_p2)   ;;  %vm620_vm0 = vcmask (!%p114_p2), 392192   ;;  %vm2254_vm3 = vcmask (!%p114_p2), 125952  }
   0x6   : > { %117 = sbr.rel (%p114_p2) target bundleno = 366 (0x16e), region = 28  ;;  %p136_p3 = scmp.lt.s32.totalorder (!%p114_p2), %s2444_s13, 255  ;;  %2904 = vmatprep.subr.bf16.mxu0 (!%p114_p2), %v3052_v0  ;;  %3038 = vmatprep.subr.bf16.mxu1 (!%p114_p2), %v3052_v0 }
   0x7   : > { %2905 = vmatpush3.bf16.msra.mxu0 (!%p114_p2), %v3052_v0  ;;  %3041 = vmatpush3.bf16.msra.mxu1 (!%p114_p2), %v3052_v0 }
   0x8   : > { %2906 = vmatprep.subr.bf16.mxu0 (!%p114_p2), %v3053_v1  ;;  %3039 = vmatprep.subr.bf16.mxu1 (!%p114_p2), %v3053_v1 }
   0xb   : > { %2907 = vmatpush3.bf16.msra.mxu0 (!%p114_p2), %v3053_v1  ;;  %3042 = vmatpush3.bf16.msra.mxu1 (!%p114_p2), %v3053_v1 }
   0xc   : > { %2908 = vmatprep.subr.bf16.mxu0 (!%p114_p2), %v3054_v2  ;;  %3040 = vmatprep.subr.bf16.mxu1 (!%p114_p2), %v3054_v2 }
   0xd   : > { %s3568_s13 = smov (!%p136_p3, %s2444_s13), 255 }
   0xe   : > { %s2445_s18 = sshll.u32 %s3568_s13, 2 }
   0xf   : > { %s3167_s21 = scalar_lea.vmem %s3564_s0, %s2445_s18  ;;  %2909 = vmatpush3.bf16.msra.mxu0 %v3054_v2  ;;  %3043 = vmatpush3.bf16.msra.mxu1 %v3054_v2  ;;  %s3302_s24 = scalar_lea.vmem %s3566_s2, %s2445_s18 }
  0x10   : > { %v3055_v3 = vld [vmem:[%s3167_s21] sm:$0xff]   ;;  %v3057_v5 = vld [vmem:[%s3167_s21 + $0x8] sm:$0xff]   ;;  %v3059_v7 = vld [vmem:[%s3167_s21 + $0x10] sm:$0xff]  }
  0x11   : > { %v3056_v4 = vld [vmem:[%s3167_s21 + $0x100] sm:$0xff]   ;;  %2910 = vmatprep.mubr.msk.bf16.mxu0 %vm620_vm0, %v3055_v3  ;;  %v3058_v6 = vld [vmem:[%s3167_s21 + $0x108] sm:$0xff]   ;;  %v3060_v8 = vld [vmem:[%s3167_s21 + $0x110] sm:$0xff]  }
  0x12   : > { %2974 = vmatprep.mubr.msk.bf16.mxu1 %vm620_vm0, %v3056_v4  ;;  %2911 = vmatmul.mubr.msk.bf16.vlgmr.msra.gmra.mrb[0].mxu0 %vm620_vm0, %v3057_v5  ;;  %v3061_v9 = vld [vmem:[%s3167_s21 + $0x18] sm:$0xff]   ;;  %v3063_v11 = vld [vmem:[%s3167_s21 + $0x20] sm:$0xff]   ;;  %v3065_v13 = vld [vmem:[%s3167_s21 + $0x28] sm:$0xff]  }
  0x13   : > { %2975 = vmatmul.mubr.msk.bf16.vlgmr.msra.gmra.mrb[0].mxu1 %vm620_vm0, %v3058_v6  ;;  %2914 = vmatprep.mubr.msk.bf16.mxu0 %vm620_vm0, %v3059_v7  ;;  %v3062_v10 = vld [vmem:[%s3167_s21 + $0x118] sm:$0xff]   ;;  %v3064_v12 = vld [vmem:[%s3167_s21 + $0x120] sm:$0xff]   ;;  %v3066_v14 = vld [vmem:[%s3167_s21 + $0x128] sm:$0xff]  }
  0x14   : > { %2978 = vmatprep.mubr.msk.bf16.mxu1 %vm620_vm0, %v3060_v8  ;;  %v3067_v15 = vld [vmem:[%s3167_s21 + $0x30] sm:$0xff]   ;;  %v3069_v17 = vld [vmem:[%s3167_s21 + $0x38] sm:$0xff]   ;;  %v3071_v19 = vld [vmem:[%s3167_s21 + $0x40] sm:$0xff]  }
  0x15   : > { %v3068_v16 = vld [vmem:[%s3167_s21 + $0x130] sm:$0xff]   ;;  %v3070_v18 = vld [vmem:[%s3167_s21 + $0x138] sm:$0xff]   ;;  %v3072_v20 = vld [vmem:[%s3167_s21 + $0x140] sm:$0xff]  }
  0x16   : > { %v3073_v21 = vld [vmem:[%s3167_s21 + $0x48] sm:$0xff]   ;;  %v3075_v23 = vld [vmem:[%s3167_s21 + $0x50] sm:$0xff]   ;;  %v3077_v25 = vld [vmem:[%s3167_s21 + $0x58] sm:$0xff]  }
  0x17   : > { %v3074_v22 = vld [vmem:[%s3167_s21 + $0x148] sm:$0xff]   ;;  %v3076_v24 = vld [vmem:[%s3167_s21 + $0x150] sm:$0xff]   ;;  %v3078_v26 = vld [vmem:[%s3167_s21 + $0x158] sm:$0xff]  }
  0x18   : > { %v3079_v27 = vld [vmem:[%s3167_s21 + $0x60] sm:$0xff]   ;;  %v3081_v29 = vld [vmem:[%s3167_s21 + $0x68] sm:$0xff]   ;;  %v3083_v31 = vld [vmem:[%s3167_s21 + $0x70] sm:$0xff]  }
  0x19   : > { %v3080_v28 = vld [vmem:[%s3167_s21 + $0x160] sm:$0xff]   ;;  %v3082_v30 = vld [vmem:[%s3167_s21 + $0x168] sm:$0xff]   ;;  %v3084_v32 = vld [vmem:[%s3167_s21 + $0x170] sm:$0xff]  }
  0x1a   : > { %2915 = vmatmul.mubr.msk.bf16.gmra.mrb[4].mxu0 %vm620_vm0, %v3061_v9  ;;  %v3085_v33 = vld [vmem:[%s3167_s21 + $0x78] sm:$0xff]   ;;  %v3087_v35 = vld [vmem:[%s3167_s21 + $0x80] sm:$0xff]   ;;  %v3089_v37 = vld [vmem:[%s3167_s21 + $0x88] sm:$0xff]  }
  0x1b   : > { %2979 = vmatmul.mubr.msk.bf16.gmra.mrb[4].mxu1 %vm620_vm0, %v3062_v10  ;;  %2918 = vmatprep.mubr.msk.bf16.mxu0 %vm620_vm0, %v3063_v11  ;;  %v3086_v34 = vld [vmem:[%s3167_s21 + $0x178] sm:$0xff]   ;;  %v3088_v36 = vld [vmem:[%s3167_s21 + $0x180] sm:$0xff]   ;;  %v3090_v38 = vld [vmem:[%s3167_s21 + $0x188] sm:$0xff]  }
  0x1c   : > { %2982 = vmatprep.mubr.msk.bf16.mxu1 %vm620_vm0, %v3064_v12  ;;  %v3091_v39 = vld [vmem:[%s3167_s21 + $0x90] sm:$0xff]   ;;  %v3093_v41 = vld [vmem:[%s3167_s21 + $0x98] sm:$0xff]   ;;  %v3095_v43 = vld [vmem:[%s3167_s21 + $0xa0] sm:$0xff]  }
  0x1d   : > { %v3092_v40 = vld [vmem:[%s3167_s21 + $0x190] sm:$0xff]   ;;  %v3094_v42 = vld [vmem:[%s3167_s21 + $0x198] sm:$0xff]   ;;  %v3096_v44 = vld [vmem:[%s3167_s21 + $0x1a0] sm:$0xff]  }
  0x1e   : > { %v3097_v45 = vld [vmem:[%s3167_s21 + $0xa8] sm:$0xff]   ;;  %v3099_v47 = vld [vmem:[%s3167_s21 + $0xb0] sm:$0xff]   ;;  %v3101_v49 = vld [vmem:[%s3167_s21 + $0xb8] sm:$0xff]  }
  0x1f   : > { %v3098_v46 = vld [vmem:[%s3167_s21 + $0x1a8] sm:$0xff]   ;;  %v3100_v48 = vld [vmem:[%s3167_s21 + $0x1b0] sm:$0xff]   ;;  %v3102_v50 = vld [vmem:[%s3167_s21 + $0x1b8] sm:$0xff]  }
  0x20   : > { %v3103_v51 = vld [vmem:[%s3167_s21 + $0xc0] sm:$0xff]   ;;  %v3105_v53 = vld [vmem:[%s3167_s21 + $0xc8] sm:$0xff]   ;;  %v3107_v55 = vld [vmem:[%s3167_s21 + $0xd0] sm:$0xff]  }
  0x21   : > { %v3104_v52 = vld [vmem:[%s3167_s21 + $0x1c0] sm:$0xff]   ;;  %v3106_v54 = vld [vmem:[%s3167_s21 + $0x1c8] sm:$0xff]   ;;  %v3108_v56 = vld [vmem:[%s3167_s21 + $0x1d0] sm:$0xff]  }
  0x22   : > { %2919 = vmatmul.mubr.msk.bf16.gmra.mrb[8].mxu0 %vm620_vm0, %v3065_v13  ;;  %v3109_v57 = vld [vmem:[%s3167_s21 + $0xd8] sm:$0xff]   ;;  %v3111_v59 = vld [vmem:[%s3167_s21 + $0xe0] sm:$0xff]   ;;  %v3113_v61 = vld [vmem:[%s3167_s21 + $0xe8] sm:$0xff]  }
  0x23   : > { %2983 = vmatmul.mubr.msk.bf16.gmra.mrb[8].mxu1 %vm620_vm0, %v3066_v14  ;;  %2922 = vmatprep.mubr.msk.bf16.mxu0 %vm620_vm0, %v3067_v15  ;;  %v3110_v58 = vld [vmem:[%s3167_s21 + $0x1d8] sm:$0xff]   ;;  %v3112_v60 = vld [vmem:[%s3167_s21 + $0x1e0] sm:$0xff]   ;;  %v3114_v62 = vld [vmem:[%s3167_s21 + $0x1e8] sm:$0xff]  }
  0x24   : > { %2986 = vmatprep.mubr.msk.bf16.mxu1 %vm620_vm0, %v3068_v16  ;;  %v3115_v63 = vld [vmem:[%s3167_s21 + $0xf0] sm:$0xff]   ;;  %v3117_v1 = vld [vmem:[%s3167_s21 + $0xf8] sm:$0xff]  }
  0x25   : > { %v3116_v0 = vld [vmem:[%s3167_s21 + $0x1f0] sm:$0xff]   ;;  %v3118_v2 = vld [vmem:[%s3167_s21 + $0x1f8] sm:$0xff]  }
  0x2a   : > { %2923 = vmatmul.mubr.msk.bf16.gmra.mrb[12].mxu0 %vm620_vm0, %v3069_v17 }
  0x2b   : > { %2987 = vmatmul.mubr.msk.bf16.gmra.mrb[12].mxu1 %vm620_vm0, %v3070_v18  ;;  %2926 = vmatprep.mubr.msk.bf16.mxu0 %vm620_vm0, %v3071_v19 }
  0x2c   : > { %2990 = vmatprep.mubr.msk.bf16.mxu1 %vm620_vm0, %v3072_v20 }
  0x32   : > { %2927 = vmatmul.mubr.msk.bf16.gmra.mrb[16].mxu0 %vm620_vm0, %v3073_v21 }
  0x33   : > { %2991 = vmatmul.mubr.msk.bf16.gmra.mrb[16].mxu1 %vm620_vm0, %v3074_v22  ;;  %2930 = vmatprep.mubr.msk.bf16.mxu0 %vm620_vm0, %v3075_v23 }
  0x34   : > { %2994 = vmatprep.mubr.msk.bf16.mxu1 %vm620_vm0, %v3076_v24 }
  0x3a   : > { %2931 = vmatmul.mubr.msk.bf16.gmra.mrb[20].mxu0 %vm620_vm0, %v3077_v25 }
  0x3b   : > { %2995 = vmatmul.mubr.msk.bf16.gmra.mrb[20].mxu1 %vm620_vm0, %v3078_v26  ;;  %2934 = vmatprep.mubr.msk.bf16.mxu0 %vm620_vm0, %v3079_v27 }
  0x3c   : > { %2998 = vmatprep.mubr.msk.bf16.mxu1 %vm620_vm0, %v3080_v28 }
  0x42   : > { %2935 = vmatmul.mubr.msk.bf16.gmra.mrb[24].mxu0 %vm620_vm0, %v3081_v29 }
  0x43   : > { %2999 = vmatmul.mubr.msk.bf16.gmra.mrb[24].mxu1 %vm620_vm0, %v3082_v30  ;;  %2938 = vmatprep.mubr.msk.bf16.mxu0 %vm620_vm0, %v3083_v31 }
  0x44   : > { %3002 = vmatprep.mubr.msk.bf16.mxu1 %vm620_vm0, %v3084_v32 }
  0x4a   : > { %2939 = vmatmul.mubr.msk.bf16.gmra.mrb[28].mxu0 %vm620_vm0, %v3085_v33 }
  0x4b   : > { %3003 = vmatmul.mubr.msk.bf16.gmra.mrb[28].mxu1 %vm620_vm0, %v3086_v34  ;;  %2942 = vmatprep.mubr.msk.bf16.mxu0 %vm620_vm0, %v3087_v35 }
  0x4c   : > { %3006 = vmatprep.mubr.msk.bf16.mxu1 %vm620_vm0, %v3088_v36 }
  0x52   : > { %2943 = vmatmul.mubr.msk.bf16.gmra.mrb[32].mxu0 %vm620_vm0, %v3089_v37 }
  0x53   : > { %3007 = vmatmul.mubr.msk.bf16.gmra.mrb[32].mxu1 %vm620_vm0, %v3090_v38  ;;  %2946 = vmatprep.mubr.msk.bf16.mxu0 %vm620_vm0, %v3091_v39 }
  0x54   : > { %3010 = vmatprep.mubr.msk.bf16.mxu1 %vm620_vm0, %v3092_v40 }
  0x5a   : > { %2947 = vmatmul.mubr.msk.bf16.gmra.mrb[36].mxu0 %vm620_vm0, %v3093_v41 }
  0x5b   : > { %3011 = vmatmul.mubr.msk.bf16.gmra.mrb[36].mxu1 %vm620_vm0, %v3094_v42  ;;  %2950 = vmatprep.mubr.msk.bf16.mxu0 %vm620_vm0, %v3095_v43 }
  0x5c   : > { %3014 = vmatprep.mubr.msk.bf16.mxu1 %vm620_vm0, %v3096_v44 }
  0x62   : > { %2951 = vmatmul.mubr.msk.bf16.gmra.mrb[40].mxu0 %vm620_vm0, %v3097_v45 }
  0x63   : > { %3015 = vmatmul.mubr.msk.bf16.gmra.mrb[40].mxu1 %vm620_vm0, %v3098_v46  ;;  %2954 = vmatprep.mubr.msk.bf16.mxu0 %vm620_vm0, %v3099_v47 }
  0x64   : > { %3018 = vmatprep.mubr.msk.bf16.mxu1 %vm620_vm0, %v3100_v48 }
  0x6a   : > { %2955 = vmatmul.mubr.msk.bf16.gmra.mrb[44].mxu0 %vm620_vm0, %v3101_v49 }
  0x6b   : > { %3019 = vmatmul.mubr.msk.bf16.gmra.mrb[44].mxu1 %vm620_vm0, %v3102_v50  ;;  %2958 = vmatprep.mubr.msk.bf16.mxu0 %vm620_vm0, %v3103_v51 }
  0x6c   : > { %3022 = vmatprep.mubr.msk.bf16.mxu1 %vm620_vm0, %v3104_v52 }
  0x72   : > { %2959 = vmatmul.mubr.msk.bf16.gmra.mrb[48].mxu0 %vm620_vm0, %v3105_v53 }
  0x73   : > { %3023 = vmatmul.mubr.msk.bf16.gmra.mrb[48].mxu1 %vm620_vm0, %v3106_v54  ;;  %2962 = vmatprep.mubr.msk.bf16.mxu0 %vm620_vm0, %v3107_v55 }
  0x74   : > { %3026 = vmatprep.mubr.msk.bf16.mxu1 %vm620_vm0, %v3108_v56 }
  0x7a   : > { %2963 = vmatmul.mubr.msk.bf16.gmra.mrb[52].mxu0 %vm620_vm0, %v3109_v57 }
  0x7b   : > { %3027 = vmatmul.mubr.msk.bf16.gmra.mrb[52].mxu1 %vm620_vm0, %v3110_v58  ;;  %2966 = vmatprep.mubr.msk.bf16.mxu0 %vm620_vm0, %v3111_v59 }
  0x7c   : > { %3030 = vmatprep.mubr.msk.bf16.mxu1 %vm620_vm0, %v3112_v60 }
  0x82   : > { %2967 = vmatmul.mubr.msk.bf16.gmra.mrb[56].mxu0 %vm620_vm0, %v3113_v61 }
  0x83   : > { %3031 = vmatmul.mubr.msk.bf16.gmra.mrb[56].mxu1 %vm620_vm0, %v3114_v62  ;;  %2970 = vmatprep.mubr.msk.bf16.mxu0 %vm620_vm0, %v3115_v63 }
  0x84   : > { %3034 = vmatprep.mubr.msk.bf16.mxu1 %vm620_vm0, %v3116_v0 }
  0x8a   : > { %2971 = vmatmul.mubr.msk.bf16.gmra.mrb[60].mxu0 %vm620_vm0, %v3117_v1 }
  0x8b   : > { %3035 = vmatmul.mubr.msk.bf16.gmra.mrb[60].mxu1 %vm620_vm0, %v3118_v2 }
  0xe5   : > { %v2912_v3 = vpop.f32.mrb[0].mxu0 }
  0xe6   : > { %v2976_v4 = vpop.f32.mrb[0].mxu1  ;;  %vm1360_vm1 = vcmp.ge.f32.partialorder %v2912_v3, 0.0  ;;  %v1488_v5 = vmul.f32 0.2, %v2912_v3  ;;  %v847_v7 = vpop.f32.mrb[1].mxu0 }
  0xe7   : > { %vm1424_vm2 = vcmp.ge.f32.partialorder %v2976_v4, 0.0  ;;  %v1552_v6 = vmul.f32 0.2, %v2976_v4  ;;  %v1103_v8 = vpop.f32.mrb[1].mxu1  ;;  %vm1358_vm4 = vcmp.ge.f32.partialorder %v847_v7, 0.0  ;;  %v2913_v12 = vpop.f32.mrb[2].mxu0 }
  0xe8   : > { %v1616_v9 = vsel %vm1360_vm1, %v2912_v3, %v1488_v5  ;;  %v1486_v11 = vmul.f32 0.2, %v847_v7  ;;  %v2977_v13 = vpop.f32.mrb[2].mxu1  ;;  %vm1422_vm5 = vcmp.ge.f32.partialorder %v1103_v8, 0.0  ;;  %v1550_v16 = vmul.f32 0.2, %v1103_v8 }
  0xe9   : > { %v1680_v10 = vsel %vm1424_vm2, %v2976_v4, %v1552_v6  ;;  %v2711_v14 = vpack.c.bf16 %v1616_v9, %v1616_v9  ;;  %v850_v17 = vpop.f32.mrb[3].mxu0  ;;  %v1106_v18 = vpop.f32.mrb[3].mxu1  ;;  %vm1361_vm6 = vcmp.ge.f32.partialorder %v2913_v12, 0.0  ;;  %v1489_v20 = vmul.f32 0.2, %v2913_v12 }
  0xea   : > { %v2775_v15 = vpack.c.bf16 %v1680_v10, %v1680_v10  ;;  %v1614_v19 = vsel %vm1358_vm4, %v847_v7, %v1486_v11  ;;  %vm1425_vm7 = vcmp.ge.f32.partialorder %v2977_v13, 0.0  ;;  %v1678_v22 = vsel %vm1422_vm5, %v1103_v8, %v1550_v16 }
  0xeb   : > { %2257 = vst.msk [vmem:[%s3302_s24 + $0x8] sm:$0xf] %vm2254_vm3, %v2711_v14  ;;  %v2709_v21 = vpack.c.bf16 %v1614_v19, %v1614_v19  ;;  %v1553_v23 = vmul.f32 0.2, %v2977_v13  ;;  %vm1359_vm8 = vcmp.ge.f32.partialorder %v850_v17, 0.0  ;;  %v2773_v24 = vpack.c.bf16 %v1678_v22, %v1678_v22 }
  0xec   : > { %2321 = vst.msk [vmem:[%s3302_s24 + $0x108] sm:$0xf] %vm2254_vm3, %v2775_v15  ;;  %v1617_v25 = vsel %vm1361_vm6, %v2913_v12, %v1489_v20  ;;  %v1487_v26 = vmul.f32 0.2, %v850_v17  ;;  %vm1423_vm9 = vcmp.ge.f32.partialorder %v1106_v18, 0.0 }
  0xed   : > { %2255 = vst.msk [vmem:[%s3302_s24] sm:$0xf] %vm2254_vm3, %v2709_v21  ;;  %v2712_v27 = vpack.c.bf16 %v1617_v25, %v1617_v25  ;;  %v1681_v28 = vsel %vm1425_vm7, %v2977_v13, %v1553_v23  ;;  %v1551_v29 = vmul.f32 0.2, %v1106_v18  ;;  %v2916_v30 = vpop.f32.mrb[4].mxu0 }
  0xee   : > { %v2980_v31 = vpop.f32.mrb[4].mxu1  ;;  %2319 = vst.msk [vmem:[%s3302_s24 + $0x100] sm:$0xf] %vm2254_vm3, %v2773_v24  ;;  %v2776_v32 = vpack.c.bf16 %v1681_v28, %v1681_v28  ;;  %v1615_v33 = vsel %vm1359_vm8, %v850_v17, %v1487_v26  ;;  %vm1364_vm10 = vcmp.ge.f32.partialorder %v2916_v30, 0.0  ;;  %v1492_v34 = vmul.f32 0.2, %v2916_v30 }
  0xef   : > { %v863_v35 = vpop.f32.mrb[5].mxu0  ;;  %v1119_v36 = vpop.f32.mrb[5].mxu1  ;;  %2258 = vst.msk [vmem:[%s3302_s24 + $0xc] sm:$0xf] %vm2254_vm3, %v2712_v27  ;;  %v2710_v37 = vpack.c.bf16 %v1615_v33, %v1615_v33  ;;  %v1679_v38 = vsel %vm1423_vm9, %v1106_v18, %v1551_v29  ;;  %vm1428_vm11 = vcmp.ge.f32.partialorder %v2980_v31, 0.0 }
  0xf0   : > { %v1556_v39 = vmul.f32 0.2, %v2980_v31  ;;  %v2917_v40 = vpop.f32.mrb[6].mxu0  ;;  %v2981_v41 = vpop.f32.mrb[6].mxu1  ;;  %2322 = vst.msk [vmem:[%s3302_s24 + $0x10c] sm:$0xf] %vm2254_vm3, %v2776_v32  ;;  %v2774_v42 = vpack.c.bf16 %v1679_v38, %v1679_v38  ;;  %v1620_v43 = vsel %vm1364_vm10, %v2916_v30, %v1492_v34 }
  0xf1   : > { %vm1362_vm12 = vcmp.ge.f32.partialorder %v863_v35, 0.0  ;;  %v1490_v44 = vmul.f32 0.2, %v863_v35  ;;  %v866_v45 = vpop.f32.mrb[7].mxu0  ;;  %v1122_v46 = vpop.f32.mrb[7].mxu1  ;;  %v2715_v47 = vpack.c.bf16 %v1620_v43, %v1620_v43  ;;  %vm1426_vm13 = vcmp.ge.f32.partialorder %v1119_v36, 0.0 }
  0xf2   : > { %2256 = vst.msk [vmem:[%s3302_s24 + $0x4] sm:$0xf] %vm2254_vm3, %v2710_v37  ;;  %v1684_v48 = vsel %vm1428_vm11, %v2980_v31, %v1556_v39  ;;  %v1554_v49 = vmul.f32 0.2, %v1119_v36  ;;  %2320 = vst.msk [vmem:[%s3302_s24 + $0x104] sm:$0xf] %vm2254_vm3, %v2774_v42 }
  0xf3   : > { %v2779_v50 = vpack.c.bf16 %v1684_v48, %v1684_v48  ;;  %v1618_v51 = vsel %vm1362_vm12, %v863_v35, %v1490_v44  ;;  %vm1365_vm14 = vcmp.ge.f32.partialorder %v2917_v40, 0.0  ;;  %v1493_v52 = vmul.f32 0.2, %v2917_v40  ;;  %2261 = vst.msk [vmem:[%s3302_s24 + $0x18] sm:$0xf] %vm2254_vm3, %v2715_v47 }
  0xf4   : > { %v2713_v53 = vpack.c.bf16 %v1618_v51, %v1618_v51  ;;  %v1682_v54 = vsel %vm1426_vm13, %v1119_v36, %v1554_v49  ;;  %vm1429_vm15 = vcmp.ge.f32.partialorder %v2981_v41, 0.0  ;;  %v1557_v55 = vmul.f32 0.2, %v2981_v41 }
  0xf5   : > { %2325 = vst.msk [vmem:[%s3302_s24 + $0x118] sm:$0xf] %vm2254_vm3, %v2779_v50  ;;  %v2777_v56 = vpack.c.bf16 %v1682_v54, %v1682_v54  ;;  %v1621_v57 = vsel %vm1365_vm14, %v2917_v40, %v1493_v52  ;;  %vm1363_vm0 = vcmp.ge.f32.partialorder %v866_v45, 0.0  ;;  %v1491_v58 = vmul.f32 0.2, %v866_v45  ;;  %v2920_v62 = vpop.f32.mrb[8].mxu0 }
  0xf6   : > { %2259 = vst.msk [vmem:[%s3302_s24 + $0x10] sm:$0xf] %vm2254_vm3, %v2713_v53  ;;  %v2716_v59 = vpack.c.bf16 %v1621_v57, %v1621_v57  ;;  %v1685_v60 = vsel %vm1429_vm15, %v2981_v41, %v1557_v55  ;;  %vm1427_vm1 = vcmp.ge.f32.partialorder %v1122_v46, 0.0  ;;  %v1555_v61 = vmul.f32 0.2, %v1122_v46  ;;  %v2984_v63 = vpop.f32.mrb[8].mxu1 }
  0xf7   : > { %2323 = vst.msk [vmem:[%s3302_s24 + $0x110] sm:$0xf] %vm2254_vm3, %v2777_v56  ;;  %v2780_v0 = vpack.c.bf16 %v1685_v60, %v1685_v60  ;;  %v1619_v1 = vsel %vm1363_vm0, %v866_v45, %v1491_v58  ;;  %vm1368_vm2 = vcmp.ge.f32.partialorder %v2920_v62, 0.0  ;;  %v1496_v2 = vmul.f32 0.2, %v2920_v62  ;;  %v879_v3 = vpop.f32.mrb[9].mxu0 }
  0xf8   : > { %v1135_v4 = vpop.f32.mrb[9].mxu1  ;;  %2262 = vst.msk [vmem:[%s3302_s24 + $0x1c] sm:$0xf] %vm2254_vm3, %v2716_v59  ;;  %v2714_v5 = vpack.c.bf16 %v1619_v1, %v1619_v1  ;;  %v1683_v6 = vsel %vm1427_vm1, %v1122_v46, %v1555_v61  ;;  %vm1432_vm4 = vcmp.ge.f32.partialorder %v2984_v63, 0.0  ;;  %v1560_v7 = vmul.f32 0.2, %v2984_v63 }
  0xf9   : > { %v2921_v8 = vpop.f32.mrb[10].mxu0  ;;  %v2985_v9 = vpop.f32.mrb[10].mxu1  ;;  %2326 = vst.msk [vmem:[%s3302_s24 + $0x11c] sm:$0xf] %vm2254_vm3, %v2780_v0  ;;  %v2778_v10 = vpack.c.bf16 %v1683_v6, %v1683_v6  ;;  %v1624_v11 = vsel %vm1368_vm2, %v2920_v62, %v1496_v2  ;;  %vm1366_vm5 = vcmp.ge.f32.partialorder %v879_v3, 0.0  ;;  %vm1430_vm6 = vcmp.ge.f32.partialorder %v1135_v4, 0.0 }
  0xfa   : > { %v1494_v12 = vmul.f32 0.2, %v879_v3  ;;  %v882_v13 = vpop.f32.mrb[11].mxu0  ;;  %v1138_v14 = vpop.f32.mrb[11].mxu1  ;;  %2260 = vst.msk [vmem:[%s3302_s24 + $0x14] sm:$0xf] %vm2254_vm3, %v2714_v5  ;;  %v2719_v15 = vpack.c.bf16 %v1624_v11, %v1624_v11  ;;  %v1688_v16 = vsel %vm1432_vm4, %v2984_v63, %v1560_v7 }
  0xfb   : > { %v1558_v17 = vmul.f32 0.2, %v1135_v4  ;;  %2324 = vst.msk [vmem:[%s3302_s24 + $0x114] sm:$0xf] %vm2254_vm3, %v2778_v10  ;;  %v2783_v18 = vpack.c.bf16 %v1688_v16, %v1688_v16  ;;  %vm1369_vm7 = vcmp.ge.f32.partialorder %v2921_v8, 0.0  ;;  %vm1433_vm8 = vcmp.ge.f32.partialorder %v2985_v9, 0.0 }
  0xfc   : > { %v1622_v19 = vsel %vm1366_vm5, %v879_v3, %v1494_v12  ;;  %v1497_v20 = vmul.f32 0.2, %v2921_v8  ;;  %2265 = vst.msk [vmem:[%s3302_s24 + $0x28] sm:$0xf] %vm2254_vm3, %v2719_v15  ;;  %v1561_v23 = vmul.f32 0.2, %v2985_v9 }
  0xfd   : > { %v2717_v21 = vpack.c.bf16 %v1622_v19, %v1622_v19  ;;  %v1686_v22 = vsel %vm1430_vm6, %v1135_v4, %v1558_v17  ;;  %2329 = vst.msk [vmem:[%s3302_s24 + $0x128] sm:$0xf] %vm2254_vm3, %v2783_v18  ;;  %vm1367_vm9 = vcmp.ge.f32.partialorder %v882_v13, 0.0  ;;  %v1495_v26 = vmul.f32 0.2, %v882_v13  ;;  %v2924_v30 = vpop.f32.mrb[12].mxu0 }
  0xfe   : > { %v2781_v24 = vpack.c.bf16 %v1686_v22, %v1686_v22  ;;  %v1625_v25 = vsel %vm1369_vm7, %v2921_v8, %v1497_v20  ;;  %v1689_v28 = vsel %vm1433_vm8, %v2985_v9, %v1561_v23  ;;  %vm1431_vm10 = vcmp.ge.f32.partialorder %v1138_v14, 0.0  ;;  %v2988_v31 = vpop.f32.mrb[12].mxu1  ;;  %v895_v35 = vpop.f32.mrb[13].mxu0 }
  0xff   : > { %2263 = vst.msk [vmem:[%s3302_s24 + $0x20] sm:$0xf] %vm2254_vm3, %v2717_v21  ;;  %v2720_v27 = vpack.c.bf16 %v1625_v25, %v1625_v25  ;;  %v1559_v29 = vmul.f32 0.2, %v1138_v14  ;;  %v2784_v32 = vpack.c.bf16 %v1689_v28, %v1689_v28  ;;  %v1623_v33 = vsel %vm1367_vm9, %v882_v13, %v1495_v26  ;;  %v1151_v36 = vpop.f32.mrb[13].mxu1  ;;  %v2925_v40 = vpop.f32.mrb[14].mxu0 }
 0x100   : > { %2327 = vst.msk [vmem:[%s3302_s24 + $0x120] sm:$0xf] %vm2254_vm3, %v2781_v24  ;;  %vm1372_vm11 = vcmp.ge.f32.partialorder %v2924_v30, 0.0  ;;  %v1500_v34 = vmul.f32 0.2, %v2924_v30  ;;  %v2718_v37 = vpack.c.bf16 %v1623_v33, %v1623_v33  ;;  %vm1436_vm12 = vcmp.ge.f32.partialorder %v2988_v31, 0.0 }
 0x101   : > { %2266 = vst.msk [vmem:[%s3302_s24 + $0x2c] sm:$0xf] %vm2254_vm3, %v2720_v27  ;;  %v1687_v38 = vsel %vm1431_vm10, %v1138_v14, %v1559_v29  ;;  %v1564_v39 = vmul.f32 0.2, %v2988_v31  ;;  %v2989_v41 = vpop.f32.mrb[14].mxu1  ;;  %vm1370_vm13 = vcmp.ge.f32.partialorder %v895_v35, 0.0 }
 0x102   : > { %2330 = vst.msk [vmem:[%s3302_s24 + $0x12c] sm:$0xf] %vm2254_vm3, %v2784_v32  ;;  %v2782_v42 = vpack.c.bf16 %v1687_v38, %v1687_v38  ;;  %v1628_v43 = vsel %vm1372_vm11, %v2924_v30, %v1500_v34  ;;  %v1498_v44 = vmul.f32 0.2, %v895_v35  ;;  %v898_v45 = vpop.f32.mrb[15].mxu0  ;;  %v1154_v46 = vpop.f32.mrb[15].mxu1 }
 0x103   : > { %2264 = vst.msk [vmem:[%s3302_s24 + $0x24] sm:$0xf] %vm2254_vm3, %v2718_v37  ;;  %v2723_v47 = vpack.c.bf16 %v1628_v43, %v1628_v43  ;;  %v1692_v48 = vsel %vm1436_vm12, %v2988_v31, %v1564_v39  ;;  %vm1434_vm14 = vcmp.ge.f32.partialorder %v1151_v36, 0.0  ;;  %v1562_v49 = vmul.f32 0.2, %v1151_v36 }
 0x104   : > { %2328 = vst.msk [vmem:[%s3302_s24 + $0x124] sm:$0xf] %vm2254_vm3, %v2782_v42  ;;  %v2787_v50 = vpack.c.bf16 %v1692_v48, %v1692_v48  ;;  %v1626_v51 = vsel %vm1370_vm13, %v895_v35, %v1498_v44  ;;  %vm1373_vm15 = vcmp.ge.f32.partialorder %v2925_v40, 0.0  ;;  %v1501_v52 = vmul.f32 0.2, %v2925_v40 }
 0x105   : > { %2269 = vst.msk [vmem:[%s3302_s24 + $0x38] sm:$0xf] %vm2254_vm3, %v2723_v47  ;;  %v2721_v53 = vpack.c.bf16 %v1626_v51, %v1626_v51  ;;  %v1690_v54 = vsel %vm1434_vm14, %v1151_v36, %v1562_v49  ;;  %vm1437_vm0 = vcmp.ge.f32.partialorder %v2989_v41, 0.0  ;;  %v1565_v55 = vmul.f32 0.2, %v2989_v41  ;;  %v2928_v62 = vpop.f32.mrb[16].mxu0 }
 0x106   : > { %2333 = vst.msk [vmem:[%s3302_s24 + $0x138] sm:$0xf] %vm2254_vm3, %v2787_v50  ;;  %v2785_v56 = vpack.c.bf16 %v1690_v54, %v1690_v54  ;;  %v1629_v57 = vsel %vm1373_vm15, %v2925_v40, %v1501_v52  ;;  %vm1371_vm1 = vcmp.ge.f32.partialorder %v898_v45, 0.0  ;;  %v1499_v58 = vmul.f32 0.2, %v898_v45  ;;  %v2992_v63 = vpop.f32.mrb[16].mxu1 }
 0x107   : > { %2267 = vst.msk [vmem:[%s3302_s24 + $0x30] sm:$0xf] %vm2254_vm3, %v2721_v53  ;;  %v2724_v59 = vpack.c.bf16 %v1629_v57, %v1629_v57  ;;  %v1693_v60 = vsel %vm1437_vm0, %v2989_v41, %v1565_v55  ;;  %vm1435_vm2 = vcmp.ge.f32.partialorder %v1154_v46, 0.0  ;;  %v1563_v61 = vmul.f32 0.2, %v1154_v46  ;;  %v911_v3 = vpop.f32.mrb[17].mxu0 }
 0x108   : > { %2331 = vst.msk [vmem:[%s3302_s24 + $0x130] sm:$0xf] %vm2254_vm3, %v2785_v56  ;;  %v2788_v0 = vpack.c.bf16 %v1693_v60, %v1693_v60  ;;  %v1627_v1 = vsel %vm1371_vm1, %v898_v45, %v1499_v58  ;;  %vm1376_vm4 = vcmp.ge.f32.partialorder %v2928_v62, 0.0  ;;  %v1504_v2 = vmul.f32 0.2, %v2928_v62  ;;  %v1167_v4 = vpop.f32.mrb[17].mxu1 }
 0x109   : > { %2270 = vst.msk [vmem:[%s3302_s24 + $0x3c] sm:$0xf] %vm2254_vm3, %v2724_v59  ;;  %v2722_v5 = vpack.c.bf16 %v1627_v1, %v1627_v1  ;;  %v1691_v6 = vsel %vm1435_vm2, %v1154_v46, %v1563_v61  ;;  %vm1440_vm5 = vcmp.ge.f32.partialorder %v2992_v63, 0.0  ;;  %v1568_v7 = vmul.f32 0.2, %v2992_v63  ;;  %v2929_v8 = vpop.f32.mrb[18].mxu0 }
 0x10a   : > { %v2993_v9 = vpop.f32.mrb[18].mxu1  ;;  %2334 = vst.msk [vmem:[%s3302_s24 + $0x13c] sm:$0xf] %vm2254_vm3, %v2788_v0  ;;  %v2786_v10 = vpack.c.bf16 %v1691_v6, %v1691_v6  ;;  %v1632_v11 = vsel %vm1376_vm4, %v2928_v62, %v1504_v2  ;;  %vm1374_vm6 = vcmp.ge.f32.partialorder %v911_v3, 0.0  ;;  %v1502_v12 = vmul.f32 0.2, %v911_v3 }
 0x10b   : > { %v914_v13 = vpop.f32.mrb[19].mxu0  ;;  %v1170_v14 = vpop.f32.mrb[19].mxu1  ;;  %2268 = vst.msk [vmem:[%s3302_s24 + $0x34] sm:$0xf] %vm2254_vm3, %v2722_v5  ;;  %v2727_v15 = vpack.c.bf16 %v1632_v11, %v1632_v11  ;;  %v1696_v16 = vsel %vm1440_vm5, %v2992_v63, %v1568_v7  ;;  %vm1438_vm7 = vcmp.ge.f32.partialorder %v1167_v4, 0.0  ;;  %vm1377_vm8 = vcmp.ge.f32.partialorder %v2929_v8, 0.0 }
 0x10c   : > { %v1566_v17 = vmul.f32 0.2, %v1167_v4  ;;  %2332 = vst.msk [vmem:[%s3302_s24 + $0x134] sm:$0xf] %vm2254_vm3, %v2786_v10  ;;  %v2791_v18 = vpack.c.bf16 %v1696_v16, %v1696_v16  ;;  %v1630_v19 = vsel %vm1374_vm6, %v911_v3, %v1502_v12  ;;  %v1505_v20 = vmul.f32 0.2, %v2929_v8 }
 0x10d   : > { %2273 = vst.msk [vmem:[%s3302_s24 + $0x48] sm:$0xf] %vm2254_vm3, %v2727_v15  ;;  %v2725_v21 = vpack.c.bf16 %v1630_v19, %v1630_v19  ;;  %vm1441_vm9 = vcmp.ge.f32.partialorder %v2993_v9, 0.0  ;;  %v1569_v23 = vmul.f32 0.2, %v2993_v9  ;;  %vm1375_vm10 = vcmp.ge.f32.partialorder %v914_v13, 0.0 }
 0x10e   : > { %v1694_v22 = vsel %vm1438_vm7, %v1167_v4, %v1566_v17  ;;  %2337 = vst.msk [vmem:[%s3302_s24 + $0x148] sm:$0xf] %vm2254_vm3, %v2791_v18  ;;  %v1633_v25 = vsel %vm1377_vm8, %v2929_v8, %v1505_v20  ;;  %v1503_v26 = vmul.f32 0.2, %v914_v13  ;;  %vm1439_vm11 = vcmp.ge.f32.partialorder %v1170_v14, 0.0  ;;  %v2932_v30 = vpop.f32.mrb[20].mxu0 }
 0x10f   : > { %v2789_v24 = vpack.c.bf16 %v1694_v22, %v1694_v22  ;;  %2271 = vst.msk [vmem:[%s3302_s24 + $0x40] sm:$0xf] %vm2254_vm3, %v2725_v21  ;;  %v2728_v27 = vpack.c.bf16 %v1633_v25, %v1633_v25  ;;  %v1697_v28 = vsel %vm1441_vm9, %v2993_v9, %v1569_v23  ;;  %v1567_v29 = vmul.f32 0.2, %v1170_v14  ;;  %v2996_v31 = vpop.f32.mrb[20].mxu1  ;;  %v927_v35 = vpop.f32.mrb[21].mxu0 }
 0x110   : > { %v2792_v32 = vpack.c.bf16 %v1697_v28, %v1697_v28  ;;  %v1631_v33 = vsel %vm1375_vm10, %v914_v13, %v1503_v26  ;;  %vm1380_vm12 = vcmp.ge.f32.partialorder %v2932_v30, 0.0  ;;  %v1508_v34 = vmul.f32 0.2, %v2932_v30  ;;  %v1183_v36 = vpop.f32.mrb[21].mxu1  ;;  %v2933_v40 = vpop.f32.mrb[22].mxu0 }
 0x111   : > { %2335 = vst.msk [vmem:[%s3302_s24 + $0x140] sm:$0xf] %vm2254_vm3, %v2789_v24  ;;  %2274 = vst.msk [vmem:[%s3302_s24 + $0x4c] sm:$0xf] %vm2254_vm3, %v2728_v27  ;;  %v2726_v37 = vpack.c.bf16 %v1631_v33, %v1631_v33  ;;  %v1695_v38 = vsel %vm1439_vm11, %v1170_v14, %v1567_v29  ;;  %vm1444_vm13 = vcmp.ge.f32.partialorder %v2996_v31, 0.0  ;;  %v2997_v41 = vpop.f32.mrb[22].mxu1 }
 0x112   : > { %v1572_v39 = vmul.f32 0.2, %v2996_v31  ;;  %2338 = vst.msk [vmem:[%s3302_s24 + $0x14c] sm:$0xf] %vm2254_vm3, %v2792_v32  ;;  %v2790_v42 = vpack.c.bf16 %v1695_v38, %v1695_v38  ;;  %v1636_v43 = vsel %vm1380_vm12, %v2932_v30, %v1508_v34  ;;  %vm1378_vm14 = vcmp.ge.f32.partialorder %v927_v35, 0.0  ;;  %v930_v45 = vpop.f32.mrb[23].mxu0 }
 0x113   : > { %v1506_v44 = vmul.f32 0.2, %v927_v35  ;;  %v1186_v46 = vpop.f32.mrb[23].mxu1  ;;  %2272 = vst.msk [vmem:[%s3302_s24 + $0x44] sm:$0xf] %vm2254_vm3, %v2726_v37  ;;  %v2731_v47 = vpack.c.bf16 %v1636_v43, %v1636_v43  ;;  %vm1442_vm15 = vcmp.ge.f32.partialorder %v1183_v36, 0.0 }
 0x114   : > { %v1700_v48 = vsel %vm1444_vm13, %v2996_v31, %v1572_v39  ;;  %v1570_v49 = vmul.f32 0.2, %v1183_v36  ;;  %2336 = vst.msk [vmem:[%s3302_s24 + $0x144] sm:$0xf] %vm2254_vm3, %v2790_v42  ;;  %vm1381_vm0 = vcmp.ge.f32.partialorder %v2933_v40, 0.0  ;;  %vm1445_vm1 = vcmp.ge.f32.partialorder %v2997_v41, 0.0 }
 0x115   : > { %v2795_v50 = vpack.c.bf16 %v1700_v48, %v1700_v48  ;;  %v1634_v51 = vsel %vm1378_vm14, %v927_v35, %v1506_v44  ;;  %v1509_v52 = vmul.f32 0.2, %v2933_v40  ;;  %2277 = vst.msk [vmem:[%s3302_s24 + $0x58] sm:$0xf] %vm2254_vm3, %v2731_v47  ;;  %v1573_v55 = vmul.f32 0.2, %v2997_v41 }
 0x116   : > { %v2729_v53 = vpack.c.bf16 %v1634_v51, %v1634_v51  ;;  %v1698_v54 = vsel %vm1442_vm15, %v1183_v36, %v1570_v49  ;;  %vm1379_vm2 = vcmp.ge.f32.partialorder %v930_v45, 0.0  ;;  %v1507_v58 = vmul.f32 0.2, %v930_v45  ;;  %v2936_v62 = vpop.f32.mrb[24].mxu0  ;;  %v3000_v63 = vpop.f32.mrb[24].mxu1 }
 0x117   : > { %2341 = vst.msk [vmem:[%s3302_s24 + $0x158] sm:$0xf] %vm2254_vm3, %v2795_v50  ;;  %v2793_v56 = vpack.c.bf16 %v1698_v54, %v1698_v54  ;;  %v1637_v57 = vsel %vm1381_vm0, %v2933_v40, %v1509_v52  ;;  %v1701_v60 = vsel %vm1445_vm1, %v2997_v41, %v1573_v55  ;;  %vm1443_vm4 = vcmp.ge.f32.partialorder %v1186_v46, 0.0  ;;  %v943_v3 = vpop.f32.mrb[25].mxu0  ;;  %v1199_v4 = vpop.f32.mrb[25].mxu1 }
 0x118   : > { %2275 = vst.msk [vmem:[%s3302_s24 + $0x50] sm:$0xf] %vm2254_vm3, %v2729_v53  ;;  %v2732_v59 = vpack.c.bf16 %v1637_v57, %v1637_v57  ;;  %v1571_v61 = vmul.f32 0.2, %v1186_v46  ;;  %v2796_v0 = vpack.c.bf16 %v1701_v60, %v1701_v60  ;;  %v1635_v1 = vsel %vm1379_vm2, %v930_v45, %v1507_v58  ;;  %v2937_v8 = vpop.f32.mrb[26].mxu0  ;;  %v3001_v9 = vpop.f32.mrb[26].mxu1 }
 0x119   : > { %2339 = vst.msk [vmem:[%s3302_s24 + $0x150] sm:$0xf] %vm2254_vm3, %v2793_v56  ;;  %vm1384_vm5 = vcmp.ge.f32.partialorder %v2936_v62, 0.0  ;;  %v1512_v2 = vmul.f32 0.2, %v2936_v62  ;;  %v2730_v5 = vpack.c.bf16 %v1635_v1, %v1635_v1  ;;  %vm1448_vm6 = vcmp.ge.f32.partialorder %v3000_v63, 0.0 }
 0x11a   : > { %2278 = vst.msk [vmem:[%s3302_s24 + $0x5c] sm:$0xf] %vm2254_vm3, %v2732_v59  ;;  %v1699_v6 = vsel %vm1443_vm4, %v1186_v46, %v1571_v61  ;;  %v1576_v7 = vmul.f32 0.2, %v3000_v63  ;;  %2342 = vst.msk [vmem:[%s3302_s24 + $0x15c] sm:$0xf] %vm2254_vm3, %v2796_v0 }
 0x11b   : > { %v2794_v10 = vpack.c.bf16 %v1699_v6, %v1699_v6  ;;  %v1640_v11 = vsel %vm1384_vm5, %v2936_v62, %v1512_v2  ;;  %vm1382_vm7 = vcmp.ge.f32.partialorder %v943_v3, 0.0  ;;  %v1510_v12 = vmul.f32 0.2, %v943_v3  ;;  %v946_v13 = vpop.f32.mrb[27].mxu0  ;;  %v1202_v14 = vpop.f32.mrb[27].mxu1 }
 0x11c   : > { %2276 = vst.msk [vmem:[%s3302_s24 + $0x54] sm:$0xf] %vm2254_vm3, %v2730_v5  ;;  %v2735_v15 = vpack.c.bf16 %v1640_v11, %v1640_v11  ;;  %v1704_v16 = vsel %vm1448_vm6, %v3000_v63, %v1576_v7  ;;  %vm1446_vm8 = vcmp.ge.f32.partialorder %v1199_v4, 0.0  ;;  %v1574_v17 = vmul.f32 0.2, %v1199_v4 }
 0x11d   : > { %2340 = vst.msk [vmem:[%s3302_s24 + $0x154] sm:$0xf] %vm2254_vm3, %v2794_v10  ;;  %v2799_v18 = vpack.c.bf16 %v1704_v16, %v1704_v16  ;;  %v1638_v19 = vsel %vm1382_vm7, %v943_v3, %v1510_v12  ;;  %vm1385_vm9 = vcmp.ge.f32.partialorder %v2937_v8, 0.0  ;;  %v1513_v20 = vmul.f32 0.2, %v2937_v8  ;;  %v2940_v30 = vpop.f32.mrb[28].mxu0 }
 0x11e   : > { %2281 = vst.msk [vmem:[%s3302_s24 + $0x68] sm:$0xf] %vm2254_vm3, %v2735_v15  ;;  %v2733_v21 = vpack.c.bf16 %v1638_v19, %v1638_v19  ;;  %v1702_v22 = vsel %vm1446_vm8, %v1199_v4, %v1574_v17  ;;  %vm1449_vm10 = vcmp.ge.f32.partialorder %v3001_v9, 0.0  ;;  %v1577_v23 = vmul.f32 0.2, %v3001_v9  ;;  %v3004_v31 = vpop.f32.mrb[28].mxu1 }
 0x11f   : > { %2345 = vst.msk [vmem:[%s3302_s24 + $0x168] sm:$0xf] %vm2254_vm3, %v2799_v18  ;;  %v2797_v24 = vpack.c.bf16 %v1702_v22, %v1702_v22  ;;  %v1641_v25 = vsel %vm1385_vm9, %v2937_v8, %v1513_v20  ;;  %vm1383_vm11 = vcmp.ge.f32.partialorder %v946_v13, 0.0  ;;  %v1511_v26 = vmul.f32 0.2, %v946_v13  ;;  %v959_v35 = vpop.f32.mrb[29].mxu0 }
 0x120   : > { %2279 = vst.msk [vmem:[%s3302_s24 + $0x60] sm:$0xf] %vm2254_vm3, %v2733_v21  ;;  %v2736_v27 = vpack.c.bf16 %v1641_v25, %v1641_v25  ;;  %v1705_v28 = vsel %vm1449_vm10, %v3001_v9, %v1577_v23  ;;  %vm1447_vm12 = vcmp.ge.f32.partialorder %v1202_v14, 0.0  ;;  %v1575_v29 = vmul.f32 0.2, %v1202_v14  ;;  %v1215_v36 = vpop.f32.mrb[29].mxu1 }
 0x121   : > { %2343 = vst.msk [vmem:[%s3302_s24 + $0x160] sm:$0xf] %vm2254_vm3, %v2797_v24  ;;  %v2800_v32 = vpack.c.bf16 %v1705_v28, %v1705_v28  ;;  %v1639_v33 = vsel %vm1383_vm11, %v946_v13, %v1511_v26  ;;  %vm1388_vm13 = vcmp.ge.f32.partialorder %v2940_v30, 0.0  ;;  %v1516_v34 = vmul.f32 0.2, %v2940_v30  ;;  %v2941_v40 = vpop.f32.mrb[30].mxu0 }
 0x122   : > { %2282 = vst.msk [vmem:[%s3302_s24 + $0x6c] sm:$0xf] %vm2254_vm3, %v2736_v27  ;;  %v2734_v37 = vpack.c.bf16 %v1639_v33, %v1639_v33  ;;  %v1703_v38 = vsel %vm1447_vm12, %v1202_v14, %v1575_v29  ;;  %vm1452_vm14 = vcmp.ge.f32.partialorder %v3004_v31, 0.0  ;;  %v1580_v39 = vmul.f32 0.2, %v3004_v31  ;;  %v3005_v41 = vpop.f32.mrb[30].mxu1 }
 0x123   : > { %2346 = vst.msk [vmem:[%s3302_s24 + $0x16c] sm:$0xf] %vm2254_vm3, %v2800_v32  ;;  %v2798_v42 = vpack.c.bf16 %v1703_v38, %v1703_v38  ;;  %v1644_v43 = vsel %vm1388_vm13, %v2940_v30, %v1516_v34  ;;  %vm1386_vm15 = vcmp.ge.f32.partialorder %v959_v35, 0.0  ;;  %v1514_v44 = vmul.f32 0.2, %v959_v35  ;;  %v962_v45 = vpop.f32.mrb[31].mxu0 }
 0x124   : > { %v1218_v46 = vpop.f32.mrb[31].mxu1  ;;  %2280 = vst.msk [vmem:[%s3302_s24 + $0x64] sm:$0xf] %vm2254_vm3, %v2734_v37  ;;  %v2739_v47 = vpack.c.bf16 %v1644_v43, %v1644_v43  ;;  %v1708_v48 = vsel %vm1452_vm14, %v3004_v31, %v1580_v39  ;;  %vm1450_vm0 = vcmp.ge.f32.partialorder %v1215_v36, 0.0  ;;  %v1578_v49 = vmul.f32 0.2, %v1215_v36 }
 0x125   : > { %2344 = vst.msk [vmem:[%s3302_s24 + $0x164] sm:$0xf] %vm2254_vm3, %v2798_v42  ;;  %v2803_v50 = vpack.c.bf16 %v1708_v48, %v1708_v48  ;;  %v1642_v51 = vsel %vm1386_vm15, %v959_v35, %v1514_v44  ;;  %vm1389_vm1 = vcmp.ge.f32.partialorder %v2941_v40, 0.0  ;;  %v1517_v52 = vmul.f32 0.2, %v2941_v40  ;;  %v2944_v62 = vpop.f32.mrb[32].mxu0 }
 0x126   : > { %2285 = vst.msk [vmem:[%s3302_s24 + $0x78] sm:$0xf] %vm2254_vm3, %v2739_v47  ;;  %v2737_v53 = vpack.c.bf16 %v1642_v51, %v1642_v51  ;;  %v1706_v54 = vsel %vm1450_vm0, %v1215_v36, %v1578_v49  ;;  %vm1453_vm2 = vcmp.ge.f32.partialorder %v3005_v41, 0.0  ;;  %v1581_v55 = vmul.f32 0.2, %v3005_v41  ;;  %v3008_v63 = vpop.f32.mrb[32].mxu1 }
 0x127   : > { %2349 = vst.msk [vmem:[%s3302_s24 + $0x178] sm:$0xf] %vm2254_vm3, %v2803_v50  ;;  %v2801_v56 = vpack.c.bf16 %v1706_v54, %v1706_v54  ;;  %v1645_v57 = vsel %vm1389_vm1, %v2941_v40, %v1517_v52  ;;  %vm1387_vm4 = vcmp.ge.f32.partialorder %v962_v45, 0.0  ;;  %v1515_v58 = vmul.f32 0.2, %v962_v45  ;;  %v975_v3 = vpop.f32.mrb[33].mxu0 }
 0x128   : > { %2283 = vst.msk [vmem:[%s3302_s24 + $0x70] sm:$0xf] %vm2254_vm3, %v2737_v53  ;;  %v2740_v59 = vpack.c.bf16 %v1645_v57, %v1645_v57  ;;  %v1709_v60 = vsel %vm1453_vm2, %v3005_v41, %v1581_v55  ;;  %vm1451_vm5 = vcmp.ge.f32.partialorder %v1218_v46, 0.0  ;;  %v1579_v61 = vmul.f32 0.2, %v1218_v46  ;;  %v1231_v4 = vpop.f32.mrb[33].mxu1 }
 0x129   : > { %2347 = vst.msk [vmem:[%s3302_s24 + $0x170] sm:$0xf] %vm2254_vm3, %v2801_v56  ;;  %v2804_v0 = vpack.c.bf16 %v1709_v60, %v1709_v60  ;;  %v1643_v1 = vsel %vm1387_vm4, %v962_v45, %v1515_v58  ;;  %vm1392_vm6 = vcmp.ge.f32.partialorder %v2944_v62, 0.0  ;;  %v1520_v2 = vmul.f32 0.2, %v2944_v62  ;;  %v2945_v8 = vpop.f32.mrb[34].mxu0 }
 0x12a   : > { %2286 = vst.msk [vmem:[%s3302_s24 + $0x7c] sm:$0xf] %vm2254_vm3, %v2740_v59  ;;  %v2738_v5 = vpack.c.bf16 %v1643_v1, %v1643_v1  ;;  %v1707_v6 = vsel %vm1451_vm5, %v1218_v46, %v1579_v61  ;;  %vm1456_vm7 = vcmp.ge.f32.partialorder %v3008_v63, 0.0  ;;  %v1584_v7 = vmul.f32 0.2, %v3008_v63  ;;  %v3009_v9 = vpop.f32.mrb[34].mxu1 }
 0x12b   : > { %2350 = vst.msk [vmem:[%s3302_s24 + $0x17c] sm:$0xf] %vm2254_vm3, %v2804_v0  ;;  %v2802_v10 = vpack.c.bf16 %v1707_v6, %v1707_v6  ;;  %v1648_v11 = vsel %vm1392_vm6, %v2944_v62, %v1520_v2  ;;  %vm1390_vm8 = vcmp.ge.f32.partialorder %v975_v3, 0.0  ;;  %v1518_v12 = vmul.f32 0.2, %v975_v3  ;;  %v978_v13 = vpop.f32.mrb[35].mxu0 }
 0x12c   : > { %v1234_v14 = vpop.f32.mrb[35].mxu1  ;;  %2284 = vst.msk [vmem:[%s3302_s24 + $0x74] sm:$0xf] %vm2254_vm3, %v2738_v5  ;;  %v2743_v15 = vpack.c.bf16 %v1648_v11, %v1648_v11  ;;  %v1712_v16 = vsel %vm1456_vm7, %v3008_v63, %v1584_v7  ;;  %vm1454_vm9 = vcmp.ge.f32.partialorder %v1231_v4, 0.0  ;;  %v1582_v17 = vmul.f32 0.2, %v1231_v4 }
 0x12d   : > { %2348 = vst.msk [vmem:[%s3302_s24 + $0x174] sm:$0xf] %vm2254_vm3, %v2802_v10  ;;  %v2807_v18 = vpack.c.bf16 %v1712_v16, %v1712_v16  ;;  %v1646_v19 = vsel %vm1390_vm8, %v975_v3, %v1518_v12  ;;  %vm1393_vm10 = vcmp.ge.f32.partialorder %v2945_v8, 0.0  ;;  %v1521_v20 = vmul.f32 0.2, %v2945_v8  ;;  %v2948_v30 = vpop.f32.mrb[36].mxu0 }
 0x12e   : > { %2289 = vst.msk [vmem:[%s3302_s24 + $0x88] sm:$0xf] %vm2254_vm3, %v2743_v15  ;;  %v2741_v21 = vpack.c.bf16 %v1646_v19, %v1646_v19  ;;  %v1710_v22 = vsel %vm1454_vm9, %v1231_v4, %v1582_v17  ;;  %vm1457_vm11 = vcmp.ge.f32.partialorder %v3009_v9, 0.0  ;;  %v1585_v23 = vmul.f32 0.2, %v3009_v9  ;;  %v3012_v31 = vpop.f32.mrb[36].mxu1 }
 0x12f   : > { %2353 = vst.msk [vmem:[%s3302_s24 + $0x188] sm:$0xf] %vm2254_vm3, %v2807_v18  ;;  %v2805_v24 = vpack.c.bf16 %v1710_v22, %v1710_v22  ;;  %v1649_v25 = vsel %vm1393_vm10, %v2945_v8, %v1521_v20  ;;  %vm1391_vm12 = vcmp.ge.f32.partialorder %v978_v13, 0.0  ;;  %v1519_v26 = vmul.f32 0.2, %v978_v13  ;;  %v991_v35 = vpop.f32.mrb[37].mxu0 }
 0x130   : > { %2287 = vst.msk [vmem:[%s3302_s24 + $0x80] sm:$0xf] %vm2254_vm3, %v2741_v21  ;;  %v2744_v27 = vpack.c.bf16 %v1649_v25, %v1649_v25  ;;  %v1713_v28 = vsel %vm1457_vm11, %v3009_v9, %v1585_v23  ;;  %vm1455_vm13 = vcmp.ge.f32.partialorder %v1234_v14, 0.0  ;;  %v1583_v29 = vmul.f32 0.2, %v1234_v14  ;;  %v1247_v36 = vpop.f32.mrb[37].mxu1 }
 0x131   : > { %2351 = vst.msk [vmem:[%s3302_s24 + $0x180] sm:$0xf] %vm2254_vm3, %v2805_v24  ;;  %v2808_v32 = vpack.c.bf16 %v1713_v28, %v1713_v28  ;;  %v1647_v33 = vsel %vm1391_vm12, %v978_v13, %v1519_v26  ;;  %vm1396_vm14 = vcmp.ge.f32.partialorder %v2948_v30, 0.0  ;;  %v1524_v34 = vmul.f32 0.2, %v2948_v30  ;;  %v2949_v40 = vpop.f32.mrb[38].mxu0 }
 0x132   : > { %2290 = vst.msk [vmem:[%s3302_s24 + $0x8c] sm:$0xf] %vm2254_vm3, %v2744_v27  ;;  %v2742_v37 = vpack.c.bf16 %v1647_v33, %v1647_v33  ;;  %v1711_v38 = vsel %vm1455_vm13, %v1234_v14, %v1583_v29  ;;  %vm1460_vm15 = vcmp.ge.f32.partialorder %v3012_v31, 0.0  ;;  %v1588_v39 = vmul.f32 0.2, %v3012_v31  ;;  %v3013_v41 = vpop.f32.mrb[38].mxu1 }
 0x133   : > { %2354 = vst.msk [vmem:[%s3302_s24 + $0x18c] sm:$0xf] %vm2254_vm3, %v2808_v32  ;;  %v2806_v42 = vpack.c.bf16 %v1711_v38, %v1711_v38  ;;  %v1652_v43 = vsel %vm1396_vm14, %v2948_v30, %v1524_v34  ;;  %vm1394_vm0 = vcmp.ge.f32.partialorder %v991_v35, 0.0  ;;  %v1522_v44 = vmul.f32 0.2, %v991_v35  ;;  %v994_v45 = vpop.f32.mrb[39].mxu0 }
 0x134   : > { %v1250_v46 = vpop.f32.mrb[39].mxu1  ;;  %2288 = vst.msk [vmem:[%s3302_s24 + $0x84] sm:$0xf] %vm2254_vm3, %v2742_v37  ;;  %v2747_v47 = vpack.c.bf16 %v1652_v43, %v1652_v43  ;;  %v1716_v48 = vsel %vm1460_vm15, %v3012_v31, %v1588_v39  ;;  %vm1458_vm1 = vcmp.ge.f32.partialorder %v1247_v36, 0.0  ;;  %v1586_v49 = vmul.f32 0.2, %v1247_v36 }
 0x135   : > { %2352 = vst.msk [vmem:[%s3302_s24 + $0x184] sm:$0xf] %vm2254_vm3, %v2806_v42  ;;  %v2811_v50 = vpack.c.bf16 %v1716_v48, %v1716_v48  ;;  %v1650_v51 = vsel %vm1394_vm0, %v991_v35, %v1522_v44  ;;  %vm1397_vm2 = vcmp.ge.f32.partialorder %v2949_v40, 0.0  ;;  %v1525_v52 = vmul.f32 0.2, %v2949_v40  ;;  %v2952_v62 = vpop.f32.mrb[40].mxu0 }
 0x136   : > { %2293 = vst.msk [vmem:[%s3302_s24 + $0x98] sm:$0xf] %vm2254_vm3, %v2747_v47  ;;  %v2745_v53 = vpack.c.bf16 %v1650_v51, %v1650_v51  ;;  %v1714_v54 = vsel %vm1458_vm1, %v1247_v36, %v1586_v49  ;;  %vm1461_vm4 = vcmp.ge.f32.partialorder %v3013_v41, 0.0  ;;  %v1589_v55 = vmul.f32 0.2, %v3013_v41  ;;  %v3016_v63 = vpop.f32.mrb[40].mxu1 }
 0x137   : > { %2357 = vst.msk [vmem:[%s3302_s24 + $0x198] sm:$0xf] %vm2254_vm3, %v2811_v50  ;;  %v2809_v56 = vpack.c.bf16 %v1714_v54, %v1714_v54  ;;  %v1653_v57 = vsel %vm1397_vm2, %v2949_v40, %v1525_v52  ;;  %vm1395_vm5 = vcmp.ge.f32.partialorder %v994_v45, 0.0  ;;  %v1523_v58 = vmul.f32 0.2, %v994_v45  ;;  %v1007_v3 = vpop.f32.mrb[41].mxu0 }
 0x138   : > { %2291 = vst.msk [vmem:[%s3302_s24 + $0x90] sm:$0xf] %vm2254_vm3, %v2745_v53  ;;  %v2748_v59 = vpack.c.bf16 %v1653_v57, %v1653_v57  ;;  %v1717_v60 = vsel %vm1461_vm4, %v3013_v41, %v1589_v55  ;;  %vm1459_vm6 = vcmp.ge.f32.partialorder %v1250_v46, 0.0  ;;  %v1587_v61 = vmul.f32 0.2, %v1250_v46  ;;  %v1263_v4 = vpop.f32.mrb[41].mxu1 }
 0x139   : > { %2355 = vst.msk [vmem:[%s3302_s24 + $0x190] sm:$0xf] %vm2254_vm3, %v2809_v56  ;;  %v2812_v0 = vpack.c.bf16 %v1717_v60, %v1717_v60  ;;  %v1651_v1 = vsel %vm1395_vm5, %v994_v45, %v1523_v58  ;;  %vm1400_vm7 = vcmp.ge.f32.partialorder %v2952_v62, 0.0  ;;  %v1528_v2 = vmul.f32 0.2, %v2952_v62  ;;  %v2953_v8 = vpop.f32.mrb[42].mxu0 }
 0x13a   : > { %2294 = vst.msk [vmem:[%s3302_s24 + $0x9c] sm:$0xf] %vm2254_vm3, %v2748_v59  ;;  %v2746_v5 = vpack.c.bf16 %v1651_v1, %v1651_v1  ;;  %v1715_v6 = vsel %vm1459_vm6, %v1250_v46, %v1587_v61  ;;  %vm1464_vm8 = vcmp.ge.f32.partialorder %v3016_v63, 0.0  ;;  %v1592_v7 = vmul.f32 0.2, %v3016_v63  ;;  %v3017_v9 = vpop.f32.mrb[42].mxu1 }
 0x13b   : > { %2358 = vst.msk [vmem:[%s3302_s24 + $0x19c] sm:$0xf] %vm2254_vm3, %v2812_v0  ;;  %v2810_v10 = vpack.c.bf16 %v1715_v6, %v1715_v6  ;;  %v1656_v11 = vsel %vm1400_vm7, %v2952_v62, %v1528_v2  ;;  %vm1398_vm9 = vcmp.ge.f32.partialorder %v1007_v3, 0.0  ;;  %v1526_v12 = vmul.f32 0.2, %v1007_v3  ;;  %v1010_v13 = vpop.f32.mrb[43].mxu0 }
 0x13c   : > { %v1266_v14 = vpop.f32.mrb[43].mxu1  ;;  %2292 = vst.msk [vmem:[%s3302_s24 + $0x94] sm:$0xf] %vm2254_vm3, %v2746_v5  ;;  %v2751_v15 = vpack.c.bf16 %v1656_v11, %v1656_v11  ;;  %v1720_v16 = vsel %vm1464_vm8, %v3016_v63, %v1592_v7  ;;  %vm1462_vm10 = vcmp.ge.f32.partialorder %v1263_v4, 0.0  ;;  %v1590_v17 = vmul.f32 0.2, %v1263_v4 }
 0x13d   : > { %2356 = vst.msk [vmem:[%s3302_s24 + $0x194] sm:$0xf] %vm2254_vm3, %v2810_v10  ;;  %v2815_v18 = vpack.c.bf16 %v1720_v16, %v1720_v16  ;;  %v1654_v19 = vsel %vm1398_vm9, %v1007_v3, %v1526_v12  ;;  %vm1401_vm11 = vcmp.ge.f32.partialorder %v2953_v8, 0.0  ;;  %v1529_v20 = vmul.f32 0.2, %v2953_v8  ;;  %v2956_v30 = vpop.f32.mrb[44].mxu0 }
 0x13e   : > { %2297 = vst.msk [vmem:[%s3302_s24 + $0xa8] sm:$0xf] %vm2254_vm3, %v2751_v15  ;;  %v2749_v21 = vpack.c.bf16 %v1654_v19, %v1654_v19  ;;  %v1718_v22 = vsel %vm1462_vm10, %v1263_v4, %v1590_v17  ;;  %vm1465_vm12 = vcmp.ge.f32.partialorder %v3017_v9, 0.0  ;;  %v1593_v23 = vmul.f32 0.2, %v3017_v9  ;;  %v3020_v31 = vpop.f32.mrb[44].mxu1 }
 0x13f   : > { %2361 = vst.msk [vmem:[%s3302_s24 + $0x1a8] sm:$0xf] %vm2254_vm3, %v2815_v18  ;;  %v2813_v24 = vpack.c.bf16 %v1718_v22, %v1718_v22  ;;  %v1657_v25 = vsel %vm1401_vm11, %v2953_v8, %v1529_v20  ;;  %vm1399_vm13 = vcmp.ge.f32.partialorder %v1010_v13, 0.0  ;;  %v1527_v26 = vmul.f32 0.2, %v1010_v13  ;;  %v1023_v35 = vpop.f32.mrb[45].mxu0 }
 0x140   : > { %2295 = vst.msk [vmem:[%s3302_s24 + $0xa0] sm:$0xf] %vm2254_vm3, %v2749_v21  ;;  %v2752_v27 = vpack.c.bf16 %v1657_v25, %v1657_v25  ;;  %v1721_v28 = vsel %vm1465_vm12, %v3017_v9, %v1593_v23  ;;  %vm1463_vm14 = vcmp.ge.f32.partialorder %v1266_v14, 0.0  ;;  %v1591_v29 = vmul.f32 0.2, %v1266_v14  ;;  %v1279_v36 = vpop.f32.mrb[45].mxu1 }
 0x141   : > { %2359 = vst.msk [vmem:[%s3302_s24 + $0x1a0] sm:$0xf] %vm2254_vm3, %v2813_v24  ;;  %v2816_v32 = vpack.c.bf16 %v1721_v28, %v1721_v28  ;;  %v1655_v33 = vsel %vm1399_vm13, %v1010_v13, %v1527_v26  ;;  %vm1404_vm15 = vcmp.ge.f32.partialorder %v2956_v30, 0.0  ;;  %v1532_v34 = vmul.f32 0.2, %v2956_v30  ;;  %v2957_v40 = vpop.f32.mrb[46].mxu0 }
 0x142   : > { %2298 = vst.msk [vmem:[%s3302_s24 + $0xac] sm:$0xf] %vm2254_vm3, %v2752_v27  ;;  %v2750_v37 = vpack.c.bf16 %v1655_v33, %v1655_v33  ;;  %v1719_v38 = vsel %vm1463_vm14, %v1266_v14, %v1591_v29  ;;  %vm1468_vm0 = vcmp.ge.f32.partialorder %v3020_v31, 0.0  ;;  %v1596_v39 = vmul.f32 0.2, %v3020_v31  ;;  %v3021_v41 = vpop.f32.mrb[46].mxu1 }
 0x143   : > { %2362 = vst.msk [vmem:[%s3302_s24 + $0x1ac] sm:$0xf] %vm2254_vm3, %v2816_v32  ;;  %v2814_v42 = vpack.c.bf16 %v1719_v38, %v1719_v38  ;;  %v1660_v43 = vsel %vm1404_vm15, %v2956_v30, %v1532_v34  ;;  %vm1402_vm1 = vcmp.ge.f32.partialorder %v1023_v35, 0.0  ;;  %v1530_v44 = vmul.f32 0.2, %v1023_v35  ;;  %v1026_v45 = vpop.f32.mrb[47].mxu0 }
 0x144   : > { %v1282_v46 = vpop.f32.mrb[47].mxu1  ;;  %2296 = vst.msk [vmem:[%s3302_s24 + $0xa4] sm:$0xf] %vm2254_vm3, %v2750_v37  ;;  %v2755_v47 = vpack.c.bf16 %v1660_v43, %v1660_v43  ;;  %v1724_v48 = vsel %vm1468_vm0, %v3020_v31, %v1596_v39  ;;  %vm1466_vm2 = vcmp.ge.f32.partialorder %v1279_v36, 0.0  ;;  %v1594_v49 = vmul.f32 0.2, %v1279_v36 }
 0x145   : > { %2360 = vst.msk [vmem:[%s3302_s24 + $0x1a4] sm:$0xf] %vm2254_vm3, %v2814_v42  ;;  %v2819_v50 = vpack.c.bf16 %v1724_v48, %v1724_v48  ;;  %v1658_v51 = vsel %vm1402_vm1, %v1023_v35, %v1530_v44  ;;  %vm1405_vm4 = vcmp.ge.f32.partialorder %v2957_v40, 0.0  ;;  %v1533_v52 = vmul.f32 0.2, %v2957_v40  ;;  %v2960_v62 = vpop.f32.mrb[48].mxu0 }
 0x146   : > { %2301 = vst.msk [vmem:[%s3302_s24 + $0xb8] sm:$0xf] %vm2254_vm3, %v2755_v47  ;;  %v2753_v53 = vpack.c.bf16 %v1658_v51, %v1658_v51  ;;  %v1722_v54 = vsel %vm1466_vm2, %v1279_v36, %v1594_v49  ;;  %vm1469_vm5 = vcmp.ge.f32.partialorder %v3021_v41, 0.0  ;;  %v1597_v55 = vmul.f32 0.2, %v3021_v41  ;;  %v3024_v63 = vpop.f32.mrb[48].mxu1 }
 0x147   : > { %2365 = vst.msk [vmem:[%s3302_s24 + $0x1b8] sm:$0xf] %vm2254_vm3, %v2819_v50  ;;  %v2817_v56 = vpack.c.bf16 %v1722_v54, %v1722_v54  ;;  %v1661_v57 = vsel %vm1405_vm4, %v2957_v40, %v1533_v52  ;;  %vm1403_vm6 = vcmp.ge.f32.partialorder %v1026_v45, 0.0  ;;  %v1531_v58 = vmul.f32 0.2, %v1026_v45  ;;  %v1039_v3 = vpop.f32.mrb[49].mxu0 }
 0x148   : > { %2299 = vst.msk [vmem:[%s3302_s24 + $0xb0] sm:$0xf] %vm2254_vm3, %v2753_v53  ;;  %v2756_v59 = vpack.c.bf16 %v1661_v57, %v1661_v57  ;;  %v1725_v60 = vsel %vm1469_vm5, %v3021_v41, %v1597_v55  ;;  %vm1467_vm7 = vcmp.ge.f32.partialorder %v1282_v46, 0.0  ;;  %v1595_v61 = vmul.f32 0.2, %v1282_v46  ;;  %v1295_v4 = vpop.f32.mrb[49].mxu1 }
 0x149   : > { %2363 = vst.msk [vmem:[%s3302_s24 + $0x1b0] sm:$0xf] %vm2254_vm3, %v2817_v56  ;;  %v2820_v0 = vpack.c.bf16 %v1725_v60, %v1725_v60  ;;  %v1659_v1 = vsel %vm1403_vm6, %v1026_v45, %v1531_v58  ;;  %vm1408_vm8 = vcmp.ge.f32.partialorder %v2960_v62, 0.0  ;;  %v1536_v2 = vmul.f32 0.2, %v2960_v62  ;;  %v2961_v8 = vpop.f32.mrb[50].mxu0 }
 0x14a   : > { %2302 = vst.msk [vmem:[%s3302_s24 + $0xbc] sm:$0xf] %vm2254_vm3, %v2756_v59  ;;  %v2754_v5 = vpack.c.bf16 %v1659_v1, %v1659_v1  ;;  %v1723_v6 = vsel %vm1467_vm7, %v1282_v46, %v1595_v61  ;;  %vm1472_vm9 = vcmp.ge.f32.partialorder %v3024_v63, 0.0  ;;  %v1600_v7 = vmul.f32 0.2, %v3024_v63  ;;  %v3025_v9 = vpop.f32.mrb[50].mxu1 }
 0x14b   : > { %2366 = vst.msk [vmem:[%s3302_s24 + $0x1bc] sm:$0xf] %vm2254_vm3, %v2820_v0  ;;  %v2818_v10 = vpack.c.bf16 %v1723_v6, %v1723_v6  ;;  %v1664_v11 = vsel %vm1408_vm8, %v2960_v62, %v1536_v2  ;;  %vm1406_vm10 = vcmp.ge.f32.partialorder %v1039_v3, 0.0  ;;  %v1534_v12 = vmul.f32 0.2, %v1039_v3  ;;  %v1042_v13 = vpop.f32.mrb[51].mxu0 }
 0x14c   : > { %v1298_v14 = vpop.f32.mrb[51].mxu1  ;;  %2300 = vst.msk [vmem:[%s3302_s24 + $0xb4] sm:$0xf] %vm2254_vm3, %v2754_v5  ;;  %v2759_v15 = vpack.c.bf16 %v1664_v11, %v1664_v11  ;;  %v1728_v16 = vsel %vm1472_vm9, %v3024_v63, %v1600_v7  ;;  %vm1470_vm11 = vcmp.ge.f32.partialorder %v1295_v4, 0.0  ;;  %v1598_v17 = vmul.f32 0.2, %v1295_v4 }
 0x14d   : > { %2364 = vst.msk [vmem:[%s3302_s24 + $0x1b4] sm:$0xf] %vm2254_vm3, %v2818_v10  ;;  %v2823_v18 = vpack.c.bf16 %v1728_v16, %v1728_v16  ;;  %v1662_v19 = vsel %vm1406_vm10, %v1039_v3, %v1534_v12  ;;  %vm1409_vm12 = vcmp.ge.f32.partialorder %v2961_v8, 0.0  ;;  %v1537_v20 = vmul.f32 0.2, %v2961_v8  ;;  %v2964_v30 = vpop.f32.mrb[52].mxu0 }
 0x14e   : > { %2305 = vst.msk [vmem:[%s3302_s24 + $0xc8] sm:$0xf] %vm2254_vm3, %v2759_v15  ;;  %v2757_v21 = vpack.c.bf16 %v1662_v19, %v1662_v19  ;;  %v1726_v22 = vsel %vm1470_vm11, %v1295_v4, %v1598_v17  ;;  %vm1473_vm13 = vcmp.ge.f32.partialorder %v3025_v9, 0.0  ;;  %v1601_v23 = vmul.f32 0.2, %v3025_v9  ;;  %v3028_v31 = vpop.f32.mrb[52].mxu1 }
 0x14f   : > { %2369 = vst.msk [vmem:[%s3302_s24 + $0x1c8] sm:$0xf] %vm2254_vm3, %v2823_v18  ;;  %v2821_v24 = vpack.c.bf16 %v1726_v22, %v1726_v22  ;;  %v1665_v25 = vsel %vm1409_vm12, %v2961_v8, %v1537_v20  ;;  %vm1407_vm14 = vcmp.ge.f32.partialorder %v1042_v13, 0.0  ;;  %v1535_v26 = vmul.f32 0.2, %v1042_v13  ;;  %v1055_v35 = vpop.f32.mrb[53].mxu0 }
 0x150   : > { %2303 = vst.msk [vmem:[%s3302_s24 + $0xc0] sm:$0xf] %vm2254_vm3, %v2757_v21  ;;  %v2760_v27 = vpack.c.bf16 %v1665_v25, %v1665_v25  ;;  %v1729_v28 = vsel %vm1473_vm13, %v3025_v9, %v1601_v23  ;;  %vm1471_vm15 = vcmp.ge.f32.partialorder %v1298_v14, 0.0  ;;  %v1599_v29 = vmul.f32 0.2, %v1298_v14  ;;  %v1311_v36 = vpop.f32.mrb[53].mxu1 }
 0x151   : > { %2367 = vst.msk [vmem:[%s3302_s24 + $0x1c0] sm:$0xf] %vm2254_vm3, %v2821_v24  ;;  %v2824_v32 = vpack.c.bf16 %v1729_v28, %v1729_v28  ;;  %v1663_v33 = vsel %vm1407_vm14, %v1042_v13, %v1535_v26  ;;  %vm1412_vm0 = vcmp.ge.f32.partialorder %v2964_v30, 0.0  ;;  %v1540_v34 = vmul.f32 0.2, %v2964_v30  ;;  %v2965_v40 = vpop.f32.mrb[54].mxu0 }
 0x152   : > { %2306 = vst.msk [vmem:[%s3302_s24 + $0xcc] sm:$0xf] %vm2254_vm3, %v2760_v27  ;;  %v2758_v37 = vpack.c.bf16 %v1663_v33, %v1663_v33  ;;  %v1727_v38 = vsel %vm1471_vm15, %v1298_v14, %v1599_v29  ;;  %vm1476_vm1 = vcmp.ge.f32.partialorder %v3028_v31, 0.0  ;;  %v1604_v39 = vmul.f32 0.2, %v3028_v31  ;;  %v3029_v41 = vpop.f32.mrb[54].mxu1 }
 0x153   : > { %2370 = vst.msk [vmem:[%s3302_s24 + $0x1cc] sm:$0xf] %vm2254_vm3, %v2824_v32  ;;  %v2822_v42 = vpack.c.bf16 %v1727_v38, %v1727_v38  ;;  %v1668_v43 = vsel %vm1412_vm0, %v2964_v30, %v1540_v34  ;;  %vm1410_vm2 = vcmp.ge.f32.partialorder %v1055_v35, 0.0  ;;  %v1538_v44 = vmul.f32 0.2, %v1055_v35  ;;  %v1058_v45 = vpop.f32.mrb[55].mxu0 }
 0x154   : > { %v1314_v46 = vpop.f32.mrb[55].mxu1  ;;  %2304 = vst.msk [vmem:[%s3302_s24 + $0xc4] sm:$0xf] %vm2254_vm3, %v2758_v37  ;;  %v2763_v47 = vpack.c.bf16 %v1668_v43, %v1668_v43  ;;  %v1732_v48 = vsel %vm1476_vm1, %v3028_v31, %v1604_v39  ;;  %vm1474_vm4 = vcmp.ge.f32.partialorder %v1311_v36, 0.0  ;;  %v1602_v49 = vmul.f32 0.2, %v1311_v36 }
 0x155   : > { %2368 = vst.msk [vmem:[%s3302_s24 + $0x1c4] sm:$0xf] %vm2254_vm3, %v2822_v42  ;;  %v2827_v50 = vpack.c.bf16 %v1732_v48, %v1732_v48  ;;  %v1666_v51 = vsel %vm1410_vm2, %v1055_v35, %v1538_v44  ;;  %vm1413_vm5 = vcmp.ge.f32.partialorder %v2965_v40, 0.0  ;;  %v1541_v52 = vmul.f32 0.2, %v2965_v40  ;;  %v2968_v62 = vpop.f32.mrb[56].mxu0 }
 0x156   : > { %2309 = vst.msk [vmem:[%s3302_s24 + $0xd8] sm:$0xf] %vm2254_vm3, %v2763_v47  ;;  %v2761_v53 = vpack.c.bf16 %v1666_v51, %v1666_v51  ;;  %v1730_v54 = vsel %vm1474_vm4, %v1311_v36, %v1602_v49  ;;  %vm1477_vm6 = vcmp.ge.f32.partialorder %v3029_v41, 0.0  ;;  %v1605_v55 = vmul.f32 0.2, %v3029_v41  ;;  %v3032_v63 = vpop.f32.mrb[56].mxu1 }
 0x157   : > { %2373 = vst.msk [vmem:[%s3302_s24 + $0x1d8] sm:$0xf] %vm2254_vm3, %v2827_v50  ;;  %v2825_v56 = vpack.c.bf16 %v1730_v54, %v1730_v54  ;;  %v1669_v57 = vsel %vm1413_vm5, %v2965_v40, %v1541_v52  ;;  %vm1411_vm7 = vcmp.ge.f32.partialorder %v1058_v45, 0.0  ;;  %v1539_v58 = vmul.f32 0.2, %v1058_v45  ;;  %v1071_v3 = vpop.f32.mrb[57].mxu0 }
 0x158   : > { %2307 = vst.msk [vmem:[%s3302_s24 + $0xd0] sm:$0xf] %vm2254_vm3, %v2761_v53  ;;  %v2764_v59 = vpack.c.bf16 %v1669_v57, %v1669_v57  ;;  %v1733_v60 = vsel %vm1477_vm6, %v3029_v41, %v1605_v55  ;;  %vm1475_vm8 = vcmp.ge.f32.partialorder %v1314_v46, 0.0  ;;  %v1603_v61 = vmul.f32 0.2, %v1314_v46  ;;  %v1327_v4 = vpop.f32.mrb[57].mxu1 }
 0x159   : > { %2371 = vst.msk [vmem:[%s3302_s24 + $0x1d0] sm:$0xf] %vm2254_vm3, %v2825_v56  ;;  %v2828_v0 = vpack.c.bf16 %v1733_v60, %v1733_v60  ;;  %v1667_v1 = vsel %vm1411_vm7, %v1058_v45, %v1539_v58  ;;  %vm1416_vm9 = vcmp.ge.f32.partialorder %v2968_v62, 0.0  ;;  %v1544_v2 = vmul.f32 0.2, %v2968_v62  ;;  %v2969_v8 = vpop.f32.mrb[58].mxu0 }
 0x15a   : > { %2310 = vst.msk [vmem:[%s3302_s24 + $0xdc] sm:$0xf] %vm2254_vm3, %v2764_v59  ;;  %v2762_v5 = vpack.c.bf16 %v1667_v1, %v1667_v1  ;;  %v1731_v6 = vsel %vm1475_vm8, %v1314_v46, %v1603_v61  ;;  %vm1480_vm10 = vcmp.ge.f32.partialorder %v3032_v63, 0.0  ;;  %v1608_v7 = vmul.f32 0.2, %v3032_v63  ;;  %v3033_v9 = vpop.f32.mrb[58].mxu1 }
 0x15b   : > { %2374 = vst.msk [vmem:[%s3302_s24 + $0x1dc] sm:$0xf] %vm2254_vm3, %v2828_v0  ;;  %v2826_v10 = vpack.c.bf16 %v1731_v6, %v1731_v6  ;;  %v1672_v11 = vsel %vm1416_vm9, %v2968_v62, %v1544_v2  ;;  %vm1414_vm11 = vcmp.ge.f32.partialorder %v1071_v3, 0.0  ;;  %v1542_v12 = vmul.f32 0.2, %v1071_v3  ;;  %v1074_v13 = vpop.f32.mrb[59].mxu0 }
 0x15c   : > { %v1330_v14 = vpop.f32.mrb[59].mxu1  ;;  %2308 = vst.msk [vmem:[%s3302_s24 + $0xd4] sm:$0xf] %vm2254_vm3, %v2762_v5  ;;  %v2767_v15 = vpack.c.bf16 %v1672_v11, %v1672_v11  ;;  %v1736_v16 = vsel %vm1480_vm10, %v3032_v63, %v1608_v7  ;;  %vm1478_vm12 = vcmp.ge.f32.partialorder %v1327_v4, 0.0  ;;  %v1606_v17 = vmul.f32 0.2, %v1327_v4 }
 0x15d   : > { %2372 = vst.msk [vmem:[%s3302_s24 + $0x1d4] sm:$0xf] %vm2254_vm3, %v2826_v10  ;;  %v2831_v18 = vpack.c.bf16 %v1736_v16, %v1736_v16  ;;  %v1670_v19 = vsel %vm1414_vm11, %v1071_v3, %v1542_v12  ;;  %vm1417_vm13 = vcmp.ge.f32.partialorder %v2969_v8, 0.0  ;;  %v1545_v20 = vmul.f32 0.2, %v2969_v8  ;;  %v2972_v30 = vpop.f32.mrb[60].mxu0 }
 0x15e   : > { %2313 = vst.msk [vmem:[%s3302_s24 + $0xe8] sm:$0xf] %vm2254_vm3, %v2767_v15  ;;  %v2765_v21 = vpack.c.bf16 %v1670_v19, %v1670_v19  ;;  %v1734_v22 = vsel %vm1478_vm12, %v1327_v4, %v1606_v17  ;;  %vm1481_vm14 = vcmp.ge.f32.partialorder %v3033_v9, 0.0  ;;  %v1609_v23 = vmul.f32 0.2, %v3033_v9  ;;  %v3036_v31 = vpop.f32.mrb[60].mxu1 }
 0x15f   : > { %2377 = vst.msk [vmem:[%s3302_s24 + $0x1e8] sm:$0xf] %vm2254_vm3, %v2831_v18  ;;  %v2829_v24 = vpack.c.bf16 %v1734_v22, %v1734_v22  ;;  %v1673_v25 = vsel %vm1417_vm13, %v2969_v8, %v1545_v20  ;;  %vm1415_vm15 = vcmp.ge.f32.partialorder %v1074_v13, 0.0  ;;  %v1543_v26 = vmul.f32 0.2, %v1074_v13  ;;  %v1087_v35 = vpop.f32.mrb[61].mxu0 }
 0x160   : > { %2311 = vst.msk [vmem:[%s3302_s24 + $0xe0] sm:$0xf] %vm2254_vm3, %v2765_v21  ;;  %v2768_v27 = vpack.c.bf16 %v1673_v25, %v1673_v25  ;;  %v1737_v28 = vsel %vm1481_vm14, %v3033_v9, %v1609_v23  ;;  %vm1479_vm0 = vcmp.ge.f32.partialorder %v1330_v14, 0.0  ;;  %v1607_v29 = vmul.f32 0.2, %v1330_v14  ;;  %v1343_v36 = vpop.f32.mrb[61].mxu1 }
 0x161   : > { %2375 = vst.msk [vmem:[%s3302_s24 + $0x1e0] sm:$0xf] %vm2254_vm3, %v2829_v24  ;;  %v2832_v32 = vpack.c.bf16 %v1737_v28, %v1737_v28  ;;  %v1671_v33 = vsel %vm1415_vm15, %v1074_v13, %v1543_v26  ;;  %vm1420_vm1 = vcmp.ge.f32.partialorder %v2972_v30, 0.0  ;;  %v1548_v34 = vmul.f32 0.2, %v2972_v30  ;;  %v2973_v40 = vpop.f32.mrb[62].mxu0 }
 0x162   : > { %2314 = vst.msk [vmem:[%s3302_s24 + $0xec] sm:$0xf] %vm2254_vm3, %v2768_v27  ;;  %v2766_v37 = vpack.c.bf16 %v1671_v33, %v1671_v33  ;;  %v1735_v38 = vsel %vm1479_vm0, %v1330_v14, %v1607_v29  ;;  %vm1484_vm2 = vcmp.ge.f32.partialorder %v3036_v31, 0.0  ;;  %v1612_v39 = vmul.f32 0.2, %v3036_v31  ;;  %v3037_v41 = vpop.f32.mrb[62].mxu1 }
 0x163   : > { %2378 = vst.msk [vmem:[%s3302_s24 + $0x1ec] sm:$0xf] %vm2254_vm3, %v2832_v32  ;;  %v2830_v42 = vpack.c.bf16 %v1735_v38, %v1735_v38  ;;  %v1676_v43 = vsel %vm1420_vm1, %v2972_v30, %v1548_v34  ;;  %vm1418_vm4 = vcmp.ge.f32.partialorder %v1087_v35, 0.0  ;;  %v1546_v44 = vmul.f32 0.2, %v1087_v35  ;;  %v1090_v45 = vpop.f32.mrb[63].mxu0 }
 0x164   : > { %v1346_v46 = vpop.f32.mrb[63].mxu1  ;;  %2312 = vst.msk [vmem:[%s3302_s24 + $0xe4] sm:$0xf] %vm2254_vm3, %v2766_v37  ;;  %v2771_v47 = vpack.c.bf16 %v1676_v43, %v1676_v43  ;;  %v1740_v48 = vsel %vm1484_vm2, %v3036_v31, %v1612_v39  ;;  %vm1482_vm5 = vcmp.ge.f32.partialorder %v1343_v36, 0.0  ;;  %v1610_v49 = vmul.f32 0.2, %v1343_v36 }
 0x165   : > { %2376 = vst.msk [vmem:[%s3302_s24 + $0x1e4] sm:$0xf] %vm2254_vm3, %v2830_v42  ;;  %v2835_v50 = vpack.c.bf16 %v1740_v48, %v1740_v48  ;;  %v1674_v51 = vsel %vm1418_vm4, %v1087_v35, %v1546_v44  ;;  %vm1421_vm6 = vcmp.ge.f32.partialorder %v2973_v40, 0.0  ;;  %v1549_v52 = vmul.f32 0.2, %v2973_v40 }
 0x166   : > { %2317 = vst.msk [vmem:[%s3302_s24 + $0xf8] sm:$0xf] %vm2254_vm3, %v2771_v47  ;;  %v2769_v53 = vpack.c.bf16 %v1674_v51, %v1674_v51  ;;  %v1738_v54 = vsel %vm1482_vm5, %v1343_v36, %v1610_v49  ;;  %vm1485_vm7 = vcmp.ge.f32.partialorder %v3037_v41, 0.0  ;;  %v1613_v55 = vmul.f32 0.2, %v3037_v41 }
 0x167   : > { %2381 = vst.msk [vmem:[%s3302_s24 + $0x1f8] sm:$0xf] %vm2254_vm3, %v2835_v50  ;;  %v2833_v56 = vpack.c.bf16 %v1738_v54, %v1738_v54  ;;  %v1677_v57 = vsel %vm1421_vm6, %v2973_v40, %v1549_v52  ;;  %vm1419_vm8 = vcmp.ge.f32.partialorder %v1090_v45, 0.0  ;;  %v1547_v58 = vmul.f32 0.2, %v1090_v45 }
 0x168   : > { %2315 = vst.msk [vmem:[%s3302_s24 + $0xf0] sm:$0xf] %vm2254_vm3, %v2769_v53  ;;  %v2772_v59 = vpack.c.bf16 %v1677_v57, %v1677_v57  ;;  %v1741_v60 = vsel %vm1485_vm7, %v3037_v41, %v1613_v55  ;;  %vm1483_vm9 = vcmp.ge.f32.partialorder %v1346_v46, 0.0  ;;  %v1611_v61 = vmul.f32 0.2, %v1346_v46 }
 0x169   : > { %2379 = vst.msk [vmem:[%s3302_s24 + $0x1f0] sm:$0xf] %vm2254_vm3, %v2833_v56  ;;  %v2836_v62 = vpack.c.bf16 %v1741_v60, %v1741_v60  ;;  %v1675_v63 = vsel %vm1419_vm8, %v1090_v45, %v1547_v58 }
 0x16a   : > { %2318 = vst.msk [vmem:[%s3302_s24 + $0xfc] sm:$0xf] %vm2254_vm3, %v2772_v59  ;;  %v2770_v0 = vpack.c.bf16 %v1675_v63, %v1675_v63  ;;  %v1739_v1 = vsel %vm1483_vm9, %v1346_v46, %v1611_v61 }
 0x16b   : > { %2382 = vst.msk [vmem:[%s3302_s24 + $0x1fc] sm:$0xf] %vm2254_vm3, %v2836_v62  ;;  %v2834_v2 = vpack.c.bf16 %v1739_v1, %v1739_v1 }
 0x16c   : > { %2316 = vst.msk [vmem:[%s3302_s24 + $0xf4] sm:$0xf] %vm2254_vm3, %v2770_v0 }
 0x16d   : > { %2380 = vst.msk [vmem:[%s3302_s24 + $0x1f4] sm:$0xf] %vm2254_vm3, %v2834_v2 }
 0x16e PF: > { %s12_s9 = sadd.s32 1, %s3125_s9  }
 0x16f   : > { %p9_p4 = scmp.ge.s32.totalorder %s12_s9, 4  }
 0x171   :  { %11 = sbr.rel (!%p9_p4) target bundleno = 1 (0x1), region = 58 }

// kernel: discriminator_forward.5
= control target key start
LH: loop header
LB: loop body
LE: loop exit
PB: predicated region body
PF: predicated region fallthrough
CT: control target
= control target key end

     0   :  { %s1738_s15 = smov 0   ;;  %s2820_s0 = inlined_call_operand.vmem [shape: bf16[512,256], index: 0, kind: input, shape index: {}]   ;;  %s2821_s1 = inlined_call_operand.vmem [shape: bf16[256,32], index: 1, kind: input, shape index: {}]   ;;  %s2822_s2 = inlined_call_operand.vmem [shape: f32[256,32], index: 2, kind: input, shape index: {}]   ;;  %s2823_s3 = inlined_call_operand.vmem [shape: f32[256,32], index: 3, kind: input, shape index: {}]   ;;  %s2824_s4 = inlined_call_operand.vmem [shape: bf16[512,32], index: 4, kind: output, shape index: {}]  }
   0x1 LB: > { %s1374_s16 = sadd.s32 4294967295, %s1711_s15   ;;  %p1378_p0 = scmp.ge.s32.totalorder %s1711_s15, 1  ;;  %s1711_s15 = sphi %s1738_s15, %s14_s15  }
   0x2   : > { %p164_p1 = scmp.lt.s32.totalorder %s1711_s15, 3 }
   0x4   : > { %p165_p2 = pnand %p1378_p0, %p164_p1 }
   0x5   : > { %v1639_v0 = vld [vmem:[%s2821_s1 + $0x40] sm:$0xff] (!%p165_p2)   ;;  %s1379_s19 = sshll.u32 (!%p165_p2), %s1374_s16, 5  ;;  %v1641_v2 = vld [vmem:[%s2821_s1 + $0x48] sm:$0xff] (!%p165_p2)   ;;  %v1643_v4 = vld [vmem:[%s2821_s1 + $0x50] sm:$0xff] (!%p165_p2)   ;;  %vm750_vm0 = vcmask (!%p165_p2), 261120  }
   0x6   : > { %168 = sbr.rel (%p165_p2) target bundleno = 907 (0x38b), region = 36  ;;  %v1640_v1 = vld [vmem:[%s2821_s1] sm:$0xff] (!%p165_p2)   ;;  %1499 = vmatprep.subr.bf16.mxu0 (!%p165_p2), %v1639_v0  ;;  %1611 = vmatprep.subr.bf16.mxu1 (!%p165_p2), %v1639_v0  ;;  %v1642_v3 = vld [vmem:[%s2821_s1 + $0x8] sm:$0xff] (!%p165_p2)   ;;  %p192_p3 = scmp.lt.s32.totalorder (!%p165_p2), %s1379_s19, 63  ;;  %v1644_v5 = vld [vmem:[%s2821_s1 + $0x10] sm:$0xff] (!%p165_p2)  }
   0x7   : > { %1500 = vmatpush3.bf16.msra.mxu0 (!%p165_p2), %v1640_v1  ;;  %1619 = vmatpush3.bf16.msra.mxu1 (!%p165_p2), %v1640_v1  ;;  %v1645_v6 = vld [vmem:[%s2821_s1 + $0x58] sm:$0xff] (!%p165_p2)   ;;  %v1647_v8 = vld [vmem:[%s2821_s1 + $0x60] sm:$0xff] (!%p165_p2)   ;;  %v1649_v10 = vld [vmem:[%s2821_s1 + $0x68] sm:$0xff] (!%p165_p2)  }
   0x8   : > { %1501 = vmatprep.subr.bf16.mxu0 (!%p165_p2), %v1641_v2  ;;  %1612 = vmatprep.subr.bf16.mxu1 (!%p165_p2), %v1641_v2  ;;  %v1646_v7 = vld [vmem:[%s2821_s1 + $0x18] sm:$0xff] (!%p165_p2)   ;;  %v1648_v9 = vld [vmem:[%s2821_s1 + $0x20] sm:$0xff] (!%p165_p2)   ;;  %v1650_v12 = vld [vmem:[%s2821_s1 + $0x28] sm:$0xff] (!%p165_p2)  }
   0x9   : > { %v1651_v13 = vld [vmem:[%s2821_s1 + $0x70] sm:$0xff] (!%p165_p2)   ;;  %v1653_v16 = vld [vmem:[%s2821_s1 + $0x78] sm:$0xff] (!%p165_p2)  }
   0xa   : > { %v1652_v15 = vld [vmem:[%s2821_s1 + $0x30] sm:$0xff] (!%p165_p2)   ;;  %v1654_v17 = vld [vmem:[%s2821_s1 + $0x38] sm:$0xff] (!%p165_p2)  }
   0xb   : > { %1502 = vmatpush3.bf16.msra.mxu0 (!%p165_p2), %v1642_v3  ;;  %1620 = vmatpush3.bf16.msra.mxu1 (!%p165_p2), %v1642_v3 }
   0xc   : > { %1503 = vmatprep.subr.bf16.mxu0 (!%p165_p2), %v1643_v4  ;;  %1613 = vmatprep.subr.bf16.mxu1 (!%p165_p2), %v1643_v4 }
   0xd   : > { %s2840_s19 = smov (!%p192_p3, %s1379_s19), 63 }
   0xe   : > { %s1466_s8 = sshll.u32 %s2840_s19, 3  ;;  %s1383_s14 = sshll.u32 %s2840_s19, 2 }
   0xf   : > { %1504 = vmatpush3.bf16.msra.mxu0 %v1644_v5  ;;  %1621 = vmatpush3.bf16.msra.mxu1 %v1644_v5  ;;  %s1779_s13 = scalar_lea.vmem %s2820_s0, %s1466_s8  ;;  %s2685_s17 = scalar_lea.vmem %s2824_s4, %s1383_s14 }
  0x10   : > { %1505 = vmatprep.subr.bf16.mxu0 %v1645_v6  ;;  %1614 = vmatprep.subr.bf16.mxu1 %v1645_v6  ;;  %v1657_v11 = vld [vmem:[%s1779_s13 + $0x4] ss:$8 sps:$4 sm:$0xff]   ;;  %v1655_v18 = vld [vmem:[%s1779_s13] ss:$8 sps:$4 sm:$0xff]   ;;  %v1658_v19 = vld [vmem:[%s1779_s13 + $0x14] ss:$8 sps:$4 sm:$0xff]  }
  0x11   : > { %557 = vmatprep.mubr.bf16.mxu0 %v1657_v11  ;;  %v1669_v14 = vld [vmem:[%s1779_s13 + $0x84] ss:$8 sps:$4 sm:$0xff]   ;;  %v1667_v20 = vld [vmem:[%s1779_s13 + $0x80] ss:$8 sps:$4 sm:$0xff]   ;;  %v1673_v21 = vld [vmem:[%s1779_s13 + $0x94] ss:$8 sps:$4 sm:$0xff]  }
  0x12   : > { %621 = vmatprep.mubr.bf16.mxu1 %v1669_v14  ;;  %v1660_v22 = vld [vmem:[%s1779_s13 + $0x10] ss:$8 sps:$4 sm:$0xff]   ;;  %v1661_v23 = vld [vmem:[%s1779_s13 + $0x24] ss:$8 sps:$4 sm:$0xff]   ;;  %v1663_v26 = vld [vmem:[%s1779_s13 + $0x20] ss:$8 sps:$4 sm:$0xff]  }
  0x13   : > { %1506 = vmatpush3.bf16.msra.mxu0 %v1646_v7  ;;  %1622 = vmatpush3.bf16.msra.mxu1 %v1646_v7  ;;  %v1675_v24 = vld [vmem:[%s1779_s13 + $0x90] ss:$8 sps:$4 sm:$0xff]   ;;  %v1679_v25 = vld [vmem:[%s1779_s13 + $0xa4] ss:$8 sps:$4 sm:$0xff]   ;;  %v1664_v27 = vld [vmem:[%s1779_s13 + $0x34] ss:$8 sps:$4 sm:$0xff]  }
  0x14   : > { %1507 = vmatprep.subr.bf16.mxu0 %v1647_v8  ;;  %1615 = vmatprep.subr.bf16.mxu1 %v1647_v8  ;;  %v1681_v28 = vld [vmem:[%s1779_s13 + $0xa0] ss:$8 sps:$4 sm:$0xff]   ;;  %v1685_v29 = vld [vmem:[%s1779_s13 + $0xb4] ss:$8 sps:$4 sm:$0xff]   ;;  %v1666_v30 = vld [vmem:[%s1779_s13 + $0x30] ss:$8 sps:$4 sm:$0xff]  }
  0x15   : > { %v1670_v31 = vld [vmem:[%s1779_s13 + $0x44] ss:$8 sps:$4 sm:$0xff]   ;;  %v1687_v32 = vld [vmem:[%s1779_s13 + $0xb0] ss:$8 sps:$4 sm:$0xff]   ;;  %v1672_v34 = vld [vmem:[%s1779_s13 + $0x40] ss:$8 sps:$4 sm:$0xff]  }
  0x16   : > { %v1691_v33 = vld [vmem:[%s1779_s13 + $0xc4] ss:$8 sps:$4 sm:$0xff]   ;;  %v1676_v35 = vld [vmem:[%s1779_s13 + $0x54] ss:$8 sps:$4 sm:$0xff]   ;;  %v1693_v36 = vld [vmem:[%s1779_s13 + $0xc0] ss:$8 sps:$4 sm:$0xff]  }
  0x17   : > { %1508 = vmatpush3.bf16.msra.mxu0 %v1648_v9  ;;  %1623 = vmatpush3.bf16.msra.mxu1 %v1648_v9  ;;  %v1694_v37 = vld [vmem:[%s1779_s13 + $0xd4] ss:$8 sps:$4 sm:$0xff]   ;;  %v1678_v38 = vld [vmem:[%s1779_s13 + $0x50] ss:$8 sps:$4 sm:$0xff]   ;;  %v1682_v39 = vld [vmem:[%s1779_s13 + $0x64] ss:$8 sps:$4 sm:$0xff]  }
  0x18   : > { %1509 = vmatprep.subr.bf16.mxu0 %v1649_v10  ;;  %1616 = vmatprep.subr.bf16.mxu1 %v1649_v10  ;;  %v1696_v40 = vld [vmem:[%s1779_s13 + $0xd0] ss:$8 sps:$4 sm:$0xff]   ;;  %v1697_v41 = vld [vmem:[%s1779_s13 + $0xe4] ss:$8 sps:$4 sm:$0xff]   ;;  %v1684_v42 = vld [vmem:[%s1779_s13 + $0x60] ss:$8 sps:$4 sm:$0xff]  }
  0x19   : > { %v1688_v43 = vld [vmem:[%s1779_s13 + $0x74] ss:$8 sps:$4 sm:$0xff]   ;;  %v1699_v44 = vld [vmem:[%s1779_s13 + $0xe0] ss:$8 sps:$4 sm:$0xff]   ;;  %v1690_v46 = vld [vmem:[%s1779_s13 + $0x70] ss:$8 sps:$4 sm:$0xff]  }
  0x1a   : > { %v1700_v45 = vld [vmem:[%s1779_s13 + $0xf4] ss:$8 sps:$4 sm:$0xff]   ;;  %v1702_v47 = vld [vmem:[%s1779_s13 + $0xf0] ss:$8 sps:$4 sm:$0xff]  }
  0x1b   : > { %1510 = vmatpush3.bf16.msra.mxu0 %v1650_v12  ;;  %1624 = vmatpush3.bf16.msra.mxu1 %v1650_v12 }
  0x1c   : > { %1511 = vmatprep.subr.bf16.mxu0 %v1651_v13  ;;  %1617 = vmatprep.subr.bf16.mxu1 %v1651_v13 }
  0x1f   : > { %1512 = vmatpush3.bf16.msra.mxu0 %v1652_v15  ;;  %1625 = vmatpush3.bf16.msra.mxu1 %v1652_v15 }
  0x20   : > { %1513 = vmatprep.subr.bf16.mxu0 %v1653_v16  ;;  %1618 = vmatprep.subr.bf16.mxu1 %v1653_v16 }
  0x23   : > { %1514 = vmatpush3.bf16.msra.mxu0 %v1654_v17  ;;  %1626 = vmatpush3.bf16.msra.mxu1 %v1654_v17 }
  0x26   : > { %558 = vmatmul.mubr.bf16.vlgmr.msra.gmra.mrb[0].mxu0 %v1655_v18  ;;  %622 = vmatmul.mubr.bf16.vlgmr.msra.gmra.mrb[0].mxu1 %v1667_v20 }
  0x27   : > { %565 = vmatprep.mubr.bf16.mxu0 %v1658_v19  ;;  %629 = vmatprep.mubr.bf16.mxu1 %v1673_v21 }
  0x2e   : > { %566 = vmatmul.mubr.bf16.gmra.mrb[4].mxu0 %v1660_v22  ;;  %630 = vmatmul.mubr.bf16.gmra.mrb[4].mxu1 %v1675_v24 }
  0x2f   : > { %573 = vmatprep.mubr.bf16.mxu0 %v1661_v23  ;;  %637 = vmatprep.mubr.bf16.mxu1 %v1679_v25 }
  0x36   : > { %574 = vmatmul.mubr.bf16.gmra.mrb[8].mxu0 %v1663_v26  ;;  %638 = vmatmul.mubr.bf16.gmra.mrb[8].mxu1 %v1681_v28 }
  0x37   : > { %581 = vmatprep.mubr.bf16.mxu0 %v1664_v27  ;;  %645 = vmatprep.mubr.bf16.mxu1 %v1685_v29 }
  0x3e   : > { %582 = vmatmul.mubr.bf16.gmra.mrb[12].mxu0 %v1666_v30  ;;  %646 = vmatmul.mubr.bf16.gmra.mrb[12].mxu1 %v1687_v32 }
  0x3f   : > { %589 = vmatprep.mubr.bf16.mxu0 %v1670_v31  ;;  %653 = vmatprep.mubr.bf16.mxu1 %v1691_v33 }
  0x46   : > { %590 = vmatmul.mubr.bf16.gmra.mrb[16].mxu0 %v1672_v34  ;;  %654 = vmatmul.mubr.bf16.gmra.mrb[16].mxu1 %v1693_v36 }
  0x47   : > { %597 = vmatprep.mubr.bf16.mxu0 %v1676_v35  ;;  %661 = vmatprep.mubr.bf16.mxu1 %v1694_v37 }
  0x4e   : > { %598 = vmatmul.mubr.bf16.gmra.mrb[20].mxu0 %v1678_v38  ;;  %662 = vmatmul.mubr.bf16.gmra.mrb[20].mxu1 %v1696_v40 }
  0x4f   : > { %605 = vmatprep.mubr.bf16.mxu0 %v1682_v39  ;;  %669 = vmatprep.mubr.bf16.mxu1 %v1697_v41 }
  0x56   : > { %606 = vmatmul.mubr.bf16.gmra.mrb[24].mxu0 %v1684_v42  ;;  %670 = vmatmul.mubr.bf16.gmra.mrb[24].mxu1 %v1699_v44 }
  0x57   : > { %613 = vmatprep.mubr.bf16.mxu0 %v1688_v43  ;;  %677 = vmatprep.mubr.bf16.mxu1 %v1700_v45 }
  0x5e   : > { %614 = vmatmul.mubr.bf16.gmra.mrb[28].mxu0 %v1690_v46  ;;  %678 = vmatmul.mubr.bf16.gmra.mrb[28].mxu1 %v1702_v47 }
  0xf9   : > { %v1515_v48 = vpop.f32.mrb[0].mxu0  ;;  %v1563_v50 = vpop.f32.mrb[0].mxu1 }
  0xfa   : > { %v1516_v49 = vpop.f32.mrb[1].mxu0  ;;  %v1564_v53 = vpop.f32.mrb[1].mxu1 }
  0xfb   : > { %v1834_v51 = vadd.f32 %v1516_v49, %v1515_v48  ;;  %v1518_v52 = vpop.f32.mrb[2].mxu0  ;;  %v1836_v55 = vadd.f32 %v1564_v53, %v1563_v50  ;;  %v1566_v56 = vpop.f32.mrb[2].mxu1 }
  0xfc   : > { %v1519_v54 = vpop.f32.mrb[3].mxu0  ;;  %v1567_v58 = vpop.f32.mrb[3].mxu1 }
  0xfd   : > { %v1838_v57 = vadd.f32 %v1519_v54, %v1518_v52  ;;  %v1840_v59 = vadd.f32 %v1567_v58, %v1566_v56  ;;  %v751_v21 = vsel %vm750_vm0, %v1834_v51, 0.0 }
  0xff   : > { %v752_v17 = vsel %vm750_vm0, %v1838_v57, 0.0 }
 0x100   : > { %v753_v23 = vadd.f32 %v752_v17, %v751_v21 }
 0x101   : > { %v1521_v60 = vpop.f32.mrb[4].mxu0  ;;  %v1569_v62 = vpop.f32.mrb[4].mxu1 }
 0x102   : > { %v1522_v61 = vpop.f32.mrb[5].mxu0  ;;  %v1570_v1 = vpop.f32.mrb[5].mxu1 }
 0x103   : > { %v1842_v63 = vadd.f32 %v1522_v61, %v1521_v60  ;;  %v1524_v0 = vpop.f32.mrb[6].mxu0  ;;  %v1844_v3 = vadd.f32 %v1570_v1, %v1569_v62  ;;  %v1572_v4 = vpop.f32.mrb[6].mxu1 }
 0x104   : > { %v1525_v2 = vpop.f32.mrb[7].mxu0  ;;  %v1573_v6 = vpop.f32.mrb[7].mxu1 }
 0x105   : > { %v1846_v5 = vadd.f32 %v1525_v2, %v1524_v0  ;;  %v1848_v7 = vadd.f32 %v1573_v6, %v1572_v4  ;;  %v754_v22 = vsel %vm750_vm0, %v1842_v63, 0.0 }
 0x106   : > { %v755_v25 = vadd.f32 %v754_v22, %v753_v23 }
 0x107   : > { %v756_v28 = vsel %vm750_vm0, %v1846_v5, 0.0 }
 0x108   : > { %v757_v38 = vadd.f32 %v756_v28, %v755_v25 }
 0x109   : > { %v1527_v8 = vpop.f32.mrb[8].mxu0  ;;  %v1575_v10 = vpop.f32.mrb[8].mxu1 }
 0x10a   : > { %v1528_v9 = vpop.f32.mrb[9].mxu0  ;;  %v1576_v13 = vpop.f32.mrb[9].mxu1 }
 0x10b   : > { %v1850_v11 = vadd.f32 %v1528_v9, %v1527_v8  ;;  %v1530_v12 = vpop.f32.mrb[10].mxu0  ;;  %v1852_v15 = vadd.f32 %v1576_v13, %v1575_v10  ;;  %v1578_v16 = vpop.f32.mrb[10].mxu1 }
 0x10c   : > { %v1531_v14 = vpop.f32.mrb[11].mxu0  ;;  %v1579_v19 = vpop.f32.mrb[11].mxu1 }
 0x10d   : > { %v1856_v18 = vadd.f32 %v1531_v14, %v1530_v12  ;;  %v1858_v20 = vadd.f32 %v1579_v19, %v1578_v16  ;;  %v758_v35 = vsel %vm750_vm0, %v1850_v11, 0.0 }
 0x10e   : > { %v759_v40 = vadd.f32 %v758_v35, %v757_v38 }
 0x10f   : > { %v760_v41 = vsel %vm750_vm0, %v1856_v18, 0.0 }
 0x110   : > { %v761_v49 = vadd.f32 %v760_v41, %v759_v40 }
 0x111   : > { %v1533_v24 = vpop.f32.mrb[12].mxu0  ;;  %v1581_v27 = vpop.f32.mrb[12].mxu1 }
 0x112   : > { %v1534_v26 = vpop.f32.mrb[13].mxu0  ;;  %v1582_v31 = vpop.f32.mrb[13].mxu1 }
 0x113   : > { %v1866_v29 = vadd.f32 %v1534_v26, %v1533_v24  ;;  %v1536_v30 = vpop.f32.mrb[14].mxu0  ;;  %v1868_v33 = vadd.f32 %v1582_v31, %v1581_v27  ;;  %v1584_v34 = vpop.f32.mrb[14].mxu1 }
 0x114   : > { %v1537_v32 = vpop.f32.mrb[15].mxu0  ;;  %v1585_v37 = vpop.f32.mrb[15].mxu1 }
 0x115   : > { %v1872_v36 = vadd.f32 %v1537_v32, %v1536_v30  ;;  %v1874_v39 = vadd.f32 %v1585_v37, %v1584_v34  ;;  %v762_v45 = vsel %vm750_vm0, %v1866_v29, 0.0 }
 0x116   : > { %v763_v58 = vadd.f32 %v762_v45, %v761_v49 }
 0x117   : > { %v764_v61 = vsel %vm750_vm0, %v1872_v36, 0.0 }
 0x118   : > { %v765_v1 = vadd.f32 %v764_v61, %v763_v58 }
 0x119   : > { %v1539_v42 = vpop.f32.mrb[16].mxu0  ;;  %v1587_v44 = vpop.f32.mrb[16].mxu1 }
 0x11a   : > { %v1540_v43 = vpop.f32.mrb[17].mxu0  ;;  %v1588_v48 = vpop.f32.mrb[17].mxu1 }
 0x11b   : > { %v1880_v46 = vadd.f32 %v1540_v43, %v1539_v42  ;;  %v1542_v47 = vpop.f32.mrb[18].mxu0  ;;  %v1882_v52 = vadd.f32 %v1588_v48, %v1587_v44  ;;  %v1590_v53 = vpop.f32.mrb[18].mxu1 }
 0x11c   : > { %v1543_v50 = vpop.f32.mrb[19].mxu0  ;;  %v1591_v56 = vpop.f32.mrb[19].mxu1 }
 0x11d   : > { %v1884_v54 = vadd.f32 %v1543_v50, %v1542_v47  ;;  %v1886_v60 = vadd.f32 %v1591_v56, %v1590_v53  ;;  %v766_v62 = vsel %vm750_vm0, %v1880_v46, 0.0 }
 0x11e   : > { %v767_v10 = vadd.f32 %v766_v62, %v765_v1 }
 0x11f   : > { %v768_v16 = vsel %vm750_vm0, %v1884_v54, 0.0 }
 0x120   : > { %v769_v23 = vadd.f32 %v768_v16, %v767_v10 }
 0x121   : > { %v1545_v0 = vpop.f32.mrb[20].mxu0  ;;  %v1593_v4 = vpop.f32.mrb[20].mxu1 }
 0x122   : > { %v1546_v2 = vpop.f32.mrb[21].mxu0  ;;  %v1594_v9 = vpop.f32.mrb[21].mxu1 }
 0x123   : > { %v1892_v6 = vadd.f32 %v1546_v2, %v1545_v0  ;;  %v1548_v8 = vpop.f32.mrb[22].mxu0  ;;  %v1894_v13 = vadd.f32 %v1594_v9, %v1593_v4  ;;  %v1596_v14 = vpop.f32.mrb[22].mxu1 }
 0x124   : > { %v1549_v12 = vpop.f32.mrb[23].mxu0  ;;  %v1597_v19 = vpop.f32.mrb[23].mxu1 }
 0x125   : > { %v1898_v17 = vadd.f32 %v1549_v12, %v1548_v8  ;;  %v1900_v21 = vadd.f32 %v1597_v19, %v1596_v14  ;;  %v770_v22 = vsel %vm750_vm0, %v1892_v6, 0.0  ;;  %v782_v14 = vsel %vm750_vm0, %v1836_v55, 0.0 }
 0x126   : > { %v771_v25 = vadd.f32 %v770_v22, %v769_v23  ;;  %v784_v19 = vsel %vm750_vm0, %v1840_v59, 0.0  ;;  %v786_v23 = vsel %vm750_vm0, %v1844_v3, 0.0 }
 0x127   : > { %v772_v28 = vsel %vm750_vm0, %v1898_v17, 0.0 }
 0x128   : > { %v773_v42 = vadd.f32 %v772_v28, %v771_v25  ;;  %v788_v25 = vsel %vm750_vm0, %v1848_v7, 0.0 }
 0x129   : > { %v1551_v24 = vpop.f32.mrb[24].mxu0  ;;  %v1599_v27 = vpop.f32.mrb[24].mxu1 }
 0x12a   : > { %v1552_v26 = vpop.f32.mrb[25].mxu0  ;;  %v1600_v32 = vpop.f32.mrb[25].mxu1 }
 0x12b   : > { %v1906_v30 = vadd.f32 %v1552_v26, %v1551_v24  ;;  %v1554_v31 = vpop.f32.mrb[26].mxu0  ;;  %v1908_v35 = vadd.f32 %v1600_v32, %v1599_v27  ;;  %v1602_v37 = vpop.f32.mrb[26].mxu1  ;;  %v790_v27 = vsel %vm750_vm0, %v1852_v15, 0.0 }
 0x12c   : > { %v1555_v34 = vpop.f32.mrb[27].mxu0  ;;  %v1603_v41 = vpop.f32.mrb[27].mxu1 }
 0x12d   : > { %v774_v38 = vsel %vm750_vm0, %v1906_v30, 0.0  ;;  %v1912_v40 = vadd.f32 %v1555_v34, %v1554_v31  ;;  %v1914_v43 = vadd.f32 %v1603_v41, %v1602_v37  ;;  %v792_v31 = vsel %vm750_vm0, %v1858_v20, 0.0 }
 0x12e   : > { %v775_v44 = vadd.f32 %v774_v38, %v773_v42  ;;  %v794_v34 = vsel %vm750_vm0, %v1868_v33, 0.0  ;;  %v796_v38 = vsel %vm750_vm0, %v1874_v39, 0.0  ;;  %v798_v42 = vsel %vm750_vm0, %v1882_v52, 0.0 }
 0x12f   : > { %v776_v45 = vsel %vm750_vm0, %v1912_v40, 0.0 }
 0x130   : > { %v777_v58 = vadd.f32 %v776_v45, %v775_v44  ;;  %v800_v45 = vsel %vm750_vm0, %v1886_v60, 0.0 }
 0x131   : > { %v1557_v47 = vpop.f32.mrb[28].mxu0  ;;  %v1605_v49 = vpop.f32.mrb[28].mxu1 }
 0x132   : > { %v1558_v48 = vpop.f32.mrb[29].mxu0  ;;  %v1606_v56 = vpop.f32.mrb[29].mxu1 }
 0x133   : > { %v1918_v50 = vadd.f32 %v1558_v48, %v1557_v47  ;;  %v1560_v53 = vpop.f32.mrb[30].mxu0  ;;  %v1920_v62 = vadd.f32 %v1606_v56, %v1605_v49  ;;  %v1608_v0 = vpop.f32.mrb[30].mxu1  ;;  %v802_v48 = vsel %vm750_vm0, %v1894_v13, 0.0 }
 0x134   : > { %v1561_v61 = vpop.f32.mrb[31].mxu0  ;;  %v1609_v4 = vpop.f32.mrb[31].mxu1 }
 0x135   : > { %v778_v1 = vsel %vm750_vm0, %v1918_v50, 0.0  ;;  %v1924_v2 = vadd.f32 %v1561_v61, %v1560_v53  ;;  %v1926_v9 = vadd.f32 %v1609_v4, %v1608_v0  ;;  %v804_v53 = vsel %vm750_vm0, %v1900_v21, 0.0 }
 0x136   : > { %v779_v8 = vadd.f32 %v778_v1, %v777_v58  ;;  %v806_v58 = vsel %vm750_vm0, %v1908_v35, 0.0  ;;  %v808_v0 = vsel %vm750_vm0, %v1914_v43, 0.0  ;;  %v810_v1 = vsel %vm750_vm0, %v1920_v62, 0.0 }
 0x137   : > { %v780_v10 = vsel %vm750_vm0, %v1924_v2, 0.0 }
 0x138   : > { %v781_v12 = vadd.f32 %v780_v10, %v779_v8  ;;  %v812_v10 = vsel %vm750_vm0, %v1926_v9, 0.0 }
 0x13a   : > { %v783_v16 = vadd.f32 %v782_v14, %v781_v12 }
 0x13c   : > { %v785_v22 = vadd.f32 %v784_v19, %v783_v16 }
 0x13e   : > { %v787_v24 = vadd.f32 %v786_v23, %v785_v22 }
 0x140   : > { %v789_v26 = vadd.f32 %v788_v25, %v787_v24 }
 0x142   : > { %v791_v28 = vadd.f32 %v790_v27, %v789_v26 }
 0x144   : > { %v793_v32 = vadd.f32 %v792_v31, %v791_v28 }
 0x146   : > { %v795_v37 = vadd.f32 %v794_v34, %v793_v32 }
 0x148   : > { %v797_v41 = vadd.f32 %v796_v38, %v795_v37 }
 0x14a   : > { %v799_v44 = vadd.f32 %v798_v42, %v797_v41 }
 0x14c   : > { %v801_v47 = vadd.f32 %v800_v45, %v799_v44 }
 0x14e   : > { %v803_v49 = vadd.f32 %v802_v48, %v801_v47 }
 0x150   : > { %v805_v56 = vadd.f32 %v804_v53, %v803_v49 }
 0x152   : > { %v807_v61 = vadd.f32 %v806_v58, %v805_v56 }
 0x154   : > { %v809_v4 = vadd.f32 %v808_v0, %v807_v61 }
 0x156   : > { %v811_v8 = vadd.f32 %v810_v1, %v809_v4 }
 0x158   : > { %v813_v12 = vadd.f32 %v812_v10, %v811_v8 }
 0x15a   : > { %814 = vadd.xlane.f32.xlu0 %v813_v12 }
 0x1e7   : > { %v815_v14 = vpop.xlane.xlu0 %814 }
 0x1e8   : > { %v816_v16 = vrot.slane %v815_v14, 4 }
 0x1ea   : > { %v817_v19 = vadd.f32 %v816_v16, %v815_v14 }
 0x1ec   : > { %v818_v22 = vrot.slane %v817_v19, 2 }
 0x1ee   : > { %v819_v23 = vadd.f32 %v818_v22, %v817_v19 }
 0x1f0   : > { %v820_v24 = vrot.slane %v819_v23, 1 }
 0x1f2   : > { %v821_v25 = vadd.f32 %v820_v24, %v819_v23 }
 0x1f4   : > { %1627 = vpush %v821_v25 }
 0x225   : > { %s1628_s30 = spop %1627 }
 0x226   : > { %v823_v26 = vstv %s1628_s30 }
 0x227   : > { %v1962_v27 = vmul.f32 0.00012207031, %v823_v26 }
 0x229   : > { %v1966_v28 = vsub.f32 %v1834_v51, %v1962_v27  ;;  %v1970_v31 = vsub.f32 %v1838_v57, %v1962_v27  ;;  %v1974_v32 = vsub.f32 %v1842_v63, %v1962_v27  ;;  %v1978_v34 = vsub.f32 %v1846_v5, %v1962_v27 }
 0x22a   : > { %v1986_v51 = vsub.f32 %v1850_v11, %v1962_v27  ;;  %v1992_v63 = vsub.f32 %v1856_v18, %v1962_v27  ;;  %v2000_v45 = vsub.f32 %v1866_v29, %v1962_v27  ;;  %v2007_v18 = vsub.f32 %v1872_v36, %v1962_v27 }
 0x22b   : > { %v857_v37 = vmul.f32 %v1966_v28, %v1966_v28  ;;  %v858_v38 = vmul.f32 %v1970_v31, %v1970_v31  ;;  %v859_v57 = vmul.f32 %v1974_v32, %v1974_v32  ;;  %v860_v5 = vmul.f32 %v1978_v34, %v1978_v34 }
 0x22c   : > { %v861_v11 = vmul.f32 %v1986_v51, %v1986_v51  ;;  %v862_v49 = vmul.f32 %v1992_v63, %v1992_v63  ;;  %v2014_v29 = vsub.f32 %v1880_v46, %v1962_v27  ;;  %v863_v58 = vmul.f32 %v2000_v45, %v2000_v45 }
 0x22d   : > { %v889_v41 = vsel %vm750_vm0, %v857_v37, 0.0  ;;  %v890_v42 = vsel %vm750_vm0, %v858_v38, 0.0  ;;  %v892_v47 = vsel %vm750_vm0, %v859_v57, 0.0  ;;  %v894_v53 = vsel %vm750_vm0, %v860_v5, 0.0 }
 0x22e   : > { %v891_v44 = vadd.f32 %v890_v42, %v889_v41  ;;  %v896_v61 = vsel %vm750_vm0, %v861_v11, 0.0  ;;  %v2021_v36 = vsub.f32 %v1884_v54, %v1962_v27  ;;  %v864_v1 = vmul.f32 %v2007_v18, %v2007_v18 }
 0x22f   : > { %v898_v4 = vsel %vm750_vm0, %v862_v49, 0.0  ;;  %v2028_v46 = vsub.f32 %v1892_v6, %v1962_v27  ;;  %v865_v10 = vmul.f32 %v2014_v29, %v2014_v29  ;;  %v900_v12 = vsel %vm750_vm0, %v863_v58, 0.0 }
 0x230   : > { %v893_v48 = vadd.f32 %v892_v47, %v891_v44  ;;  %v2035_v54 = vsub.f32 %v1898_v17, %v1962_v27  ;;  %v866_v16 = vmul.f32 %v2021_v36, %v2021_v36  ;;  %v902_v19 = vsel %vm750_vm0, %v864_v1, 0.0 }
 0x231   : > { %v2042_v6 = vsub.f32 %v1906_v30, %v1962_v27  ;;  %v867_v23 = vmul.f32 %v2028_v46, %v2028_v46  ;;  %v904_v24 = vsel %vm750_vm0, %v865_v10, 0.0  ;;  %v2049_v17 = vsub.f32 %v1912_v40, %v1962_v27 }
 0x232   : > { %v895_v56 = vadd.f32 %v894_v53, %v893_v48  ;;  %v868_v26 = vmul.f32 %v2035_v54, %v2035_v54  ;;  %v906_v37 = vsel %vm750_vm0, %v866_v16, 0.0  ;;  %v2056_v30 = vsub.f32 %v1918_v50, %v1962_v27 }
 0x233   : > { %v869_v57 = vmul.f32 %v2042_v6, %v2042_v6  ;;  %v908_v5 = vsel %vm750_vm0, %v867_v23, 0.0  ;;  %v2063_v40 = vsub.f32 %v1924_v2, %v1962_v27  ;;  %v870_v42 = vmul.f32 %v2049_v17, %v2049_v17 }
 0x234   : > { %v897_v0 = vadd.f32 %v896_v61, %v895_v56  ;;  %v910_v44 = vsel %vm750_vm0, %v868_v26, 0.0  ;;  %v2070_v50 = vsub.f32 %v1836_v55, %v1962_v27  ;;  %v871_v47 = vmul.f32 %v2056_v30, %v2056_v30 }
 0x235   : > { %v912_v48 = vsel %vm750_vm0, %v869_v57, 0.0  ;;  %v2077_v2 = vsub.f32 %v1840_v59, %v1962_v27  ;;  %v872_v53 = vmul.f32 %v2063_v40, %v2063_v40  ;;  %v914_v56 = vsel %vm750_vm0, %v870_v42, 0.0 }
 0x236   : > { %v899_v8 = vadd.f32 %v898_v4, %v897_v0  ;;  %v2084_v55 = vsub.f32 %v1844_v3, %v1962_v27  ;;  %v873_v61 = vmul.f32 %v2070_v50, %v2070_v50  ;;  %v916_v0 = vsel %vm750_vm0, %v871_v47, 0.0 }
 0x237   : > { %v2091_v59 = vsub.f32 %v1848_v7, %v1962_v27  ;;  %v874_v4 = vmul.f32 %v2077_v2, %v2077_v2  ;;  %v2098_v3 = vsub.f32 %v1852_v15, %v1962_v27  ;;  %v2105_v7 = vsub.f32 %v1858_v20, %v1962_v27 }
 0x238   : > { %v901_v14 = vadd.f32 %v900_v12, %v899_v8  ;;  %v918_v8 = vsel %vm750_vm0, %v872_v53, 0.0  ;;  %v875_v12 = vmul.f32 %v2084_v55, %v2084_v55  ;;  %v2112_v15 = vsub.f32 %v1868_v33, %v1962_v27 }
 0x239   : > { %v2119_v20 = vsub.f32 %v1874_v39, %v1962_v27  ;;  %v2126_v33 = vsub.f32 %v1882_v52, %v1962_v27  ;;  %v2133_v39 = vsub.f32 %v1886_v60, %v1962_v27  ;;  %v2140_v52 = vsub.f32 %v1894_v13, %v1962_v27 }
 0x23a   : > { %v903_v22 = vadd.f32 %v902_v19, %v901_v14  ;;  %v920_v14 = vsel %vm750_vm0, %v873_v61, 0.0  ;;  %v876_v19 = vmul.f32 %v2091_v59, %v2091_v59  ;;  %v2147_v60 = vsub.f32 %v1900_v21, %v1962_v27 }
 0x23b   : > { %v2154_v13 = vsub.f32 %v1908_v35, %v1962_v27  ;;  %v2161_v21 = vsub.f32 %v1914_v43, %v1962_v27  ;;  %v2168_v35 = vsub.f32 %v1920_v62, %v1962_v27  ;;  %v2175_v43 = vsub.f32 %v1926_v9, %v1962_v27 }
 0x23c   : > { %v905_v25 = vadd.f32 %v904_v24, %v903_v22  ;;  %v922_v22 = vsel %vm750_vm0, %v874_v4, 0.0  ;;  %v877_v24 = vmul.f32 %v2098_v3, %v2098_v3 }
 0x23d   : > { %v887_v62 = vmul.f32 %v2168_v35, %v2168_v35 }
 0x23e   : > { %v907_v38 = vadd.f32 %v906_v37, %v905_v25  ;;  %v924_v25 = vsel %vm750_vm0, %v875_v12, 0.0  ;;  %v878_v37 = vmul.f32 %v2105_v7, %v2105_v7 }
 0x23f   : > { %v948_v9 = vsel %vm750_vm0, %v887_v62, 0.0 }
 0x240   : > { %v909_v41 = vadd.f32 %v908_v5, %v907_v38  ;;  %v926_v38 = vsel %vm750_vm0, %v876_v19, 0.0  ;;  %v879_v5 = vmul.f32 %v2112_v15, %v2112_v15 }
 0x242   : > { %v911_v11 = vadd.f32 %v910_v44, %v909_v41  ;;  %v928_v41 = vsel %vm750_vm0, %v877_v24, 0.0  ;;  %v880_v44 = vmul.f32 %v2119_v20, %v2119_v20 }
 0x244   : > { %v913_v49 = vadd.f32 %v912_v48, %v911_v11  ;;  %v930_v11 = vsel %vm750_vm0, %v878_v37, 0.0  ;;  %v881_v48 = vmul.f32 %v2126_v33, %v2126_v33  ;;  %v888_v37 = vmul.f32 %v2175_v43, %v2175_v43 }
 0x246   : > { %v915_v58 = vadd.f32 %v914_v56, %v913_v49  ;;  %v932_v49 = vsel %vm750_vm0, %v879_v5, 0.0  ;;  %v882_v56 = vmul.f32 %v2133_v39, %v2133_v39  ;;  %v950_v5 = vsel %vm750_vm0, %v888_v37, 0.0 }
 0x248   : > { %v917_v1 = vadd.f32 %v916_v0, %v915_v58  ;;  %v934_v58 = vsel %vm750_vm0, %v880_v44, 0.0  ;;  %v883_v0 = vmul.f32 %v2140_v52, %v2140_v52 }
 0x24a   : > { %v919_v10 = vadd.f32 %v918_v8, %v917_v1  ;;  %v936_v1 = vsel %vm750_vm0, %v881_v48, 0.0  ;;  %v884_v8 = vmul.f32 %v2147_v60, %v2147_v60 }
 0x24c   : > { %v921_v16 = vadd.f32 %v920_v14, %v919_v10  ;;  %v938_v10 = vsel %vm750_vm0, %v882_v56, 0.0  ;;  %v885_v14 = vmul.f32 %v2154_v13, %v2154_v13 }
 0x24e   : > { %v923_v23 = vadd.f32 %v922_v22, %v921_v16  ;;  %v940_v16 = vsel %vm750_vm0, %v883_v0, 0.0  ;;  %v886_v22 = vmul.f32 %v2161_v21, %v2161_v21 }
 0x250   : > { %v925_v26 = vadd.f32 %v924_v25, %v923_v23  ;;  %v942_v23 = vsel %vm750_vm0, %v884_v8, 0.0  ;;  %v944_v25 = vsel %vm750_vm0, %v885_v14, 0.0 }
 0x252   : > { %v927_v57 = vadd.f32 %v926_v38, %v925_v26  ;;  %v946_v38 = vsel %vm750_vm0, %v886_v22, 0.0 }
 0x254   : > { %v929_v42 = vadd.f32 %v928_v41, %v927_v57 }
 0x256   : > { %v931_v47 = vadd.f32 %v930_v11, %v929_v42 }
 0x258   : > { %v933_v53 = vadd.f32 %v932_v49, %v931_v47 }
 0x25a   : > { %v935_v61 = vadd.f32 %v934_v58, %v933_v53 }
 0x25c   : > { %v937_v4 = vadd.f32 %v936_v1, %v935_v61 }
 0x25e   : > { %v939_v12 = vadd.f32 %v938_v10, %v937_v4 }
 0x260   : > { %v941_v19 = vadd.f32 %v940_v16, %v939_v12 }
 0x262   : > { %v943_v24 = vadd.f32 %v942_v23, %v941_v19 }
 0x264   : > { %v945_v26 = vadd.f32 %v944_v25, %v943_v24  ;;  %v694_v25 = vld [vmem:[%s2822_s2 + $0x40] sm:$0xff] }
 0x266   : > { %v947_v57 = vadd.f32 %v946_v38, %v945_v26  ;;  %v695_v26 = vld [vmem:[%s2822_s2 + $0x48] sm:$0xff] }
 0x268   : > { %v949_v27 = vadd.f32 %v948_v9, %v947_v57  ;;  %v698_v57 = vld [vmem:[%s2822_s2 + $0x60] sm:$0xff]  ;;  %v699_v9 = vld [vmem:[%s2822_s2 + $0x68] sm:$0xff] }
 0x26a   : > { %v951_v41 = vadd.f32 %v950_v5, %v949_v27  ;;  %v700_v27 = vld [vmem:[%s2822_s2 + $0x70] sm:$0xff] }
 0x26c   : > { %952 = vadd.xlane.f32.xlu0 %v951_v41  ;;  %v702_v41 = vld [vmem:[%s2822_s2 + $0x80] sm:$0xff] }
 0x2f9   : > { %v953_v42 = vpop.xlane.xlu0 %952 }
 0x2fa   : > { %v954_v44 = vrot.slane %v953_v42, 4 }
 0x2fc   : > { %v955_v11 = vadd.f32 %v954_v44, %v953_v42  ;;  %v703_v42 = vld [vmem:[%s2822_s2 + $0x88] sm:$0xff]  ;;  %v704_v44 = vld [vmem:[%s2822_s2 + $0x90] sm:$0xff] }
 0x2fe   : > { %v956_v47 = vrot.slane %v955_v11, 2 }
 0x300   : > { %v957_v48 = vadd.f32 %v956_v47, %v955_v11  ;;  %v706_v47 = vld [vmem:[%s2822_s2 + $0xa0] sm:$0xff] }
 0x302   : > { %v958_v49 = vrot.slane %v957_v48, 1 }
 0x304   : > { %v959_v53 = vadd.f32 %v958_v49, %v957_v48  ;;  %v707_v48 = vld [vmem:[%s2822_s2 + $0xa8] sm:$0xff]  ;;  %v708_v49 = vld [vmem:[%s2822_s2 + $0xb0] sm:$0xff] }
 0x306   : > { %1629 = vpush %v959_v53 }
 0x337   : > { %s1630_s5 = spop %1629 }
 0x338   : > { %v961_v56 = vstv %s1630_s5 }
 0x339   : > { %v962_v58 = vmul.f32 0.00012207031, %v961_v56  ;;  %v710_v56 = vld [vmem:[%s2822_s2 + $0xc0] sm:$0xff] }
 0x33b   : > { %v963_v61 = vadd.f32 1e-05, %v962_v58  ;;  %v711_v58 = vld [vmem:[%s2822_s2 + $0xc8] sm:$0xff] }
 0x33d   : > { %1703 = vrsqrt.f32 %v963_v61  ;;  %v712_v61 = vld [vmem:[%s2822_s2 + $0xd0] sm:$0xff] }
 0x347   : > { %v1704_v0 = vpop.eup %1703 }
 0x348   : > { %v965_v1 = vmul.f32 %v1704_v0, %v1966_v28  ;;  %v966_v4 = vmul.f32 %v1704_v0, %v1970_v31  ;;  %v967_v8 = vmul.f32 %v1704_v0, %v1974_v32  ;;  %v968_v10 = vmul.f32 %v1704_v0, %v1978_v34  ;;  %v686_v32 = vld [vmem:[%s2822_s2] sm:$0xff]  ;;  %v687_v34 = vld [vmem:[%s2822_s2 + $0x8] sm:$0xff] }
 0x349   : > { %v969_v12 = vmul.f32 %v1704_v0, %v1986_v51  ;;  %v970_v14 = vmul.f32 %v1704_v0, %v1992_v63  ;;  %v971_v16 = vmul.f32 %v1704_v0, %v2000_v45  ;;  %v972_v19 = vmul.f32 %v1704_v0, %v2007_v18  ;;  %v688_v51 = vld [vmem:[%s2822_s2 + $0x10] sm:$0xff]  ;;  %v689_v63 = vld [vmem:[%s2822_s2 + $0x18] sm:$0xff] }
 0x34a   : > { %v2197_v22 = vmul.f32 %v1704_v0, %v2014_v29  ;;  %v2200_v23 = vmul.f32 %v1704_v0, %v2021_v36  ;;  %v2203_v28 = vmul.f32 %v1704_v0, %v2028_v46  ;;  %v2206_v31 = vmul.f32 %v1704_v0, %v2035_v54  ;;  %v690_v46 = vld [vmem:[%s2822_s2 + $0x20] sm:$0xff]  ;;  %v691_v54 = vld [vmem:[%s2822_s2 + $0x28] sm:$0xff] }
 0x34b   : > { %v2221_v45 = vmul.f32 %v1704_v0, %v2042_v6  ;;  %v2224_v18 = vmul.f32 %v1704_v0, %v2049_v17  ;;  %v2227_v29 = vmul.f32 %v1704_v0, %v2056_v30  ;;  %v2230_v36 = vmul.f32 %v1704_v0, %v2063_v40  ;;  %v692_v6 = vld [vmem:[%s2822_s2 + $0x30] sm:$0xff]  ;;  %v693_v17 = vld [vmem:[%s2822_s2 + $0x38] sm:$0xff] }
 0x34c   : > { %v2245_v30 = vmul.f32 %v1704_v0, %v2070_v50  ;;  %v2248_v40 = vmul.f32 %v1704_v0, %v2077_v2  ;;  %v2251_v24 = vmul.f32 %v1704_v0, %v2084_v55  ;;  %v2254_v62 = vmul.f32 %v1704_v0, %v2091_v59  ;;  %v696_v50 = vld [vmem:[%s2822_s2 + $0x50] sm:$0xff]  ;;  %v697_v2 = vld [vmem:[%s2822_s2 + $0x58] sm:$0xff] }
 0x34d   : > { %v985_v55 = vmul.f32 %v1704_v0, %v2098_v3  ;;  %v986_v59 = vmul.f32 %v1704_v0, %v2105_v7  ;;  %v987_v37 = vmul.f32 %v1704_v0, %v2112_v15  ;;  %v988_v38 = vmul.f32 %v1704_v0, %v2119_v20  ;;  %v701_v3 = vld [vmem:[%s2822_s2 + $0x78] sm:$0xff] }
 0x34e   : > { %v989_v7 = vmul.f32 %v1704_v0, %v2126_v33  ;;  %v990_v15 = vmul.f32 %v1704_v0, %v2133_v39  ;;  %v991_v20 = vmul.f32 %v1704_v0, %v2140_v52  ;;  %v992_v5 = vmul.f32 %v1704_v0, %v2147_v60  ;;  %v705_v33 = vld [vmem:[%s2822_s2 + $0x98] sm:$0xff] }
 0x34f   : > { %v993_v39 = vmul.f32 %v1704_v0, %v2154_v13  ;;  %v994_v52 = vmul.f32 %v1704_v0, %v2161_v21  ;;  %v995_v60 = vmul.f32 %v1704_v0, %v2168_v35  ;;  %v996_v11 = vmul.f32 %v1704_v0, %v2175_v43  ;;  %v709_v13 = vld [vmem:[%s2822_s2 + $0xb8] sm:$0xff] }
 0x350   : > { %v997_v21 = vmul.f32 %v965_v1, %v686_v32  ;;  %v998_v35 = vmul.f32 %v966_v4, %v687_v34  ;;  %v999_v53 = vmul.f32 %v967_v8, %v688_v51  ;;  %v1000_v43 = vmul.f32 %v968_v10, %v689_v63  ;;  %v713_v0 = vld [vmem:[%s2822_s2 + $0xd8] sm:$0xff]  ;;  %v714_v32 = vld [vmem:[%s2822_s2 + $0xe0] sm:$0xff]  ;;  %v715_v34 = vld [vmem:[%s2822_s2 + $0xe8] sm:$0xff] }
 0x351   : > { %v1001_v1 = vmul.f32 %v969_v12, %v690_v46  ;;  %v1002_v4 = vmul.f32 %v970_v14, %v691_v54  ;;  %v1003_v8 = vmul.f32 %v971_v16, %v692_v6  ;;  %v1004_v10 = vmul.f32 %v972_v19, %v693_v17  ;;  %v716_v51 = vld [vmem:[%s2822_s2 + $0xf0] sm:$0xff]  ;;  %v717_v63 = vld [vmem:[%s2822_s2 + $0xf8] sm:$0xff]  ;;  %v718_v46 = vld [vmem:[%s2823_s3] sm:$0xff] }
 0x352   : > { %v1005_v12 = vmul.f32 %v2197_v22, %v694_v25  ;;  %v1006_v14 = vmul.f32 %v2200_v23, %v695_v26  ;;  %v1007_v16 = vmul.f32 %v2203_v28, %v696_v50  ;;  %v1008_v19 = vmul.f32 %v2206_v31, %v697_v2  ;;  %v719_v54 = vld [vmem:[%s2823_s3 + $0x8] sm:$0xff]  ;;  %v720_v6 = vld [vmem:[%s2823_s3 + $0x10] sm:$0xff]  ;;  %v721_v22 = vld [vmem:[%s2823_s3 + $0x18] sm:$0xff] }
 0x353   : > { %v1009_v23 = vmul.f32 %v2221_v45, %v698_v57  ;;  %v1010_v28 = vmul.f32 %v2224_v18, %v699_v9  ;;  %v1011_v31 = vmul.f32 %v2227_v29, %v700_v27  ;;  %v1012_v17 = vmul.f32 %v2230_v36, %v701_v3  ;;  %v722_v25 = vld [vmem:[%s2823_s3 + $0x20] sm:$0xff]  ;;  %v723_v26 = vld [vmem:[%s2823_s3 + $0x28] sm:$0xff]  ;;  %v724_v50 = vld [vmem:[%s2823_s3 + $0x30] sm:$0xff] }
 0x354   : > { %v1013_v45 = vmul.f32 %v2245_v30, %v702_v41  ;;  %v1014_v18 = vmul.f32 %v2248_v40, %v703_v42  ;;  %v1015_v29 = vmul.f32 %v2251_v24, %v704_v44  ;;  %v1016_v36 = vmul.f32 %v2254_v62, %v705_v33  ;;  %v725_v2 = vld [vmem:[%s2823_s3 + $0x38] sm:$0xff]  ;;  %v726_v57 = vld [vmem:[%s2823_s3 + $0x40] sm:$0xff]  ;;  %v727_v9 = vld [vmem:[%s2823_s3 + $0x48] sm:$0xff] }
 0x355   : > { %v1017_v27 = vmul.f32 %v985_v55, %v706_v47  ;;  %v1018_v30 = vmul.f32 %v986_v59, %v707_v48  ;;  %v1019_v3 = vmul.f32 %v987_v37, %v708_v49  ;;  %v1020_v40 = vmul.f32 %v988_v38, %v709_v13  ;;  %v728_v24 = vld [vmem:[%s2823_s3 + $0x50] sm:$0xff]  ;;  %v729_v62 = vld [vmem:[%s2823_s3 + $0x58] sm:$0xff]  ;;  %v730_v41 = vld [vmem:[%s2823_s3 + $0x60] sm:$0xff] }
 0x356   : > { %v1021_v42 = vmul.f32 %v989_v7, %v710_v56  ;;  %v1022_v44 = vmul.f32 %v990_v15, %v711_v58  ;;  %v1023_v33 = vmul.f32 %v991_v20, %v712_v61  ;;  %v1024_v47 = vmul.f32 %v992_v5, %v713_v0  ;;  %v731_v55 = vld [vmem:[%s2823_s3 + $0x68] sm:$0xff]  ;;  %v732_v59 = vld [vmem:[%s2823_s3 + $0x70] sm:$0xff]  ;;  %v733_v37 = vld [vmem:[%s2823_s3 + $0x78] sm:$0xff] }
 0x357   : > { %v1025_v38 = vmul.f32 %v993_v39, %v714_v32  ;;  %v1026_v48 = vmul.f32 %v994_v52, %v715_v34  ;;  %v1027_v49 = vmul.f32 %v995_v60, %v716_v51  ;;  %v2400_v13 = vmul.f32 %v996_v11, %v717_v63  ;;  %v734_v7 = vld [vmem:[%s2823_s3 + $0x80] sm:$0xff]  ;;  %v735_v15 = vld [vmem:[%s2823_s3 + $0x88] sm:$0xff]  ;;  %v736_v20 = vld [vmem:[%s2823_s3 + $0x90] sm:$0xff] }
 0x358   : > { %v2411_v5 = vadd.f32 %v997_v21, %v718_v46  ;;  %v2413_v56 = vadd.f32 %v998_v35, %v719_v54  ;;  %v2415_v39 = vadd.f32 %v999_v53, %v720_v6  ;;  %v2417_v52 = vadd.f32 %v1000_v43, %v721_v22  ;;  %v737_v60 = vld [vmem:[%s2823_s3 + $0x98] sm:$0xff]  ;;  %v738_v11 = vld [vmem:[%s2823_s3 + $0xa0] sm:$0xff]  ;;  %v739_v58 = vld [vmem:[%s2823_s3 + $0xa8] sm:$0xff] }
 0x359   : > { %v2428_v21 = vadd.f32 %v1001_v1, %v722_v25  ;;  %v2430_v35 = vadd.f32 %v1002_v4, %v723_v26  ;;  %v2432_v53 = vadd.f32 %v1003_v8, %v724_v50  ;;  %v2434_v43 = vadd.f32 %v1004_v10, %v725_v2  ;;  %v740_v61 = vld [vmem:[%s2823_s3 + $0xb0] sm:$0xff]  ;;  %v741_v0 = vld [vmem:[%s2823_s3 + $0xb8] sm:$0xff]  ;;  %v742_v32 = vld [vmem:[%s2823_s3 + $0xc0] sm:$0xff] }
 0x35a   : > { %v2445_v1 = vadd.f32 %v1005_v12, %v726_v57  ;;  %v2447_v4 = vadd.f32 %v1006_v14, %v727_v9  ;;  %v2449_v8 = vadd.f32 %v1007_v16, %v728_v24  ;;  %v2451_v10 = vadd.f32 %v1008_v19, %v729_v62  ;;  %v743_v34 = vld [vmem:[%s2823_s3 + $0xc8] sm:$0xff]  ;;  %v744_v51 = vld [vmem:[%s2823_s3 + $0xd0] sm:$0xff]  ;;  %v745_v63 = vld [vmem:[%s2823_s3 + $0xd8] sm:$0xff] }
 0x35b   : > { %v2462_v12 = vadd.f32 %v1009_v23, %v730_v41  ;;  %v2464_v14 = vadd.f32 %v1010_v28, %v731_v55  ;;  %v2466_v16 = vadd.f32 %v1011_v31, %v732_v59  ;;  %v2468_v19 = vadd.f32 %v1012_v17, %v733_v37  ;;  %v746_v46 = vld [vmem:[%s2823_s3 + $0xe0] sm:$0xff]  ;;  %v747_v54 = vld [vmem:[%s2823_s3 + $0xe8] sm:$0xff]  ;;  %v749_v9 = vld [vmem:[%s2823_s3 + $0xf8] sm:$0xff] }
 0x35c   : > { %v2476_v6 = vadd.f32 %v1013_v45, %v734_v7  ;;  %v2478_v22 = vadd.f32 %v1014_v18, %v735_v15  ;;  %v2480_v23 = vadd.f32 %v1015_v29, %v736_v20  ;;  %v2482_v28 = vadd.f32 %v1016_v36, %v737_v60  ;;  %v748_v29 = vld [vmem:[%s2823_s3 + $0xf0] sm:$0xff] }
 0x35d   : > { %v2484_v31 = vadd.f32 %v1017_v27, %v738_v11  ;;  %v2486_v17 = vadd.f32 %v1018_v30, %v739_v58  ;;  %v2488_v25 = vadd.f32 %v1019_v3, %v740_v61  ;;  %v2490_v26 = vadd.f32 %v1020_v40, %v741_v0 }
 0x35e   : > { %v2492_v50 = vadd.f32 %v1021_v42, %v742_v32  ;;  %v2494_v2 = vadd.f32 %v1022_v44, %v743_v34  ;;  %v2496_v45 = vadd.f32 %v1023_v33, %v744_v51  ;;  %v2498_v18 = vadd.f32 %v1024_v47, %v745_v63 }
 0x35f   : > { %v2503_v36 = vadd.f32 %v1025_v38, %v746_v46  ;;  %v2505_v57 = vadd.f32 %v1026_v48, %v747_v54  ;;  %vm1061_vm1 = vcmp.ge.f32.partialorder %v2411_v5, 0.0  ;;  %vm1062_vm2 = vcmp.ge.f32.partialorder %v2413_v56, 0.0 }
 0x360   : > { %vm1063_vm3 = vcmp.ge.f32.partialorder %v2415_v39, 0.0  ;;  %vm1064_vm4 = vcmp.ge.f32.partialorder %v2417_v52, 0.0  ;;  %vm1065_vm5 = vcmp.ge.f32.partialorder %v2428_v21, 0.0  ;;  %vm1066_vm6 = vcmp.ge.f32.partialorder %v2430_v35, 0.0 }
 0x361   : > { %vm1067_vm7 = vcmp.ge.f32.partialorder %v2432_v53, 0.0  ;;  %vm1068_vm8 = vcmp.ge.f32.partialorder %v2434_v43, 0.0  ;;  %vm1069_vm9 = vcmp.ge.f32.partialorder %v2445_v1, 0.0  ;;  %v2520_v27 = vadd.f32 %v1027_v49, %v748_v29 }
 0x362   : > { %v1093_v30 = vmul.f32 0.2, %v2411_v5  ;;  %v1094_v3 = vmul.f32 0.2, %v2413_v56  ;;  %v1095_v40 = vmul.f32 0.2, %v2415_v39  ;;  %v2530_v24 = vadd.f32 %v2400_v13, %v749_v9 }
 0x363   : > { %vm1076_vm0 = vcmp.ge.f32.partialorder %v2468_v19, 0.0  ;;  %vm1077_vm11 = vcmp.ge.f32.partialorder %v2476_v6, 0.0  ;;  %v1096_v62 = vmul.f32 0.2, %v2417_v52  ;;  %v1097_v41 = vmul.f32 0.2, %v2428_v21 }
 0x364   : > { %v1098_v42 = vmul.f32 0.2, %v2430_v35  ;;  %vm1082_vm15 = vcmp.ge.f32.partialorder %v2486_v17, 0.0  ;;  %v1099_v44 = vmul.f32 0.2, %v2432_v53  ;;  %v2549_v55 = vsel %vm1061_vm1, %v2411_v5, %v1093_v30 }
 0x365   : > { %v1100_v33 = vmul.f32 0.2, %v2434_v43  ;;  %v1101_v47 = vmul.f32 0.2, %v2445_v1  ;;  %vm1086_vm10 = vcmp.ge.f32.partialorder %v2494_v2, 0.0  ;;  %v2561_v48 = vsel %vm1062_vm2, %v2413_v56, %v1094_v3 }
 0x366   : > { %v1102_v59 = vmul.f32 0.2, %v2447_v4  ;;  %v1103_v37 = vmul.f32 0.2, %v2449_v8  ;;  %v1104_v38 = vmul.f32 0.2, %v2451_v10  ;;  %v2573_v15 = vsel %vm1063_vm3, %v2415_v39, %v1095_v40 }
 0x367   : > { %vm1088_vm12 = vcmp.ge.f32.partialorder %v2498_v18, 0.0  ;;  %vm1089_vm14 = vcmp.ge.f32.partialorder %v2503_v36, 0.0  ;;  %vm1090_vm13 = vcmp.ge.f32.partialorder %v2505_v57, 0.0  ;;  %v1105_v49 = vmul.f32 0.2, %v2462_v12 }
 0x368   : > { %v1106_v13 = vmul.f32 0.2, %v2464_v14  ;;  %v1107_v7 = vmul.f32 0.2, %v2466_v16  ;;  %vm1091_vm2 = vcmp.ge.f32.partialorder %v2520_v27, 0.0  ;;  %vm1092_vm1 = vcmp.ge.f32.partialorder %v2530_v24, 0.0 }
 0x369   : > { %v1108_v20 = vmul.f32 0.2, %v2468_v19  ;;  %v1109_v5 = vmul.f32 0.2, %v2476_v6  ;;  %v1110_v56 = vmul.f32 0.2, %v2478_v22  ;;  %v2583_v60 = vsel %vm1064_vm4, %v2417_v52, %v1096_v62 }
 0x36a   : > { %v1111_v11 = vmul.f32 0.2, %v2480_v23  ;;  %v1112_v39 = vmul.f32 0.2, %v2482_v28  ;;  %v1113_v58 = vmul.f32 0.2, %v2484_v31  ;;  %v1129_v61 = vsel %vm1065_vm5, %v2428_v21, %v1097_v41 }
 0x36b   : > { %v1114_v0 = vmul.f32 0.2, %v2486_v17  ;;  %v1115_v32 = vmul.f32 0.2, %v2488_v25  ;;  %v1116_v34 = vmul.f32 0.2, %v2490_v26  ;;  %v1130_v52 = vsel %vm1066_vm6, %v2430_v35, %v1098_v42 }
 0x36c   : > { %vm1285_vm3 = vcmask 257024   ;;  %v1117_v51 = vmul.f32 0.2, %v2492_v50  ;;  %v1118_v63 = vmul.f32 0.2, %v2494_v2  ;;  %v1131_v21 = vsel %vm1067_vm7, %v2432_v53, %v1099_v44 }
 0x36d   : > { %v1119_v46 = vmul.f32 0.2, %v2496_v45  ;;  %v1120_v54 = vmul.f32 0.2, %v2498_v18  ;;  %v1121_v29 = vmul.f32 0.2, %v2503_v36  ;;  %v1132_v35 = vsel %vm1068_vm8, %v2434_v43, %v1100_v33 }
 0x36e   : > { %v1122_v9 = vmul.f32 0.2, %v2505_v57  ;;  %v1123_v30 = vmul.f32 0.2, %v2520_v27  ;;  %v1124_v3 = vmul.f32 0.2, %v2530_v24  ;;  %v1133_v40 = vsel %vm1069_vm9, %v2445_v1, %v1101_v47 }
 0x36f   : > { %vm2825_vm4 = vcmp.ge.f32.partialorder %v2447_v4, 0.0  ;;  %vm2826_vm5 = vcmp.ge.f32.partialorder %v2449_v8, 0.0  ;;  %vm2827_vm6 = vcmp.ge.f32.partialorder %v2451_v10, 0.0  ;;  %vm2828_vm7 = vcmp.ge.f32.partialorder %v2462_v12, 0.0 }
 0x370   : > { %v1134_v53 = vsel %vm2825_vm4, %v2447_v4, %v1102_v59  ;;  %v1135_v62 = vsel %vm2826_vm5, %v2449_v8, %v1103_v37  ;;  %v1136_v43 = vsel %vm2827_vm6, %v2451_v10, %v1104_v38  ;;  %v1137_v41 = vsel %vm2828_vm7, %v2462_v12, %v1105_v49 }
 0x371   : > { %vm2829_vm8 = vcmp.ge.f32.partialorder %v2464_v14, 0.0  ;;  %vm2830_vm9 = vcmp.ge.f32.partialorder %v2466_v16, 0.0  ;;  %v1140_v8 = vsel %vm1076_vm0, %v2468_v19, %v1108_v20  ;;  %v1141_v10 = vsel %vm1077_vm11, %v2476_v6, %v1109_v5 }
 0x372   : > { %v1138_v1 = vsel %vm2829_vm8, %v2464_v14, %v1106_v13  ;;  %v1139_v4 = vsel %vm2830_vm9, %v2466_v16, %v1107_v7  ;;  %vm2831_vm4 = vcmp.ge.f32.partialorder %v2478_v22, 0.0  ;;  %vm2832_vm5 = vcmp.ge.f32.partialorder %v2480_v23, 0.0 }
 0x373   : > { %v1142_v12 = vsel %vm2831_vm4, %v2478_v22, %v1110_v56  ;;  %v2645_v14 = vsel %vm2832_vm5, %v2480_v23, %v1111_v11  ;;  %vm2833_vm6 = vcmp.ge.f32.partialorder %v2482_v28, 0.0  ;;  %vm2834_vm0 = vcmp.ge.f32.partialorder %v2484_v31, 0.0 }
 0x374   : > { %v2650_v16 = vsel %vm2833_vm6, %v2482_v28, %v1112_v39  ;;  %v2655_v19 = vsel %vm2834_vm0, %v2484_v31, %v1113_v58  ;;  %v2660_v6 = vsel %vm1082_vm15, %v2486_v17, %v1114_v0  ;;  %vm2835_vm11 = vcmp.ge.f32.partialorder %v2488_v25, 0.0 }
 0x375   : > { %v2665_v22 = vsel %vm2835_vm11, %v2488_v25, %v1115_v32  ;;  %vm2836_vm7 = vcmp.ge.f32.partialorder %v2490_v26, 0.0  ;;  %vm2837_vm8 = vcmp.ge.f32.partialorder %v2492_v50, 0.0  ;;  %v2680_v31 = vsel %vm1086_vm10, %v2494_v2, %v1118_v63 }
 0x376   : > { %v2670_v23 = vsel %vm2836_vm7, %v2490_v26, %v1116_v34  ;;  %v2675_v28 = vsel %vm2837_vm8, %v2492_v50, %v1117_v51  ;;  %vm2838_vm15 = vcmp.ge.f32.partialorder %v2496_v45, 0.0  ;;  %v2695_v25 = vsel %vm1088_vm12, %v2498_v18, %v1120_v54 }
 0x377   : > { %v2690_v17 = vsel %vm2838_vm15, %v2496_v45, %v1119_v46  ;;  %v2700_v26 = vsel %vm1089_vm14, %v2503_v36, %v1121_v29  ;;  %v2705_v50 = vsel %vm1090_vm13, %v2505_v57, %v1122_v9  ;;  %v2710_v2 = vsel %vm1091_vm2, %v2520_v27, %v1123_v30 }
 0x378   : > { %v2715_v45 = vsel %vm1092_vm1, %v2530_v24, %v1124_v3  ;;  %v1467_v18 = vpack.c.bf16 %v2549_v55, %v2549_v55  ;;  %v1468_v36 = vpack.c.bf16 %v2561_v48, %v2561_v48  ;;  %v1469_v57 = vpack.c.bf16 %v2573_v15, %v2573_v15 }
 0x379   : > { %v1470_v27 = vpack.c.bf16 %v2583_v60, %v2583_v60  ;;  %v1471_v42 = vpack.c.bf16 %v1129_v61, %v1129_v61  ;;  %v1472_v44 = vpack.c.bf16 %v1130_v52, %v1130_v52  ;;  %v1473_v24 = vpack.c.bf16 %v1131_v21, %v1131_v21 }
 0x37a   : > { %v1474_v33 = vpack.c.bf16 %v1132_v35, %v1132_v35  ;;  %v1475_v47 = vpack.c.bf16 %v1133_v40, %v1133_v40  ;;  %v1476_v55 = vpack.c.bf16 %v1134_v53, %v1134_v53  ;;  %1286 = vst.msk [vmem:[%s2685_s17] sm:$0xf] %vm1285_vm3, %v1467_v18  ;;  %1287 = vst.msk [vmem:[%s2685_s17 + $0x4] sm:$0xf] %vm1285_vm3, %v1468_v36 }
 0x37b   : > { %v1477_v59 = vpack.c.bf16 %v1135_v62, %v1135_v62  ;;  %v1478_v37 = vpack.c.bf16 %v1136_v43, %v1136_v43  ;;  %v1479_v38 = vpack.c.bf16 %v1137_v41, %v1137_v41  ;;  %v1480_v48 = vpack.c.bf16 %v1138_v1, %v1138_v1  ;;  %1288 = vst.msk [vmem:[%s2685_s17 + $0x8] sm:$0xf] %vm1285_vm3, %v1469_v57 }
 0x37c   : > { %1289 = vst.msk [vmem:[%s2685_s17 + $0xc] sm:$0xf] %vm1285_vm3, %v1470_v27  ;;  %1290 = vst.msk [vmem:[%s2685_s17 + $0x10] sm:$0xf] %vm1285_vm3, %v1471_v42  ;;  %v1481_v49 = vpack.c.bf16 %v1139_v4, %v1139_v4  ;;  %v1482_v13 = vpack.c.bf16 %v1140_v8, %v1140_v8  ;;  %v1483_v7 = vpack.c.bf16 %v1141_v10, %v1141_v10 }
 0x37d   : > { %1291 = vst.msk [vmem:[%s2685_s17 + $0x14] sm:$0xf] %vm1285_vm3, %v1472_v44  ;;  %v1484_v15 = vpack.c.bf16 %v1142_v12, %v1142_v12  ;;  %1292 = vst.msk [vmem:[%s2685_s17 + $0x18] sm:$0xf] %vm1285_vm3, %v1473_v24  ;;  %v1485_v20 = vpack.c.bf16 %v2645_v14, %v2645_v14  ;;  %v1486_v5 = vpack.c.bf16 %v2650_v16, %v2650_v16 }
 0x37e   : > { %1293 = vst.msk [vmem:[%s2685_s17 + $0x1c] sm:$0xf] %vm1285_vm3, %v1474_v33  ;;  %1294 = vst.msk [vmem:[%s2685_s17 + $0x20] sm:$0xf] %vm1285_vm3, %v1475_v47  ;;  %v1487_v56 = vpack.c.bf16 %v2655_v19, %v2655_v19  ;;  %v1488_v60 = vpack.c.bf16 %v2660_v6, %v2660_v6  ;;  %v1489_v11 = vpack.c.bf16 %v2665_v22, %v2665_v22 }
 0x37f   : > { %1295 = vst.msk [vmem:[%s2685_s17 + $0x24] sm:$0xf] %vm1285_vm3, %v1476_v55  ;;  %1296 = vst.msk [vmem:[%s2685_s17 + $0x28] sm:$0xf] %vm1285_vm3, %v1477_v59  ;;  %v1490_v39 = vpack.c.bf16 %v2670_v23, %v2670_v23  ;;  %v1491_v58 = vpack.c.bf16 %v2675_v28, %v2675_v28  ;;  %v1492_v61 = vpack.c.bf16 %v2680_v31, %v2680_v31 }
 0x380   : > { %1297 = vst.msk [vmem:[%s2685_s17 + $0x2c] sm:$0xf] %vm1285_vm3, %v1478_v37  ;;  %1298 = vst.msk [vmem:[%s2685_s17 + $0x30] sm:$0xf] %vm1285_vm3, %v1479_v38  ;;  %v1493_v0 = vpack.c.bf16 %v2690_v17, %v2690_v17  ;;  %v1494_v32 = vpack.c.bf16 %v2695_v25, %v2695_v25  ;;  %v1495_v34 = vpack.c.bf16 %v2700_v26, %v2700_v26 }
 0x381   : > { %1299 = vst.msk [vmem:[%s2685_s17 + $0x34] sm:$0xf] %vm1285_vm3, %v1480_v48  ;;  %1300 = vst.msk [vmem:[%s2685_s17 + $0x38] sm:$0xf] %vm1285_vm3, %v1481_v49  ;;  %v1496_v52 = vpack.c.bf16 %v2705_v50, %v2705_v50  ;;  %v1497_v51 = vpack.c.bf16 %v2710_v2, %v2710_v2  ;;  %v1498_v63 = vpack.c.bf16 %v2715_v45, %v2715_v45 }
 0x382   : > { %1301 = vst.msk [vmem:[%s2685_s17 + $0x3c] sm:$0xf] %vm1285_vm3, %v1482_v13  ;;  %1302 = vst.msk [vmem:[%s2685_s17 + $0x40] sm:$0xf] %vm1285_vm3, %v1483_v7 }
 0x383   : > { %1303 = vst.msk [vmem:[%s2685_s17 + $0x44] sm:$0xf] %vm1285_vm3, %v1484_v15  ;;  %1304 = vst.msk [vmem:[%s2685_s17 + $0x48] sm:$0xf] %vm1285_vm3, %v1485_v20 }
 0x384   : > { %1305 = vst.msk [vmem:[%s2685_s17 + $0x4c] sm:$0xf] %vm1285_vm3, %v1486_v5  ;;  %1306 = vst.msk [vmem:[%s2685_s17 + $0x50] sm:$0xf] %vm1285_vm3, %v1487_v56 }
 0x385   : > { %1307 = vst.msk [vmem:[%s2685_s17 + $0x54] sm:$0xf] %vm1285_vm3, %v1488_v60  ;;  %1308 = vst.msk [vmem:[%s2685_s17 + $0x58] sm:$0xf] %vm1285_vm3, %v1489_v11 }
 0x386   : > { %1309 = vst.msk [vmem:[%s2685_s17 + $0x5c] sm:$0xf] %vm1285_vm3, %v1490_v39  ;;  %1310 = vst.msk [vmem:[%s2685_s17 + $0x60] sm:$0xf] %vm1285_vm3, %v1491_v58 }
 0x387   : > { %1311 = vst.msk [vmem:[%s2685_s17 + $0x64] sm:$0xf] %vm1285_vm3, %v1492_v61  ;;  %1312 = vst.msk [vmem:[%s2685_s17 + $0x68] sm:$0xf] %vm1285_vm3, %v1493_v0 }
 0x388   : > { %1313 = vst.msk [vmem:[%s2685_s17 + $0x6c] sm:$0xf] %vm1285_vm3, %v1494_v32  ;;  %1314 = vst.msk [vmem:[%s2685_s17 + $0x70] sm:$0xf] %vm1285_vm3, %v1495_v34 }
 0x389   : > { %1315 = vst.msk [vmem:[%s2685_s17 + $0x74] sm:$0xf] %vm1285_vm3, %v1496_v52  ;;  %1316 = vst.msk [vmem:[%s2685_s17 + $0x78] sm:$0xf] %vm1285_vm3, %v1497_v51 }
 0x38a   : > { %1317 = vst.msk [vmem:[%s2685_s17 + $0x7c] sm:$0xf] %vm1285_vm3, %v1498_v63 }
 0x38b PF: > { %s14_s15 = sadd.s32 1, %s1711_s15  }
 0x38c   : > { %p11_p4 = scmp.ge.s32.totalorder %s14_s15, 4  }
 0x38e   :  { %13 = sbr.rel (!%p11_p4) target bundleno = 1 (0x1), region = 66 }

// kernel: discriminator_forward.6
= control target key start
LH: loop header
LB: loop body
LE: loop exit
PB: predicated region body
PF: predicated region fallthrough
CT: control target
= control target key end

     0   :  { %s1179_s15 = smov 0   ;;  %s1404_s0 = inlined_call_operand.vmem [shape: bf16[128,512], index: 0, kind: input, shape index: {}]   ;;  %s1405_s1 = inlined_call_operand.vmem [shape: bf16[512,64], index: 1, kind: input, shape index: {}]   ;;  %s1406_s2 = inlined_call_operand.vmem [shape: f32[64,64], index: 2, kind: input, shape index: {}]   ;;  %s1407_s3 = inlined_call_operand.vmem [shape: f32[64,64], index: 3, kind: input, shape index: {}]   ;;  %s1408_s4 = inlined_call_operand.vmem [shape: bf16[128,64], index: 4, kind: output, shape index: {}]  }
   0x1 LB: > { %s919_s16 = sadd.s32 4294967295, %s1152_s15   ;;  %p923_p0 = scmp.ge.s32.totalorder %s1152_s15, 1  ;;  %s1152_s15 = sphi %s1179_s15, %s14_s15  }
   0x2   : > { %p164_p1 = scmp.lt.s32.totalorder %s1152_s15, 3 }
   0x4   : > { %p165_p2 = pnand %p923_p0, %p164_p1 }
   0x5   : > { %v1088_v0 = vld [vmem:[%s1405_s1 + $0x40] sm:$0xff] (!%p165_p2)   ;;  %v1092_v4 = vld [vmem:[%s1405_s1 + $0x48] sm:$0xff] (!%p165_p2)   ;;  %v1096_v8 = vld [vmem:[%s1405_s1 + $0x50] sm:$0xff] (!%p165_p2)   ;;  %s924_s25 = sshll.u32 (!%p165_p2), %s919_s16, 3  ;;  %vm703_vm0 = vcmask (!%p165_p2), 523264   ;;  %vm854_vm1 = vcmask (!%p165_p2), 519168  }
   0x6   : > { %168 = sbr.rel (%p165_p2) target bundleno = 750 (0x2ee), region = 36  ;;  %v1089_v1 = vld [vmem:[%s1405_s1 + $0xc0] sm:$0xff] (!%p165_p2)   ;;  %996 = vmatprep.subr.bf16.mxu0 (!%p165_p2), %v1088_v0  ;;  %v1093_v5 = vld [vmem:[%s1405_s1 + $0xc8] sm:$0xff] (!%p165_p2)   ;;  %v1097_v9 = vld [vmem:[%s1405_s1 + $0xd0] sm:$0xff] (!%p165_p2)   ;;  %p192_p3 = scmp.lt.s32.totalorder (!%p165_p2), %s924_s25, 15 }
   0x7   : > { %v1090_v2 = vld [vmem:[%s1405_s1] sm:$0xff] (!%p165_p2)   ;;  %1036 = vmatprep.subr.bf16.mxu1 (!%p165_p2), %v1089_v1  ;;  %v1094_v6 = vld [vmem:[%s1405_s1 + $0x8] sm:$0xff] (!%p165_p2)   ;;  %v1098_v10 = vld [vmem:[%s1405_s1 + $0x10] sm:$0xff] (!%p165_p2)  }
   0x8   : > { %v1091_v3 = vld [vmem:[%s1405_s1 + $0x80] sm:$0xff] (!%p165_p2)   ;;  %997 = vmatpush3.bf16.msra.mxu0 (!%p165_p2), %v1090_v2  ;;  %v1095_v7 = vld [vmem:[%s1405_s1 + $0x88] sm:$0xff] (!%p165_p2)   ;;  %v1099_v11 = vld [vmem:[%s1405_s1 + $0x90] sm:$0xff] (!%p165_p2)  }
   0x9   : > { %1037 = vmatpush3.bf16.msra.mxu1 (!%p165_p2), %v1091_v3  ;;  %998 = vmatprep.subr.bf16.mxu0 (!%p165_p2), %v1092_v4  ;;  %v1100_v12 = vld [vmem:[%s1405_s1 + $0x58] sm:$0xff] (!%p165_p2)   ;;  %v1104_v16 = vld [vmem:[%s1405_s1 + $0x60] sm:$0xff] (!%p165_p2)   ;;  %v1108_v20 = vld [vmem:[%s1405_s1 + $0x68] sm:$0xff] (!%p165_p2)  }
   0xa   : > { %1038 = vmatprep.subr.bf16.mxu1 (!%p165_p2), %v1093_v5  ;;  %v1101_v13 = vld [vmem:[%s1405_s1 + $0xd8] sm:$0xff] (!%p165_p2)   ;;  %v1105_v17 = vld [vmem:[%s1405_s1 + $0xe0] sm:$0xff] (!%p165_p2)   ;;  %v1109_v21 = vld [vmem:[%s1405_s1 + $0xe8] sm:$0xff] (!%p165_p2)  }
   0xb   : > { %v1102_v14 = vld [vmem:[%s1405_s1 + $0x18] sm:$0xff] (!%p165_p2)   ;;  %v1106_v18 = vld [vmem:[%s1405_s1 + $0x20] sm:$0xff] (!%p165_p2)   ;;  %v1110_v22 = vld [vmem:[%s1405_s1 + $0x28] sm:$0xff] (!%p165_p2)  }
   0xc   : > { %999 = vmatpush3.bf16.msra.mxu0 (!%p165_p2), %v1094_v6  ;;  %v1103_v15 = vld [vmem:[%s1405_s1 + $0x98] sm:$0xff] (!%p165_p2)   ;;  %v1107_v19 = vld [vmem:[%s1405_s1 + $0xa0] sm:$0xff] (!%p165_p2)   ;;  %v1111_v23 = vld [vmem:[%s1405_s1 + $0xa8] sm:$0xff] (!%p165_p2)  }
   0xd   : > { %1039 = vmatpush3.bf16.msra.mxu1 %v1095_v7  ;;  %1000 = vmatprep.subr.bf16.mxu0 %v1096_v8  ;;  %s1410_s25 = smov (!%p192_p3, %s924_s25), 15  ;;  %v1112_v24 = vld [vmem:[%s1405_s1 + $0x70] sm:$0xff]   ;;  %v1116_v28 = vld [vmem:[%s1405_s1 + $0x78] sm:$0xff]  }
   0xe   : > { %1040 = vmatprep.subr.bf16.mxu1 %v1097_v9  ;;  %v1113_v25 = vld [vmem:[%s1405_s1 + $0xf0] sm:$0xff]   ;;  %s987_s23 = sshll.u32 %s1410_s25, 4  ;;  %v1117_v29 = vld [vmem:[%s1405_s1 + $0xf8] sm:$0xff]  }
   0xf   : > { %v1114_v26 = vld [vmem:[%s1405_s1 + $0x30] sm:$0xff]   ;;  %s1285_s7 = scalar_lea.vmem %s1404_s0, %s987_s23  ;;  %v1118_v30 = vld [vmem:[%s1405_s1 + $0x38] sm:$0xff]   ;;  %s928_s23 = sshll.u32 %s1410_s25, 2 }
  0x10   : > { %1001 = vmatpush3.bf16.msra.mxu0 %v1098_v10  ;;  %v1115_v27 = vld [vmem:[%s1405_s1 + $0xb0] sm:$0xff]   ;;  %v1119_v31 = vld [vmem:[%s1405_s1 + $0xb8] sm:$0xff]   ;;  %s202_s25 = scalar_lea.vmem %s1408_s4, %s928_s23 }
  0x11   : > { %1041 = vmatpush3.bf16.msra.mxu1 %v1099_v11  ;;  %1002 = vmatprep.subr.bf16.mxu0 %v1100_v12  ;;  %v1120_v32 = vld [vmem:[%s1285_s7] ss:$16 sps:$4 sm:$0xff]   ;;  %v1122_v33 = vld [vmem:[%s1285_s7 + $0x4] ss:$16 sps:$4 sm:$0xff]   ;;  %v1123_v34 = vld [vmem:[%s1285_s7 + $0x8] ss:$16 sps:$4 sm:$0xff]  }
  0x12   : > { %1042 = vmatprep.subr.bf16.mxu1 %v1101_v13  ;;  %v1125_v35 = vld [vmem:[%s1285_s7 + $0xc] ss:$16 sps:$4 sm:$0xff]   ;;  %589 = vmatprep.mubr.bf16.mxu0 %v1122_v33  ;;  %v1126_v36 = vld [vmem:[%s1285_s7 + $0x24] ss:$16 sps:$4 sm:$0xff]   ;;  %v1130_v38 = vld [vmem:[%s1285_s7 + $0x20] ss:$16 sps:$4 sm:$0xff]  }
  0x13   : > { %654 = vmatprep.mubr.bf16.mxu1 %v1125_v35  ;;  %v1128_v37 = vld [vmem:[%s1285_s7 + $0x2c] ss:$16 sps:$4 sm:$0xff]   ;;  %v1131_v39 = vld [vmem:[%s1285_s7 + $0x28] ss:$16 sps:$4 sm:$0xff]   ;;  %v1132_v40 = vld [vmem:[%s1285_s7 + $0x44] ss:$16 sps:$4 sm:$0xff]  }
  0x14   : > { %1003 = vmatpush3.bf16.msra.mxu0 %v1102_v14  ;;  %v1134_v41 = vld [vmem:[%s1285_s7 + $0x4c] ss:$16 sps:$4 sm:$0xff]   ;;  %v1136_v42 = vld [vmem:[%s1285_s7 + $0x40] ss:$16 sps:$4 sm:$0xff]   ;;  %v1137_v43 = vld [vmem:[%s1285_s7 + $0x48] ss:$16 sps:$4 sm:$0xff]  }
  0x15   : > { %1043 = vmatpush3.bf16.msra.mxu1 %v1103_v15  ;;  %1004 = vmatprep.subr.bf16.mxu0 %v1104_v16  ;;  %v1138_v44 = vld [vmem:[%s1285_s7 + $0x64] ss:$16 sps:$4 sm:$0xff]   ;;  %v1140_v45 = vld [vmem:[%s1285_s7 + $0x6c] ss:$16 sps:$4 sm:$0xff]   ;;  %v1142_v46 = vld [vmem:[%s1285_s7 + $0x60] ss:$16 sps:$4 sm:$0xff]  }
  0x16   : > { %1044 = vmatprep.subr.bf16.mxu1 %v1105_v17  ;;  %v1143_v47 = vld [vmem:[%s1285_s7 + $0x68] ss:$16 sps:$4 sm:$0xff]  }
  0x18   : > { %1005 = vmatpush3.bf16.msra.mxu0 %v1106_v18 }
  0x19   : > { %1045 = vmatpush3.bf16.msra.mxu1 %v1107_v19  ;;  %1006 = vmatprep.subr.bf16.mxu0 %v1108_v20 }
  0x1a   : > { %1046 = vmatprep.subr.bf16.mxu1 %v1109_v21 }
  0x1c   : > { %1007 = vmatpush3.bf16.msra.mxu0 %v1110_v22 }
  0x1d   : > { %1047 = vmatpush3.bf16.msra.mxu1 %v1111_v23  ;;  %1008 = vmatprep.subr.bf16.mxu0 %v1112_v24 }
  0x1e   : > { %1048 = vmatprep.subr.bf16.mxu1 %v1113_v25 }
  0x20   : > { %1009 = vmatpush3.bf16.msra.mxu0 %v1114_v26 }
  0x21   : > { %1049 = vmatpush3.bf16.msra.mxu1 %v1115_v27  ;;  %1010 = vmatprep.subr.bf16.mxu0 %v1116_v28 }
  0x22   : > { %1050 = vmatprep.subr.bf16.mxu1 %v1117_v29 }
  0x24   : > { %1011 = vmatpush3.bf16.msra.mxu0 %v1118_v30 }
  0x25   : > { %1051 = vmatpush3.bf16.msra.mxu1 %v1119_v31 }
  0x27   : > { %590 = vmatmul.mubr.bf16.vlgmr.msra.gmra.mrb[0].mxu0 %v1120_v32 }
  0x28   : > { %655 = vmatmul.mubr.bf16.vlgmr.msra.gmra.mrb[0].mxu1 %v1123_v34  ;;  %597 = vmatprep.mubr.bf16.mxu0 %v1126_v36 }
  0x29   : > { %662 = vmatprep.mubr.bf16.mxu1 %v1128_v37 }
  0x2f   : > { %598 = vmatmul.mubr.bf16.gmra.mrb[4].mxu0 %v1130_v38 }
  0x30   : > { %663 = vmatmul.mubr.bf16.gmra.mrb[4].mxu1 %v1131_v39  ;;  %605 = vmatprep.mubr.bf16.mxu0 %v1132_v40 }
  0x31   : > { %670 = vmatprep.mubr.bf16.mxu1 %v1134_v41 }
  0x37   : > { %606 = vmatmul.mubr.bf16.gmra.mrb[8].mxu0 %v1136_v42 }
  0x38   : > { %671 = vmatmul.mubr.bf16.gmra.mrb[8].mxu1 %v1137_v43  ;;  %613 = vmatprep.mubr.bf16.mxu0 %v1138_v44 }
  0x39   : > { %678 = vmatprep.mubr.bf16.mxu1 %v1140_v45 }
  0x3f   : > { %614 = vmatmul.mubr.bf16.gmra.mrb[12].mxu0 %v1142_v46 }
  0x40   : > { %679 = vmatmul.mubr.bf16.gmra.mrb[12].mxu1 %v1143_v47 }
  0xfa   : > { %v1012_v48 = vpop.f32.mrb[0].mxu0 }
  0xfb   : > { %v1052_v49 = vpop.f32.mrb[0].mxu1  ;;  %v1013_v50 = vpop.f32.mrb[1].mxu0 }
  0xfc   : > { %v1014_v51 = vadd.f32 %v1013_v50, %v1012_v48  ;;  %v1053_v52 = vpop.f32.mrb[1].mxu1  ;;  %v1015_v53 = vpop.f32.mrb[2].mxu0 }
  0xfd   : > { %v1054_v54 = vadd.f32 %v1053_v52, %v1052_v49  ;;  %v1055_v55 = vpop.f32.mrb[2].mxu1  ;;  %v1016_v56 = vpop.f32.mrb[3].mxu0 }
  0xfe   : > { %v1017_v57 = vadd.f32 %v1016_v56, %v1015_v53  ;;  %v1056_v58 = vpop.f32.mrb[3].mxu1 }
  0xff   : > { %v1309_v59 = vadd.f32 %v1054_v54, %v1014_v51  ;;  %v1057_v60 = vadd.f32 %v1056_v58, %v1055_v55 }
 0x101   : > { %v1311_v61 = vadd.f32 %v1057_v60, %v1017_v57  ;;  %v704_v14 = vsel %vm703_vm0, %v1309_v59, 0.0 }
 0x102   : > { %v1018_v62 = vpop.f32.mrb[4].mxu0 }
 0x103   : > { %v1058_v63 = vpop.f32.mrb[4].mxu1  ;;  %v1019_v0 = vpop.f32.mrb[5].mxu0  ;;  %v705_v11 = vsel %vm703_vm0, %v1311_v61, 0.0 }
 0x104   : > { %v1020_v1 = vadd.f32 %v1019_v0, %v1018_v62  ;;  %v1059_v2 = vpop.f32.mrb[5].mxu1  ;;  %v1021_v3 = vpop.f32.mrb[6].mxu0  ;;  %v706_v18 = vadd.f32 %v705_v11, %v704_v14 }
 0x105   : > { %v1060_v4 = vadd.f32 %v1059_v2, %v1058_v63  ;;  %v1061_v5 = vpop.f32.mrb[6].mxu1  ;;  %v1022_v6 = vpop.f32.mrb[7].mxu0 }
 0x106   : > { %v1023_v7 = vadd.f32 %v1022_v6, %v1021_v3  ;;  %v1062_v8 = vpop.f32.mrb[7].mxu1 }
 0x107   : > { %v665_v9 = vadd.f32 %v1060_v4, %v1020_v1  ;;  %v1063_v10 = vadd.f32 %v1062_v8, %v1061_v5 }
 0x109   : > { %v668_v12 = vadd.f32 %v1063_v10, %v1023_v7  ;;  %v707_v15 = vsel %vm703_vm0, %v665_v9, 0.0 }
 0x10a   : > { %v1024_v13 = vpop.f32.mrb[8].mxu0  ;;  %v708_v25 = vadd.f32 %v707_v15, %v706_v18 }
 0x10b   : > { %v1064_v16 = vpop.f32.mrb[8].mxu1  ;;  %v1025_v17 = vpop.f32.mrb[9].mxu0  ;;  %v709_v28 = vsel %vm703_vm0, %v668_v12, 0.0 }
 0x10c   : > { %v1026_v19 = vadd.f32 %v1025_v17, %v1024_v13  ;;  %v1065_v20 = vpop.f32.mrb[9].mxu1  ;;  %v1027_v21 = vpop.f32.mrb[10].mxu0  ;;  %v710_v33 = vadd.f32 %v709_v28, %v708_v25 }
 0x10d   : > { %v1066_v22 = vadd.f32 %v1065_v20, %v1064_v16  ;;  %v1067_v23 = vpop.f32.mrb[10].mxu1  ;;  %v1028_v24 = vpop.f32.mrb[11].mxu0 }
 0x10e   : > { %v1029_v26 = vadd.f32 %v1028_v24, %v1027_v21  ;;  %v1068_v27 = vpop.f32.mrb[11].mxu1 }
 0x10f   : > { %v673_v29 = vadd.f32 %v1066_v22, %v1026_v19  ;;  %v1069_v30 = vadd.f32 %v1068_v27, %v1067_v23 }
 0x111   : > { %v711_v31 = vsel %vm703_vm0, %v673_v29, 0.0  ;;  %v676_v32 = vadd.f32 %v1069_v30, %v1029_v26 }
 0x112   : > { %v1030_v34 = vpop.f32.mrb[12].mxu0  ;;  %v712_v37 = vadd.f32 %v711_v31, %v710_v33 }
 0x113   : > { %v1070_v35 = vpop.f32.mrb[12].mxu1  ;;  %v1031_v36 = vpop.f32.mrb[13].mxu0  ;;  %v713_v41 = vsel %vm703_vm0, %v676_v32, 0.0 }
 0x114   : > { %v1032_v38 = vadd.f32 %v1031_v36, %v1030_v34  ;;  %v1071_v39 = vpop.f32.mrb[13].mxu1  ;;  %v1033_v40 = vpop.f32.mrb[14].mxu0  ;;  %v714_v49 = vadd.f32 %v713_v41, %v712_v37  ;;  %v687_v41 = vld [vmem:[%s1406_s2] sm:$0xff] }
 0x115   : > { %v1072_v42 = vadd.f32 %v1071_v39, %v1070_v35  ;;  %v1073_v43 = vpop.f32.mrb[14].mxu1  ;;  %v1034_v44 = vpop.f32.mrb[15].mxu0 }
 0x116   : > { %v1035_v45 = vadd.f32 %v1034_v44, %v1033_v40  ;;  %v1074_v46 = vpop.f32.mrb[15].mxu1  ;;  %v690_v44 = vld [vmem:[%s1406_s2 + $0x18] sm:$0xff] }
 0x117   : > { %v681_v47 = vadd.f32 %v1072_v42, %v1032_v38  ;;  %v1075_v48 = vadd.f32 %v1074_v46, %v1073_v43  ;;  %v688_v42 = vld [vmem:[%s1406_s2 + $0x8] sm:$0xff]  ;;  %v689_v43 = vld [vmem:[%s1406_s2 + $0x10] sm:$0xff]  ;;  %v691_v46 = vld [vmem:[%s1406_s2 + $0x20] sm:$0xff] }
 0x119   : > { %v684_v50 = vadd.f32 %v1075_v48, %v1035_v45  ;;  %v715_v51 = vsel %vm703_vm0, %v681_v47, 0.0  ;;  %v693_v48 = vld [vmem:[%s1406_s2 + $0x30] sm:$0xff] }
 0x11a   : > { %v716_v52 = vadd.f32 %v715_v51, %v714_v49  ;;  %v694_v49 = vld [vmem:[%s1406_s2 + $0x38] sm:$0xff]  ;;  %v696_v51 = vld [vmem:[%s1407_s3 + $0x8] sm:$0xff] }
 0x11b   : > { %v717_v53 = vsel %vm703_vm0, %v684_v50, 0.0 }
 0x11c   : > { %v718_v54 = vadd.f32 %v717_v53, %v716_v52 }
 0x11e   : > { %719 = vadd.xlane.f32.xlu0 %v718_v54 }
 0x1ab   : > { %v720_v55 = vpop.xlane.xlu0 %719 }
 0x1ac   : > { %v721_v56 = vrot.slane %v720_v55, 4 }
 0x1ae   : > { %v722_v57 = vadd.f32 %v721_v56, %v720_v55  ;;  %v697_v56 = vld [vmem:[%s1407_s3 + $0x10] sm:$0xff] }
 0x1b0   : > { %v723_v58 = vrot.slane %v722_v57, 2 }
 0x1b2   : > { %v724_v60 = vadd.f32 %v723_v58, %v722_v57  ;;  %v698_v57 = vld [vmem:[%s1407_s3 + $0x18] sm:$0xff]  ;;  %v699_v58 = vld [vmem:[%s1407_s3 + $0x20] sm:$0xff] }
 0x1b4   : > { %v725_v62 = vrot.slane %v724_v60, 1 }
 0x1b6   : > { %v726_v63 = vadd.f32 %v725_v62, %v724_v60 }
 0x1b8   : > { %1076 = vpush %v726_v63 }
 0x1e9   : > { %s1077_s11 = spop %1076 }
 0x1ea   : > { %v728_v0 = vstv %s1077_s11 }
 0x1eb   : > { %v729_v1 = vmul.f32 0.00024414063, %v728_v0 }
 0x1ed   : > { %v730_v2 = vsub.f32 %v1309_v59, %v729_v1  ;;  %v731_v3 = vsub.f32 %v1311_v61, %v729_v1  ;;  %v732_v4 = vsub.f32 %v665_v9, %v729_v1  ;;  %v733_v5 = vsub.f32 %v668_v12, %v729_v1 }
 0x1ee   : > { %v734_v6 = vsub.f32 %v673_v29, %v729_v1  ;;  %v735_v11 = vsub.f32 %v676_v32, %v729_v1  ;;  %v736_v17 = vsub.f32 %v681_v47, %v729_v1  ;;  %v737_v20 = vsub.f32 %v684_v50, %v729_v1  ;;  %v692_v47 = vld [vmem:[%s1406_s2 + $0x28] sm:$0xff]  ;;  %v695_v50 = vld [vmem:[%s1407_s3] sm:$0xff] }
 0x1ef   : > { %v738_v7 = vmul.f32 %v730_v2, %v730_v2  ;;  %v739_v8 = vmul.f32 %v731_v3, %v731_v3  ;;  %v740_v10 = vmul.f32 %v732_v4, %v732_v4  ;;  %v741_v13 = vmul.f32 %v733_v5, %v733_v5  ;;  %v700_v1 = vld [vmem:[%s1407_s3 + $0x28] sm:$0xff] }
 0x1f0   : > { %v742_v18 = vmul.f32 %v734_v6, %v734_v6  ;;  %v743_v61 = vmul.f32 %v735_v11, %v735_v11  ;;  %v744_v21 = vmul.f32 %v736_v17, %v736_v17  ;;  %v745_v24 = vmul.f32 %v737_v20, %v737_v20 }
 0x1f1   : > { %v746_v14 = vsel %vm703_vm0, %v738_v7, 0.0  ;;  %v747_v15 = vsel %vm703_vm0, %v739_v8, 0.0  ;;  %v749_v19 = vsel %vm703_vm0, %v740_v10, 0.0  ;;  %v751_v9 = vsel %vm703_vm0, %v741_v13, 0.0 }
 0x1f2   : > { %v748_v16 = vadd.f32 %v747_v15, %v746_v14  ;;  %v753_v22 = vsel %vm703_vm0, %v742_v18, 0.0  ;;  %v755_v25 = vsel %vm703_vm0, %v743_v61, 0.0  ;;  %v757_v27 = vsel %vm703_vm0, %v744_v21, 0.0 }
 0x1f3   : > { %v759_v29 = vsel %vm703_vm0, %v745_v24, 0.0 }
 0x1f4   : > { %v750_v59 = vadd.f32 %v749_v19, %v748_v16 }
 0x1f6   : > { %v752_v12 = vadd.f32 %v751_v9, %v750_v59 }
 0x1f8   : > { %v754_v23 = vadd.f32 %v753_v22, %v752_v12 }
 0x1fa   : > { %v756_v26 = vadd.f32 %v755_v25, %v754_v23 }
 0x1fc   : > { %v758_v28 = vadd.f32 %v757_v27, %v756_v26 }
 0x1fe   : > { %v760_v30 = vadd.f32 %v759_v29, %v758_v28 }
 0x200   : > { %761 = vadd.xlane.f32.xlu0 %v760_v30 }
 0x28d   : > { %v762_v31 = vpop.xlane.xlu0 %761 }
 0x28e   : > { %v763_v32 = vrot.slane %v762_v31, 4 }
 0x290   : > { %v764_v33 = vadd.f32 %v763_v32, %v762_v31 }
 0x292   : > { %v765_v34 = vrot.slane %v764_v33, 2 }
 0x294   : > { %v766_v35 = vadd.f32 %v765_v34, %v764_v33 }
 0x296   : > { %v767_v36 = vrot.slane %v766_v35, 1 }
 0x298   : > { %v768_v37 = vadd.f32 %v767_v36, %v766_v35 }
 0x29a   : > { %1078 = vpush %v768_v37 }
 0x2cb   : > { %s1079_s12 = spop %1078 }
 0x2cc   : > { %v770_v38 = vstv %s1079_s12 }
 0x2cd   : > { %v771_v39 = vmul.f32 0.00024414063, %v770_v38 }
 0x2cf   : > { %v772_v40 = vadd.f32 1e-05, %v771_v39 }
 0x2d1   : > { %1144 = vrsqrt.f32 %v772_v40 }
 0x2db   : > { %v1145_v45 = vpop.eup %1144 }
 0x2dc   : > { %v774_v52 = vmul.f32 %v1145_v45, %v730_v2  ;;  %v775_v53 = vmul.f32 %v1145_v45, %v731_v3  ;;  %v776_v54 = vmul.f32 %v1145_v45, %v732_v4  ;;  %v777_v55 = vmul.f32 %v1145_v45, %v733_v5  ;;  %v701_v2 = vld [vmem:[%s1407_s3 + $0x30] sm:$0xff]  ;;  %v702_v3 = vld [vmem:[%s1407_s3 + $0x38] sm:$0xff] }
 0x2dd   : > { %v778_v60 = vmul.f32 %v1145_v45, %v734_v6  ;;  %v779_v62 = vmul.f32 %v1145_v45, %v735_v11  ;;  %v780_v63 = vmul.f32 %v1145_v45, %v736_v17  ;;  %v781_v0 = vmul.f32 %v1145_v45, %v737_v20 }
 0x2de   : > { %v782_v4 = vmul.f32 %v774_v52, %v687_v41  ;;  %v783_v5 = vmul.f32 %v775_v53, %v688_v42  ;;  %v784_v7 = vmul.f32 %v776_v54, %v689_v43  ;;  %v785_v8 = vmul.f32 %v777_v55, %v690_v44 }
 0x2df   : > { %v786_v6 = vmul.f32 %v778_v60, %v691_v46  ;;  %v787_v10 = vmul.f32 %v779_v62, %v692_v47  ;;  %v788_v11 = vmul.f32 %v780_v63, %v693_v48  ;;  %v789_v13 = vmul.f32 %v781_v0, %v694_v49 }
 0x2e0   : > { %v790_v14 = vadd.f32 %v782_v4, %v695_v50  ;;  %v791_v15 = vadd.f32 %v783_v5, %v696_v51  ;;  %v792_v16 = vadd.f32 %v784_v7, %v697_v56  ;;  %v793_v17 = vadd.f32 %v785_v8, %v698_v57 }
 0x2e1   : > { %v794_v18 = vadd.f32 %v786_v6, %v699_v58  ;;  %v795_v19 = vadd.f32 %v787_v10, %v700_v1  ;;  %v796_v59 = vadd.f32 %v788_v11, %v701_v2  ;;  %v797_v20 = vadd.f32 %v789_v13, %v702_v3 }
 0x2e2   : > { %vm798_vm2 = vcmp.ge.f32.partialorder %v790_v14, 0.0  ;;  %vm799_vm3 = vcmp.ge.f32.partialorder %v791_v15, 0.0  ;;  %vm800_vm4 = vcmp.ge.f32.partialorder %v792_v16, 0.0  ;;  %vm801_vm5 = vcmp.ge.f32.partialorder %v793_v17, 0.0 }
 0x2e3   : > { %vm802_vm6 = vcmp.ge.f32.partialorder %v794_v18, 0.0  ;;  %vm803_vm7 = vcmp.ge.f32.partialorder %v795_v19, 0.0  ;;  %vm804_vm8 = vcmp.ge.f32.partialorder %v796_v59, 0.0  ;;  %vm805_vm9 = vcmp.ge.f32.partialorder %v797_v20, 0.0 }
 0x2e4   : > { %v806_v61 = vmul.f32 0.2, %v790_v14  ;;  %v807_v9 = vmul.f32 0.2, %v791_v15  ;;  %v808_v12 = vmul.f32 0.2, %v792_v16 }
 0x2e5   : > { %v809_v21 = vmul.f32 0.2, %v793_v17  ;;  %v810_v22 = vmul.f32 0.2, %v794_v18  ;;  %v811_v23 = vmul.f32 0.2, %v795_v19 }
 0x2e6   : > { %v812_v24 = vmul.f32 0.2, %v796_v59  ;;  %v813_v25 = vmul.f32 0.2, %v797_v20  ;;  %v814_v26 = vsel %vm798_vm2, %v790_v14, %v806_v61  ;;  %v815_v27 = vsel %vm799_vm3, %v791_v15, %v807_v9 }
 0x2e7   : > { %v816_v28 = vsel %vm800_vm4, %v792_v16, %v808_v12  ;;  %v817_v29 = vsel %vm801_vm5, %v793_v17, %v809_v21  ;;  %v818_v30 = vsel %vm802_vm6, %v794_v18, %v810_v22  ;;  %v819_v31 = vsel %vm803_vm7, %v795_v19, %v811_v23 }
 0x2e8   : > { %v820_v32 = vsel %vm804_vm8, %v796_v59, %v812_v24  ;;  %v821_v33 = vsel %vm805_vm9, %v797_v20, %v813_v25  ;;  %v988_v34 = vpack.c.bf16 %v814_v26, %v814_v26  ;;  %v989_v35 = vpack.c.bf16 %v815_v27, %v815_v27 }
 0x2e9   : > { %v990_v36 = vpack.c.bf16 %v816_v28, %v816_v28  ;;  %v991_v37 = vpack.c.bf16 %v817_v29, %v817_v29  ;;  %v992_v38 = vpack.c.bf16 %v818_v30, %v818_v30  ;;  %v993_v39 = vpack.c.bf16 %v819_v31, %v819_v31 }
 0x2ea   : > { %v994_v40 = vpack.c.bf16 %v820_v32, %v820_v32  ;;  %v995_v41 = vpack.c.bf16 %v821_v33, %v821_v33  ;;  %855 = vst.msk [vmem:[%s202_s25] sm:$0xf] %vm854_vm1, %v988_v34  ;;  %856 = vst.msk [vmem:[%s202_s25 + $0x4] sm:$0xf] %vm854_vm1, %v989_v35 }
 0x2eb   : > { %857 = vst.msk [vmem:[%s202_s25 + $0x8] sm:$0xf] %vm854_vm1, %v990_v36  ;;  %858 = vst.msk [vmem:[%s202_s25 + $0xc] sm:$0xf] %vm854_vm1, %v991_v37 }
 0x2ec   : > { %859 = vst.msk [vmem:[%s202_s25 + $0x10] sm:$0xf] %vm854_vm1, %v992_v38  ;;  %860 = vst.msk [vmem:[%s202_s25 + $0x14] sm:$0xf] %vm854_vm1, %v993_v39 }
 0x2ed   : > { %861 = vst.msk [vmem:[%s202_s25 + $0x18] sm:$0xf] %vm854_vm1, %v994_v40  ;;  %862 = vst.msk [vmem:[%s202_s25 + $0x1c] sm:$0xf] %vm854_vm1, %v995_v41 }
 0x2ee PF: > { %s14_s15 = sadd.s32 1, %s1152_s15  }
 0x2ef   : > { %p11_p4 = scmp.ge.s32.totalorder %s14_s15, 4  }
 0x2f1   :  { %13 = sbr.rel (!%p11_p4) target bundleno = 1 (0x1), region = 66 }

// kernel: discriminator_forward.7
= control target key start
LH: loop header
LB: loop body
LE: loop exit
PB: predicated region body
PF: predicated region fallthrough
CT: control target
= control target key end

     0   :  { %s1359_s18 = smov 0   ;;  %s1601_s0 = inlined_call_operand.vmem [shape: bf16[32,1024], index: 0, kind: input, shape index: {}]   ;;  %s1602_s1 = inlined_call_operand.vmem [shape: bf16[1024,128], index: 1, kind: input, shape index: {}]   ;;  %s1603_s2 = inlined_call_operand.vmem [shape: f32[16,128], index: 2, kind: input, shape index: {}]   ;;  %s1604_s3 = inlined_call_operand.vmem [shape: f32[16,128], index: 3, kind: input, shape index: {}]   ;;  %s1605_s4 = inlined_call_operand.vmem [shape: f32[16,128], index: 4, kind: input, shape index: {}]   ;;  %s1606_s5 = inlined_call_operand.vmem [shape: f32[2,8,128], index: 5, kind: output, shape index: {}]  }
   0x1 LB: > { %s1365_s19 = sadd.s32 4294967295, %s1327_s18   ;;  %p1073_p0 = scmp.ge.s32.totalorder %s1327_s18, 1  ;;  %s1327_s18 = sphi %s1359_s18, %s15_s18  }
   0x2   : > { %p189_p1 = scmp.lt.s32.totalorder %s1327_s18, 3 }
   0x4   : > { %p190_p2 = pnand %p1073_p0, %p189_p1 }
   0x5   : > { %v1255_v0 = vld [vmem:[%s1602_s1 + $0x40] sm:$0xff] (!%p190_p2)   ;;  %v1259_v4 = vld [vmem:[%s1602_s1 + $0x48] sm:$0xff] (!%p190_p2)   ;;  %v1263_v8 = vld [vmem:[%s1602_s1 + $0x50] sm:$0xff] (!%p190_p2)   ;;  %s1074_s29 = sshll.u32 (!%p190_p2), %s1365_s19, 1  ;;  %p224_p4 = scmp.lt.s32.totalorder (!%p190_p2), %s1365_s19, 1 }
   0x6   : > { %193 = sbr.rel (%p190_p2) target bundleno = 946 (0x3b2), region = 40  ;;  %v1256_v1 = vld [vmem:[%s1602_s1 + $0xc0] sm:$0xff] (!%p190_p2)   ;;  %1153 = vmatprep.subr.bf16.mxu0 (!%p190_p2), %v1255_v0  ;;  %v1260_v5 = vld [vmem:[%s1602_s1 + $0xc8] sm:$0xff] (!%p190_p2)   ;;  %v1264_v9 = vld [vmem:[%s1602_s1 + $0xd0] sm:$0xff] (!%p190_p2)   ;;  %p218_p3 = scmp.lt.s32.totalorder (!%p190_p2), %s1074_s29, 3 }
   0x7   : > { %v1257_v2 = vld [vmem:[%s1602_s1] sm:$0xff] (!%p190_p2)   ;;  %1175 = vmatprep.subr.bf16.mxu1 (!%p190_p2), %v1256_v1  ;;  %v1261_v6 = vld [vmem:[%s1602_s1 + $0x8] sm:$0xff] (!%p190_p2)   ;;  %v1265_v10 = vld [vmem:[%s1602_s1 + $0x10] sm:$0xff] (!%p190_p2)  }
   0x8   : > { %v1258_v3 = vld [vmem:[%s1602_s1 + $0x80] sm:$0xff] (!%p190_p2)   ;;  %1154 = vmatpush3.bf16.msra.mxu0 (!%p190_p2), %v1257_v2  ;;  %v1262_v7 = vld [vmem:[%s1602_s1 + $0x88] sm:$0xff] (!%p190_p2)   ;;  %v1266_v11 = vld [vmem:[%s1602_s1 + $0x90] sm:$0xff] (!%p190_p2)  }
   0x9   : > { %1176 = vmatpush3.bf16.msra.mxu1 (!%p190_p2), %v1258_v3  ;;  %1155 = vmatprep.subr.bf16.mxu0 (!%p190_p2), %v1259_v4  ;;  %v1267_v12 = vld [vmem:[%s1602_s1 + $0x58] sm:$0xff] (!%p190_p2)   ;;  %v1271_v16 = vld [vmem:[%s1602_s1 + $0x60] sm:$0xff] (!%p190_p2)   ;;  %v1275_v20 = vld [vmem:[%s1602_s1 + $0x68] sm:$0xff] (!%p190_p2)  }
   0xa   : > { %1177 = vmatprep.subr.bf16.mxu1 (!%p190_p2), %v1260_v5  ;;  %v1268_v13 = vld [vmem:[%s1602_s1 + $0xd8] sm:$0xff] (!%p190_p2)   ;;  %v1272_v17 = vld [vmem:[%s1602_s1 + $0xe0] sm:$0xff] (!%p190_p2)   ;;  %v1276_v21 = vld [vmem:[%s1602_s1 + $0xe8] sm:$0xff] (!%p190_p2)  }
   0xb   : > { %v1269_v14 = vld [vmem:[%s1602_s1 + $0x18] sm:$0xff] (!%p190_p2)   ;;  %v1273_v18 = vld [vmem:[%s1602_s1 + $0x20] sm:$0xff] (!%p190_p2)   ;;  %v1277_v22 = vld [vmem:[%s1602_s1 + $0x28] sm:$0xff] (!%p190_p2)  }
   0xc   : > { %1156 = vmatpush3.bf16.msra.mxu0 (!%p190_p2), %v1261_v6  ;;  %v1270_v15 = vld [vmem:[%s1602_s1 + $0x98] sm:$0xff] (!%p190_p2)   ;;  %v1274_v19 = vld [vmem:[%s1602_s1 + $0xa0] sm:$0xff] (!%p190_p2)   ;;  %v1278_v23 = vld [vmem:[%s1602_s1 + $0xa8] sm:$0xff] (!%p190_p2)  }
   0xd   : > { %1178 = vmatpush3.bf16.msra.mxu1 %v1262_v7  ;;  %1157 = vmatprep.subr.bf16.mxu0 %v1263_v8  ;;  %s1608_s29 = smov (!%p218_p3, %s1074_s29), 3  ;;  %v1279_v24 = vld [vmem:[%s1602_s1 + $0x70] sm:$0xff]   ;;  %v1283_v28 = vld [vmem:[%s1602_s1 + $0x78] sm:$0xff]   ;;  %v1287_v40 = vld [vmem:[%s1602_s1 + $0x140] sm:$0xff]   ;;  %s1610_s19 = smov (!%p224_p4, %s1365_s19), 1 }
   0xe   : > { %1179 = vmatprep.subr.bf16.mxu1 %v1264_v9  ;;  %v1280_v25 = vld [vmem:[%s1602_s1 + $0xf0] sm:$0xff]   ;;  %s1152_s30 = sshll.u32 %s1608_s29, 5  ;;  %v1284_v29 = vld [vmem:[%s1602_s1 + $0xf8] sm:$0xff]   ;;  %v1288_v41 = vld [vmem:[%s1602_s1 + $0x1c0] sm:$0xff]   ;;  %s1077_s7 = sshll.u32 %s1610_s19, 3 }
   0xf   : > { %v1281_v26 = vld [vmem:[%s1602_s1 + $0x30] sm:$0xff]   ;;  %s1463_s14 = scalar_lea.vmem %s1601_s0, %s1152_s30  ;;  %v1285_v30 = vld [vmem:[%s1602_s1 + $0x38] sm:$0xff]   ;;  %v1289_v42 = vld [vmem:[%s1602_s1 + $0x100] sm:$0xff]   ;;  %s227_s10 = scalar_lea.vmem %s1606_s5, %s1077_s7 }
  0x10   : > { %1158 = vmatpush3.bf16.msra.mxu0 %v1265_v10  ;;  %v1282_v27 = vld [vmem:[%s1602_s1 + $0xb0] sm:$0xff]   ;;  %v1286_v31 = vld [vmem:[%s1602_s1 + $0xb8] sm:$0xff]   ;;  %v229_v32 = vld [vmem:[%s1463_s14] sm:$0xff] }
  0x11   : > { %1180 = vmatpush3.bf16.msra.mxu1 %v1266_v11  ;;  %1159 = vmatprep.subr.bf16.mxu0 %v1267_v12  ;;  %v233_v33 = vld [vmem:[%s1463_s14 + $0x20] sm:$0xff]  ;;  %v230_v34 = vld [vmem:[%s1463_s14 + $0x8] sm:$0xff]  ;;  %v1295_v48 = vld [vmem:[%s1602_s1 + $0x150] sm:$0xff]  }
  0x12   : > { %1181 = vmatprep.subr.bf16.mxu1 %v1268_v13  ;;  %v1078_v35 = vcombine.low %v229_v32, %v233_v33  ;;  %v1079_v36 = vcombine.high %v229_v32, %v233_v33  ;;  %v234_v37 = vld [vmem:[%s1463_s14 + $0x28] sm:$0xff]  ;;  %v1290_v43 = vld [vmem:[%s1602_s1 + $0x180] sm:$0xff]   ;;  %v1296_v49 = vld [vmem:[%s1602_s1 + $0x1d0] sm:$0xff]  }
  0x13   : > { %v1080_v38 = vcombine.low %v230_v34, %v234_v37  ;;  %v1081_v39 = vcombine.high %v230_v34, %v234_v37  ;;  %v1291_v44 = vld [vmem:[%s1602_s1 + $0x148] sm:$0xff]   ;;  %v1297_v50 = vld [vmem:[%s1602_s1 + $0x110] sm:$0xff]   ;;  %v1299_v52 = vld [vmem:[%s1602_s1 + $0x158] sm:$0xff]  }
  0x14   : > { %1160 = vmatpush3.bf16.msra.mxu0 %v1269_v14  ;;  %821 = vmatprep.mubr.bf16.mxu0 %v1079_v36  ;;  %v1292_v45 = vld [vmem:[%s1602_s1 + $0x1c8] sm:$0xff]   ;;  %v1298_v51 = vld [vmem:[%s1602_s1 + $0x190] sm:$0xff]   ;;  %v1300_v53 = vld [vmem:[%s1602_s1 + $0x1d8] sm:$0xff]  }
  0x15   : > { %1182 = vmatpush3.bf16.msra.mxu1 %v1270_v15  ;;  %1161 = vmatprep.subr.bf16.mxu0 %v1271_v16  ;;  %v1293_v46 = vld [vmem:[%s1602_s1 + $0x108] sm:$0xff]   ;;  %v1301_v54 = vld [vmem:[%s1602_s1 + $0x118] sm:$0xff]   ;;  %v1303_v56 = vld [vmem:[%s1602_s1 + $0x160] sm:$0xff]  }
  0x16   : > { %1183 = vmatprep.subr.bf16.mxu1 %v1272_v17  ;;  %862 = vmatprep.mubr.bf16.mxu1 %v1081_v39  ;;  %v1294_v47 = vld [vmem:[%s1602_s1 + $0x188] sm:$0xff]   ;;  %v1302_v55 = vld [vmem:[%s1602_s1 + $0x198] sm:$0xff]   ;;  %v1304_v57 = vld [vmem:[%s1602_s1 + $0x1e0] sm:$0xff]  }
  0x17   : > { %v1305_v58 = vld [vmem:[%s1602_s1 + $0x120] sm:$0xff]   ;;  %v1307_v60 = vld [vmem:[%s1602_s1 + $0x168] sm:$0xff]   ;;  %v1311_v0 = vld [vmem:[%s1602_s1 + $0x170] sm:$0xff]  }
  0x18   : > { %1162 = vmatpush3.bf16.msra.mxu0 %v1273_v18  ;;  %v1306_v59 = vld [vmem:[%s1602_s1 + $0x1a0] sm:$0xff]   ;;  %v1308_v61 = vld [vmem:[%s1602_s1 + $0x1e8] sm:$0xff]   ;;  %v1312_v1 = vld [vmem:[%s1602_s1 + $0x1f0] sm:$0xff]  }
  0x19   : > { %1184 = vmatpush3.bf16.msra.mxu1 %v1274_v19  ;;  %1163 = vmatprep.subr.bf16.mxu0 %v1275_v20  ;;  %v1309_v62 = vld [vmem:[%s1602_s1 + $0x128] sm:$0xff]   ;;  %v1313_v2 = vld [vmem:[%s1602_s1 + $0x130] sm:$0xff]   ;;  %v1315_v4 = vld [vmem:[%s1602_s1 + $0x178] sm:$0xff]  }
  0x1a   : > { %1185 = vmatprep.subr.bf16.mxu1 %v1276_v21  ;;  %v1310_v63 = vld [vmem:[%s1602_s1 + $0x1a8] sm:$0xff]   ;;  %v1314_v3 = vld [vmem:[%s1602_s1 + $0x1b0] sm:$0xff]   ;;  %v1316_v5 = vld [vmem:[%s1602_s1 + $0x1f8] sm:$0xff]  }
  0x1b   : > { %v1317_v6 = vld [vmem:[%s1602_s1 + $0x138] sm:$0xff]   ;;  %v231_v8 = vld [vmem:[%s1463_s14 + $0x10] sm:$0xff] }
  0x1c   : > { %1164 = vmatpush3.bf16.msra.mxu0 %v1277_v22  ;;  %v1318_v7 = vld [vmem:[%s1602_s1 + $0x1b8] sm:$0xff]   ;;  %v235_v9 = vld [vmem:[%s1463_s14 + $0x30] sm:$0xff] }
  0x1d   : > { %1186 = vmatpush3.bf16.msra.mxu1 %v1278_v23  ;;  %1165 = vmatprep.subr.bf16.mxu0 %v1279_v24  ;;  %v1082_v10 = vcombine.low %v231_v8, %v235_v9  ;;  %v1083_v11 = vcombine.high %v231_v8, %v235_v9  ;;  %v232_v12 = vld [vmem:[%s1463_s14 + $0x18] sm:$0xff]  ;;  %v953_v8 = vld [vmem:[%s1603_s2] sm:$0xff]  ;;  %v954_v9 = vld [vmem:[%s1603_s2 + $0x8] sm:$0xff] }
  0x1e   : > { %1187 = vmatprep.subr.bf16.mxu1 %v1280_v25  ;;  %v236_v13 = vld [vmem:[%s1463_s14 + $0x38] sm:$0xff] }
  0x1f   : > { %v1084_v14 = vcombine.low %v232_v12, %v236_v13  ;;  %v1085_v15 = vcombine.high %v232_v12, %v236_v13  ;;  %v955_v12 = vld [vmem:[%s1604_s3] sm:$0xff]  ;;  %v956_v13 = vld [vmem:[%s1604_s3 + $0x8] sm:$0xff] }
  0x20   : > { %1166 = vmatpush3.bf16.msra.mxu0 %v1281_v26 }
  0x21   : > { %1188 = vmatpush3.bf16.msra.mxu1 %v1282_v27  ;;  %1167 = vmatprep.subr.bf16.mxu0 %v1283_v28 }
  0x22   : > { %1189 = vmatprep.subr.bf16.mxu1 %v1284_v29 }
  0x24   : > { %1168 = vmatpush3.bf16.msra.mxu0 %v1285_v30 }
  0x25   : > { %1190 = vmatpush3.bf16.msra.mxu1 %v1286_v31  ;;  %1197 = vmatprep.subr.bf16.mxu0 %v1287_v40 }
  0x26   : > { %1219 = vmatprep.subr.bf16.mxu1 %v1288_v41 }
  0x27   : > { %822 = vmatmul.mubr.bf16.vlgmr.msra.gmra.mrb[0].mxu0 %v1078_v35 }
  0x28   : > { %863 = vmatmul.mubr.bf16.vlgmr.msra.gmra.mrb[0].mxu1 %v1080_v38  ;;  %1198 = vmatpush3.bf16.msra.mxu0 %v1289_v42 }
  0x29   : > { %1220 = vmatpush3.bf16.msra.mxu1 %v1290_v43  ;;  %1199 = vmatprep.subr.bf16.mxu0 %v1291_v44 }
  0x2a   : > { %1221 = vmatprep.subr.bf16.mxu1 %v1292_v45  ;;  %903 = vmatprep.mubr.bf16.mxu0 %v1083_v11 }
  0x2b   : > { %944 = vmatprep.mubr.bf16.mxu1 %v1085_v15 }
  0x2c   : > { %1200 = vmatpush3.bf16.msra.mxu0 %v1293_v46 }
  0x2d   : > { %1222 = vmatpush3.bf16.msra.mxu1 %v1294_v47  ;;  %1201 = vmatprep.subr.bf16.mxu0 %v1295_v48 }
  0x2e   : > { %1223 = vmatprep.subr.bf16.mxu1 %v1296_v49 }
  0x30   : > { %1202 = vmatpush3.bf16.msra.mxu0 %v1297_v50 }
  0x31   : > { %1224 = vmatpush3.bf16.msra.mxu1 %v1298_v51  ;;  %1203 = vmatprep.subr.bf16.mxu0 %v1299_v52 }
  0x32   : > { %1225 = vmatprep.subr.bf16.mxu1 %v1300_v53 }
  0x34   : > { %1204 = vmatpush3.bf16.msra.mxu0 %v1301_v54 }
  0x35   : > { %1226 = vmatpush3.bf16.msra.mxu1 %v1302_v55  ;;  %1205 = vmatprep.subr.bf16.mxu0 %v1303_v56 }
  0x36   : > { %1227 = vmatprep.subr.bf16.mxu1 %v1304_v57 }
  0x38   : > { %1206 = vmatpush3.bf16.msra.mxu0 %v1305_v58 }
  0x39   : > { %1228 = vmatpush3.bf16.msra.mxu1 %v1306_v59  ;;  %1207 = vmatprep.subr.bf16.mxu0 %v1307_v60 }
  0x3a   : > { %1229 = vmatprep.subr.bf16.mxu1 %v1308_v61 }
  0x3c   : > { %1208 = vmatpush3.bf16.msra.mxu0 %v1309_v62 }
  0x3d   : > { %1230 = vmatpush3.bf16.msra.mxu1 %v1310_v63  ;;  %1209 = vmatprep.subr.bf16.mxu0 %v1311_v0 }
  0x3e   : > { %1231 = vmatprep.subr.bf16.mxu1 %v1312_v1 }
  0x40   : > { %1210 = vmatpush3.bf16.msra.mxu0 %v1313_v2 }
  0x41   : > { %1232 = vmatpush3.bf16.msra.mxu1 %v1314_v3  ;;  %1211 = vmatprep.subr.bf16.mxu0 %v1315_v4 }
  0x42   : > { %1233 = vmatprep.subr.bf16.mxu1 %v1316_v5 }
  0x44   : > { %1212 = vmatpush3.bf16.msra.mxu0 %v1317_v6 }
  0x45   : > { %1234 = vmatpush3.bf16.msra.mxu1 %v1318_v7 }
  0x47   : > { %904 = vmatmul.mubr.bf16.vlgmr.msra.gmra.mrb[4].mxu0 %v1082_v10 }
  0x48   : > { %945 = vmatmul.mubr.bf16.vlgmr.msra.gmra.mrb[4].mxu1 %v1084_v14 }
  0xfa   : > { %v1169_v16 = vpop.f32.mrb[0].mxu0 }
  0xfb   : > { %v1191_v17 = vpop.f32.mrb[0].mxu1  ;;  %v1170_v18 = vpop.f32.mrb[1].mxu0 }
  0xfc   : > { %v1171_v19 = vadd.f32 %v1170_v18, %v1169_v16  ;;  %v1192_v20 = vpop.f32.mrb[1].mxu1  ;;  %v1172_v21 = vpop.f32.mrb[2].mxu0  ;;  %v999_v18 = vld [vmem:[%s1605_s4] sm:$0xff] }
  0xfd   : > { %v1193_v22 = vadd.f32 %v1192_v20, %v1191_v17  ;;  %v1194_v23 = vpop.f32.mrb[2].mxu1  ;;  %v1173_v24 = vpop.f32.mrb[3].mxu0 }
  0xfe   : > { %v1174_v25 = vadd.f32 %v1173_v24, %v1172_v21  ;;  %v1195_v26 = vpop.f32.mrb[3].mxu1 }
  0xff   : > { %v865_v27 = vadd.f32 %v1193_v22, %v1171_v19  ;;  %v1196_v28 = vadd.f32 %v1195_v26, %v1194_v23  ;;  %v1000_v19 = vld [vmem:[%s1605_s4 + $0x8] sm:$0xff] }
 0x101   : > { %v868_v29 = vadd.f32 %v1196_v28, %v1174_v25 }
 0x11a   : > { %v1213_v30 = vpop.f32.mrb[4].mxu0 }
 0x11b   : > { %v1235_v31 = vpop.f32.mrb[4].mxu1  ;;  %v1214_v32 = vpop.f32.mrb[5].mxu0 }
 0x11c   : > { %v1215_v33 = vadd.f32 %v1214_v32, %v1213_v30  ;;  %v1236_v34 = vpop.f32.mrb[5].mxu1  ;;  %v1216_v35 = vpop.f32.mrb[6].mxu0 }
 0x11d   : > { %v1237_v36 = vadd.f32 %v1236_v34, %v1235_v31  ;;  %v1238_v37 = vpop.f32.mrb[6].mxu1  ;;  %v1217_v38 = vpop.f32.mrb[7].mxu0 }
 0x11e   : > { %v906_v39 = vadd.f32 %v1215_v33, %v865_v27  ;;  %v1218_v40 = vadd.f32 %v1217_v38, %v1216_v35  ;;  %v1239_v41 = vpop.f32.mrb[7].mxu1 }
 0x11f   : > { %v1240_v42 = vadd.f32 %v1239_v41, %v1238_v37 }
 0x120   : > { %v909_v43 = vadd.f32 %v1218_v40, %v868_v29  ;;  %v947_v44 = vadd.f32 %v1237_v36, %v906_v39 }
 0x122   : > { %v950_v45 = vadd.f32 %v1240_v42, %v909_v43 }
 0x124   : > { %v957_v46 = vadd.f32 %v950_v45, %v947_v44 }
 0x126   : > { %958 = vadd.xlane.f32.xlu0 %v957_v46 }
 0x1b3   : > { %v959_v47 = vpop.xlane.xlu0 %958 }
 0x1b4   : > { %v960_v48 = vrot.slane %v959_v47, 4 }
 0x1b6   : > { %v961_v49 = vadd.f32 %v960_v48, %v959_v47 }
 0x1b8   : > { %v962_v50 = vrot.slane %v961_v49, 2 }
 0x1ba   : > { %v963_v51 = vadd.f32 %v962_v50, %v961_v49 }
 0x1bc   : > { %v964_v52 = vrot.slane %v963_v51, 1 }
 0x1be   : > { %v965_v53 = vadd.f32 %v964_v52, %v963_v51 }
 0x1c0   : > { %1241 = vpush %v965_v53 }
 0x1f1   : > { %s1242_s14 = spop %1241 }
 0x1f2   : > { %v967_v54 = vstv %s1242_s14 }
 0x1f3   : > { %v968_v55 = vmul.f32 0.00048828125, %v967_v54 }
 0x1f5   : > { %v969_v56 = vsub.f32 %v947_v44, %v968_v55  ;;  %v970_v57 = vsub.f32 %v950_v45, %v968_v55 }
 0x1f7   : > { %v971_v58 = vmul.f32 %v969_v56, %v969_v56  ;;  %v972_v59 = vmul.f32 %v970_v57, %v970_v57 }
 0x1f9   : > { %v973_v60 = vadd.f32 %v972_v59, %v971_v58 }
 0x1fb   : > { %974 = vadd.xlane.f32.xlu0 %v973_v60 }
 0x288   : > { %v975_v61 = vpop.xlane.xlu0 %974 }
 0x289   : > { %v976_v62 = vrot.slane %v975_v61, 4 }
 0x28b   : > { %v977_v63 = vadd.f32 %v976_v62, %v975_v61 }
 0x28d   : > { %v978_v0 = vrot.slane %v977_v63, 2 }
 0x28f   : > { %v979_v1 = vadd.f32 %v978_v0, %v977_v63 }
 0x291   : > { %v980_v2 = vrot.slane %v979_v1, 1 }
 0x293   : > { %v981_v3 = vadd.f32 %v980_v2, %v979_v1 }
 0x295   : > { %1243 = vpush %v981_v3 }
 0x2c6   : > { %s1244_s16 = spop %1243 }
 0x2c7   : > { %v983_v4 = vstv %s1244_s16 }
 0x2c8   : > { %v984_v5 = vmul.f32 0.00048828125, %v983_v4 }
 0x2ca   : > { %v985_v6 = vadd.f32 1e-05, %v984_v5 }
 0x2cc   : > { %1319 = vrsqrt.f32 %v985_v6 }
 0x2d6   : > { %v1320_v7 = vpop.eup %1319 }
 0x2d7   : > { %v987_v10 = vmul.f32 %v1320_v7, %v969_v56  ;;  %v988_v11 = vmul.f32 %v1320_v7, %v970_v57 }
 0x2d9   : > { %v989_v14 = vmul.f32 %v987_v10, %v953_v8  ;;  %v990_v15 = vmul.f32 %v988_v11, %v954_v9 }
 0x2db   : > { %v991_v16 = vadd.f32 %v989_v14, %v955_v12  ;;  %v992_v17 = vadd.f32 %v990_v15, %v956_v13 }
 0x2dd   : > { %vm993_vm0 = vcmp.ge.f32.partialorder %v991_v16, 0.0  ;;  %vm994_vm1 = vcmp.ge.f32.partialorder %v992_v17, 0.0  ;;  %v995_v20 = vmul.f32 0.2, %v991_v16  ;;  %v996_v21 = vmul.f32 0.2, %v992_v17 }
 0x2df   : > { %v997_v22 = vsel %vm993_vm0, %v991_v16, %v995_v20  ;;  %v998_v23 = vsel %vm994_vm1, %v992_v17, %v996_v21 }
 0x2e0   : > { %v1001_v24 = vmul.f32 %v999_v18, %v997_v22  ;;  %v1002_v25 = vmul.f32 %v1000_v19, %v998_v23 }
 0x2e2   : > { %v1003_v26 = vadd.f32 %v1002_v25, %v1001_v24 }
 0x2e4   : > { %1004 = vadd.xlane.f32.xlu1 %v1003_v26 }
 0x371   : > { %v1005_v27 = vpop.xlane.xlu1 %1004 }
 0x372   : > { %v1006_v28 = vrot.slane %v1005_v27, 4 }
 0x374   : > { %v1007_v29 = vadd.f32 %v1006_v28, %v1005_v27 }
 0x376   : > { %v1008_v30 = vrot.slane %v1007_v29, 2 }
 0x378   : > { %v1009_v31 = vadd.f32 %v1008_v30, %v1007_v29 }
 0x37a   : > { %v1010_v32 = vrot.slane %v1009_v31, 1 }
 0x37c   : > { %v1011_v33 = vadd.f32 %v1010_v32, %v1009_v31 }
 0x37e   : > { %1245 = vpush %v1011_v33 }
 0x3af   : > { %s1246_s11 = spop %1245 }
 0x3b0   : > { %v1013_v34 = vstv %s1246_s11 }
 0x3b1   : > { %1015 = vst [vmem:[%s227_s10] sm:$0xff] %v1013_v34 }
 0x3b2 PF: > { %s15_s18 = sadd.s32 1, %s1327_s18  }
 0x3b3   : > { %p12_p5 = scmp.ge.s32.totalorder %s15_s18, 4  }
 0x3b5   :  { %14 = sbr.rel (!%p12_p5) target bundleno = 1 (0x1), region = 70 }

</bundles_post_ra>
